<compile_context>
chip_gen: v7x
topology: tpu7x:2x2x1
jax: 0.10.0
libtpu: 0.0.40
codegen_flags: <defaults>
</compile_context>

<pallas_src>
import math

import jax
import jax.numpy as jnp
from jax.experimental import pallas as pl
from jax.experimental.pallas import tpu as pltpu  # noqa: F401  (kept for TPU-specific tuning hooks)


# ----------------------------- config (small, deterministic) -----------------------------
BATCH = 2
SEQ = 16
HIDDEN = 32
NUM_HEADS = 4
HEAD_DIM = HIDDEN // NUM_HEADS
MLP_DIM = 64
NUM_LAYERS = 2
LN_EPS = 1e-6
ATTN_SCALE = 1.0 / math.sqrt(HEAD_DIM)
TOKENS = BATCH * SEQ            # 32 tokens processed as one (32, 32) block
NEG_INF = -1e30                 # additive mask value for cross-batch attention entries


# ------------------- math helpers (pure jnp; used in-kernel and in the reference) -------------------
def _layernorm(x, w, b):
    # PyTorch LayerNorm: biased variance over last dim, eps inside sqrt.
    mu = jnp.mean(x, axis=-1, keepdims=True)
    xc = x - mu
    var = jnp.mean(xc * xc, axis=-1, keepdims=True)
    return xc * jax.lax.rsqrt(var + LN_EPS) * w + b


def _gelu_tanh(x):
    # GELU, tanh approximation.
    # TODO(synk): torch's default GELU is exact-erf; Mosaic has no erf lowering, so the tanh
    # approximation is used (max deviation from exact-erf GELU ~3e-4).
    c = math.sqrt(2.0 / math.pi)
    return 0.5 * x * (1.0 + jnp.tanh(c * (x + 0.044715 * (x * x * x))))


# ----------------------------- fused encoder kernel (single grid step) -----------------------------
def encoder_kernel(x_ref, mask_ref,
                   ln1w_ref, ln1b_ref,
                   wq_ref, bq_ref, wk_ref, bk_ref, wv_ref, bv_ref,
                   wo_ref, bo_ref,
                   ln2w_ref, ln2b_ref,
                   w1_ref, b1_ref, w2_ref, b2_ref,
                   encw_ref, encb_ref,
                   out_ref):
    """Whole encoder in one invocation.

    Shapes seen by the kernel (everything VMEM resident, loaded once):
      x_ref, out_ref : (TOKENS, HIDDEN)                  f32
      mask_ref       : (TOKENS, TOKENS)                  f32 additive block-diagonal batch mask
      wq/wk/wv       : (L, HIDDEN, HIDDEN)               bf16
      wo             : (L, NUM_HEADS, HEAD_DIM, HIDDEN)  bf16 (head-split output projection)
      w1 / w2        : (L, HIDDEN, MLP_DIM) / (L, MLP_DIM, HIDDEN)  bf16
      biases / LN    : (L, 1, dim) or (1, dim)           f32
    """
    x = x_ref[...]                  # (T, H) f32 — carried as a value across layers, one final store
    mask = mask_ref[...]            # (T, T) f32, reused every layer/head

    for l in range(NUM_LAYERS):     # static unroll: layers stay VMEM-resident, no grid steps
        # ---------------- attention branch ----------------
        h = _layernorm(x, ln1w_ref[l], ln1b_ref[l])                         # (T, H) f32
        hb = h.astype(jnp.bfloat16)
        # Three wide 2-D projections: Q/K/V split lives in separate weight tensors
        # (no broadcast_to, no lane-axis QKV concat / split).
        q = jnp.dot(hb, wq_ref[l], preferred_element_type=jnp.float32) + bq_ref[l]
        k = jnp.dot(hb, wk_ref[l], preferred_element_type=jnp.float32) + bk_ref[l]
        v = jnp.dot(hb, wv_ref[l], preferred_element_type=jnp.float32) + bv_ref[l]

        attn = jnp.zeros((TOKENS, HIDDEN), jnp.float32)
        for n in range(NUM_HEADS):                                          # static head unroll
            lo, hi = n * HEAD_DIM, (n + 1) * HEAD_DIM
            qn = q[:, lo:hi]                                                # (T, D)
            kn = k[:, lo:hi]
            vn = v[:, lo:hi]
            # Batched over images via the additive block-diagonal mask (cross-batch -> -1e30).
            s = jnp.einsum("qd,kd->qk", qn, kn,
                           preferred_element_type=jnp.float32) * ATTN_SCALE  # (T, T)
            s = s + mask
            m = jnp.max(s, axis=-1, keepdims=True)
            e = jnp.exp(s - m)
            p = e * pl.reciprocal(jnp.sum(e, axis=-1, keepdims=True), approx=True)  # EUP vrcp
            ctx = jnp.dot(p, vn, preferred_element_type=jnp.float32)        # (T, D)
            # Head-split output projection: sum_n ctx_n @ Wo_n == concat_n(ctx_n) @ Wo.
            attn = attn + jnp.dot(ctx.astype(jnp.bfloat16), wo_ref[l, n],
                                  preferred_element_type=jnp.float32)       # (T, H)
        x = x + attn + bo_ref[l]                                            # residual

        # ---------------- MLP branch ----------------
        h2 = _layernorm(x, ln2w_ref[l], ln2b_ref[l])
        mlp = jnp.dot(h2.astype(jnp.bfloat16), w1_ref[l],
                      preferred_element_type=jnp.float32) + b1_ref[l]
        mlp = _gelu_tanh(mlp)
        mlp = jnp.dot(mlp.astype(jnp.bfloat16), w2_ref[l],
                      preferred_element_type=jnp.float32) + b2_ref[l]
        x = x + mlp                                                         # residual

    # Final encoder LayerNorm, single store.
    out_ref[...] = _layernorm(x, encw_ref[...], encb_ref[...])


# ----------------------------- wrapper -----------------------------
@jax.jit
def encoder_forward(x, params):
    """Equivalent of Encoder.forward with vis=False (attn_weights == [])."""
    bf16 = jnp.bfloat16
    # Head-split the output projection on the host; cast matmul weights to bf16 (f32 accumulate).
    wo_h = params["wo"].reshape(NUM_LAYERS, NUM_HEADS, HEAD_DIM, HIDDEN).astype(bf16)

    # Additive block-diagonal batch mask: 0 inside an image, -1e30 across images.
    tok_batch = jnp.repeat(jnp.arange(BATCH), SEQ)                          # (TOKENS,)
    mask = jnp.where(tok_batch[:, None] == tok_batch[None, :],
                     0.0, NEG_INF).astype(jnp.float32)                      # (TOKENS, TOKENS)

    x2 = x.reshape(TOKENS, HIDDEN)                                          # fold batch on the host

    out = pl.pallas_call(
        encoder_kernel,
        out_shape=jax.ShapeDtypeStruct((TOKENS, HIDDEN), jnp.float32),
        # No grid: single invocation, full arrays VMEM-resident (total footprint ~0.1 MiB).
    )(x2, mask,
      params["ln1_w"], params["ln1_b"],
      params["wq"].astype(bf16), params["bq"],
      params["wk"].astype(bf16), params["bk"],
      params["wv"].astype(bf16), params["bv"],
      wo_h, params["bo"],
      params["ln2_w"], params["ln2_b"],
      params["w1"].astype(bf16), params["b1"],
      params["w2"].astype(bf16), params["b2"],
      params["enc_w"], params["enc_b"])
    return out.reshape(BATCH, SEQ, HIDDEN)


# ----------------------------- pure-JAX f32 reference (torch-like math, tanh GELU) -----------------------------
def encoder_reference(x, p):
    def block(xb, l):
        h = _layernorm(xb, p["ln1_w"][l], p["ln1_b"][l])
        q = h @ p["wq"][l] + p["bq"][l]
        k = h @ p["wk"][l] + p["bk"][l]
        v = h @ p["wv"][l] + p["bv"][l]

        def heads(t):                                        # (S, H) -> (NH, S, D)
            return t.reshape(SEQ, NUM_HEADS, HEAD_DIM).transpose(1, 0, 2)

        qh, kh, vh = heads(q), heads(k), heads(v)
        s = jnp.einsum("nqd,nkd->nqk", qh, kh) * ATTN_SCALE
        probs = jax.nn.softmax(s, axis=-1)
        ctx = jnp.einsum("nqk,nkd->nqd", probs, vh)          # (NH, S, D)
        ctx = ctx.transpose(1, 0, 2).reshape(SEQ, HIDDEN)    # merge heads
        attn = ctx @ p["wo"][l] + p["bo"][l]
        xb = xb + attn
        h2 = _layernorm(xb, p["ln2_w"][l], p["ln2_b"][l])
        m = _gelu_tanh(h2 @ p["w1"][l] + p["b1"][l])
        m = m @ p["w2"][l] + p["b2"][l]
        return xb + m

    outs = []
    for b in range(BATCH):
        xb = x[b]
        for l in range(NUM_LAYERS):
            xb = block(xb, l)
        outs.append(_layernorm(xb, p["enc_w"], p["enc_b"]))
    return jnp.stack(outs, axis=0)


# ----------------------------- deterministic parameter init -----------------------------
def make_params(key):
    def dense(k, fan_in, fan_out):
        kw, kb = jax.random.split(k)
        w = jax.random.normal(kw, (fan_in, fan_out), jnp.float32) * 0.02    # (in, out) layout
        b = jax.random.normal(kb, (fan_out,), jnp.float32) * 1e-3
        return w, b.reshape(1, fan_out)

    layers = []
    for lk in jax.random.split(key, NUM_LAYERS):
        ks = jax.random.split(lk, 6)
        wq, bq = dense(ks[0], HIDDEN, HIDDEN)
        wk, bk = dense(ks[1], HIDDEN, HIDDEN)
        wv, bv = dense(ks[2], HIDDEN, HIDDEN)
        wo, bo = dense(ks[3], HIDDEN, HIDDEN)
        w1, b1 = dense(ks[4], HIDDEN, MLP_DIM)
        w2, b2 = dense(ks[5], MLP_DIM, HIDDEN)
        layers.append(dict(
            wq=wq, bq=bq, wk=wk, bk=bk, wv=wv, bv=bv, wo=wo, bo=bo,
            w1=w1, b1=b1, w2=w2, b2=b2,
            ln1_w=jnp.ones((1, HIDDEN), jnp.float32),
            ln1_b=jnp.zeros((1, HIDDEN), jnp.float32),
            ln2_w=jnp.ones((1, HIDDEN), jnp.float32),
            ln2_b=jnp.zeros((1, HIDDEN), jnp.float32)))

    p = {k: jnp.stack([lp[k] for lp in layers], axis=0) for k in layers[0]}
    p["enc_w"] = jnp.ones((1, HIDDEN), jnp.float32)
    p["enc_b"] = jnp.zeros((1, HIDDEN), jnp.float32)
    return p


# ----------------------------- main -----------------------------
if __name__ == "__main__":
    key = jax.random.PRNGKey(0)
    kx, kp = jax.random.split(key)
    x = jax.random.normal(kx, (BATCH, SEQ, HIDDEN), jnp.float32)
    params = make_params(kp)

    encoded = encoder_forward(x, params)
    jax.block_until_ready(encoded)
    attn_weights = []  # vis=False: Encoder returns an empty list of attention maps

    assert encoded.shape == (BATCH, SEQ, HIDDEN)
    assert bool(jnp.all(jnp.isfinite(encoded)))

    # Sanity-check wiring against a pure-JAX f32 reference of the same math.
    # Expected deviations: bf16 matmul operands, EUP-approx softmax reciprocal.
    ref = encoder_reference(x, params)
    max_err = float(jnp.max(jnp.abs(encoded - ref)))
    assert max_err < 5e-2, f"kernel/reference mismatch: max abs err {max_err}"

    print("KERNEL_OK")
</pallas_src>

<mosaic_0001>
module attributes {stable_mosaic.version = 11 : i64} {
  func.func @encoder_kernel(%arg0: memref<32x32xf32, #tpu.memory_space<vmem>>, %arg1: memref<32x32xf32, #tpu.memory_space<vmem>>, %arg2: memref<2x1x32xf32, #tpu.memory_space<vmem>>, %arg3: memref<2x1x32xf32, #tpu.memory_space<vmem>>, %arg4: memref<2x32x32xbf16, #tpu.memory_space<vmem>>, %arg5: memref<2x1x32xf32, #tpu.memory_space<vmem>>, %arg6: memref<2x32x32xbf16, #tpu.memory_space<vmem>>, %arg7: memref<2x1x32xf32, #tpu.memory_space<vmem>>, %arg8: memref<2x32x32xbf16, #tpu.memory_space<vmem>>, %arg9: memref<2x1x32xf32, #tpu.memory_space<vmem>>, %arg10: memref<2x4x8x32xbf16, #tpu.memory_space<vmem>>, %arg11: memref<2x1x32xf32, #tpu.memory_space<vmem>>, %arg12: memref<2x1x32xf32, #tpu.memory_space<vmem>>, %arg13: memref<2x1x32xf32, #tpu.memory_space<vmem>>, %arg14: memref<2x32x64xbf16, #tpu.memory_space<vmem>>, %arg15: memref<2x1x64xf32, #tpu.memory_space<vmem>>, %arg16: memref<2x64x32xbf16, #tpu.memory_space<vmem>>, %arg17: memref<2x1x32xf32, #tpu.memory_space<vmem>>, %arg18: memref<1x32xf32, #tpu.memory_space<vmem>>, %arg19: memref<1x32xf32, #tpu.memory_space<vmem>>, %arg20: memref<32x32xf32, #tpu.memory_space<vmem>>) attributes {dimension_semantics = [], scalar_prefetch = 0 : i64, scratch_operands = 0 : i64, tpu.core_type = #tpu.core_type<tc>} {
    %c0 = arith.constant 0 : index
    %c0_0 = arith.constant 0 : index
    %0 = vector.load %arg0[%c0, %c0_0] : memref<32x32xf32, #tpu.memory_space<vmem>>, vector<32x32xf32>
    %c0_1 = arith.constant 0 : index
    %c0_2 = arith.constant 0 : index
    %1 = vector.load %arg1[%c0_1, %c0_2] : memref<32x32xf32, #tpu.memory_space<vmem>>, vector<32x32xf32>
    %c0_3 = arith.constant 0 : index
    %c0_4 = arith.constant 0 : index
    %c0_5 = arith.constant 0 : index
    %2 = vector.load %arg2[%c0_3, %c0_4, %c0_5] : memref<2x1x32xf32, #tpu.memory_space<vmem>>, vector<1x1x32xf32>
    %3 = vector.shape_cast %2 : vector<1x1x32xf32> to vector<1x32xf32>
    %c0_6 = arith.constant 0 : index
    %c0_7 = arith.constant 0 : index
    %c0_8 = arith.constant 0 : index
    %4 = vector.load %arg3[%c0_6, %c0_7, %c0_8] : memref<2x1x32xf32, #tpu.memory_space<vmem>>, vector<1x1x32xf32>
    %5 = vector.shape_cast %4 : vector<1x1x32xf32> to vector<1x32xf32>
    %cst = arith.constant dense<0.000000e+00> : vector<32xf32>
    %6 = vector.multi_reduction <add>, %0, %cst [1] : vector<32x32xf32> to vector<32xf32>
    %7 = vector.shape_cast %6 : vector<32xf32> to vector<32x1xf32>
    %cst_9 = arith.constant 3.200000e+01 : f32
    %8 = vector.broadcast %cst_9 : f32 to vector<32x1xf32>
    %9 = arith.divf %7, %8 : vector<32x1xf32>
    %10 = vector.broadcast %9 : vector<32x1xf32> to vector<32x32xf32>
    %11 = arith.subf %0, %10 : vector<32x32xf32>
    %12 = arith.mulf %11, %11 : vector<32x32xf32>
    %cst_10 = arith.constant dense<0.000000e+00> : vector<32xf32>
    %13 = vector.multi_reduction <add>, %12, %cst_10 [1] : vector<32x32xf32> to vector<32xf32>
    %14 = vector.shape_cast %13 : vector<32xf32> to vector<32x1xf32>
    %cst_11 = arith.constant 3.200000e+01 : f32
    %15 = vector.broadcast %cst_11 : f32 to vector<32x1xf32>
    %16 = arith.divf %14, %15 : vector<32x1xf32>
    %cst_12 = arith.constant 9.99999997E-7 : f32
    %17 = vector.broadcast %cst_12 : f32 to vector<32x1xf32>
    %18 = arith.addf %16, %17 : vector<32x1xf32>
    %19 = math.rsqrt %18 : vector<32x1xf32>
    %20 = vector.broadcast %19 : vector<32x1xf32> to vector<32x32xf32>
    %21 = arith.mulf %11, %20 : vector<32x32xf32>
    %22 = vector.broadcast %3 : vector<1x32xf32> to vector<32x32xf32>
    %23 = arith.mulf %21, %22 : vector<32x32xf32>
    %24 = vector.broadcast %5 : vector<1x32xf32> to vector<32x32xf32>
    %25 = arith.addf %23, %24 : vector<32x32xf32>
    %26 = arith.truncf %25 : vector<32x32xf32> to vector<32x32xbf16>
    %c0_13 = arith.constant 0 : index
    %c0_14 = arith.constant 0 : index
    %c0_15 = arith.constant 0 : index
    %27 = vector.load %arg4[%c0_13, %c0_14, %c0_15] : memref<2x32x32xbf16, #tpu.memory_space<vmem>>, vector<1x32x32xbf16>
    %28 = vector.shape_cast %27 : vector<1x32x32xbf16> to vector<32x32xbf16>
    %cst_16 = arith.constant dense<0.000000e+00> : vector<32x32xf32>
    %29 = tpu.matmul %26, %28, %cst_16 {dimension_numbers = #tpu.dot_dimension_numbers<[1], [0], [0], [1], [0, 0, 1, 1], [], []>} : vector<32x32xbf16>, vector<32x32xbf16>, vector<32x32xf32> -> vector<32x32xf32>
    %c0_17 = arith.constant 0 : index
    %c0_18 = arith.constant 0 : index
    %c0_19 = arith.constant 0 : index
    %30 = vector.load %arg5[%c0_17, %c0_18, %c0_19] : memref<2x1x32xf32, #tpu.memory_space<vmem>>, vector<1x1x32xf32>
    %31 = vector.shape_cast %30 : vector<1x1x32xf32> to vector<1x32xf32>
    %32 = vector.broadcast %31 : vector<1x32xf32> to vector<32x32xf32>
    %33 = arith.addf %29, %32 : vector<32x32xf32>
    %c0_20 = arith.constant 0 : index
    %c0_21 = arith.constant 0 : index
    %c0_22 = arith.constant 0 : index
    %34 = vector.load %arg6[%c0_20, %c0_21, %c0_22] : memref<2x32x32xbf16, #tpu.memory_space<vmem>>, vector<1x32x32xbf16>
    %35 = vector.shape_cast %34 : vector<1x32x32xbf16> to vector<32x32xbf16>
    %cst_23 = arith.constant dense<0.000000e+00> : vector<32x32xf32>
    %36 = tpu.matmul %26, %35, %cst_23 {dimension_numbers = #tpu.dot_dimension_numbers<[1], [0], [0], [1], [0, 0, 1, 1], [], []>} : vector<32x32xbf16>, vector<32x32xbf16>, vector<32x32xf32> -> vector<32x32xf32>
    %c0_24 = arith.constant 0 : index
    %c0_25 = arith.constant 0 : index
    %c0_26 = arith.constant 0 : index
    %37 = vector.load %arg7[%c0_24, %c0_25, %c0_26] : memref<2x1x32xf32, #tpu.memory_space<vmem>>, vector<1x1x32xf32>
    %38 = vector.shape_cast %37 : vector<1x1x32xf32> to vector<1x32xf32>
    %39 = vector.broadcast %38 : vector<1x32xf32> to vector<32x32xf32>
    %40 = arith.addf %36, %39 : vector<32x32xf32>
    %c0_27 = arith.constant 0 : index
    %c0_28 = arith.constant 0 : index
    %c0_29 = arith.constant 0 : index
    %41 = vector.load %arg8[%c0_27, %c0_28, %c0_29] : memref<2x32x32xbf16, #tpu.memory_space<vmem>>, vector<1x32x32xbf16>
    %42 = vector.shape_cast %41 : vector<1x32x32xbf16> to vector<32x32xbf16>
    %cst_30 = arith.constant dense<0.000000e+00> : vector<32x32xf32>
    %43 = tpu.matmul %26, %42, %cst_30 {dimension_numbers = #tpu.dot_dimension_numbers<[1], [0], [0], [1], [0, 0, 1, 1], [], []>} : vector<32x32xbf16>, vector<32x32xbf16>, vector<32x32xf32> -> vector<32x32xf32>
    %c0_31 = arith.constant 0 : index
    %c0_32 = arith.constant 0 : index
    %c0_33 = arith.constant 0 : index
    %44 = vector.load %arg9[%c0_31, %c0_32, %c0_33] : memref<2x1x32xf32, #tpu.memory_space<vmem>>, vector<1x1x32xf32>
    %45 = vector.shape_cast %44 : vector<1x1x32xf32> to vector<1x32xf32>
    %46 = vector.broadcast %45 : vector<1x32xf32> to vector<32x32xf32>
    %47 = arith.addf %43, %46 : vector<32x32xf32>
    %cst_34 = arith.constant 0.000000e+00 : f32
    %48 = vector.broadcast %cst_34 : f32 to vector<32x32xf32>
    %49 = vector.extract_strided_slice %33 {offsets = [0, 0], sizes = [32, 8], strides = [1, 1]} : vector<32x32xf32> to vector<32x8xf32>
    %50 = vector.extract_strided_slice %40 {offsets = [0, 0], sizes = [32, 8], strides = [1, 1]} : vector<32x32xf32> to vector<32x8xf32>
    %51 = vector.extract_strided_slice %47 {offsets = [0, 0], sizes = [32, 8], strides = [1, 1]} : vector<32x32xf32> to vector<32x8xf32>
    "tpu.trace_start"() <{level = 10 : i32, message = "qd,kd->qk"}> : () -> ()
    %cst_35 = arith.constant dense<0.000000e+00> : vector<32x32xf32>
    %52 = tpu.matmul %49, %50, %cst_35 {dimension_numbers = #tpu.dot_dimension_numbers<[1], [1], [0], [0], [0, 0, 1, 0], [], []>} : vector<32x8xf32>, vector<32x8xf32>, vector<32x32xf32> -> vector<32x32xf32>
    "tpu.trace_stop"() : () -> ()
    %cst_36 = arith.constant 0.353553385 : f32
    %53 = vector.broadcast %cst_36 : f32 to vector<32x32xf32>
    %54 = arith.mulf %52, %53 : vector<32x32xf32>
    %55 = arith.addf %54, %1 : vector<32x32xf32>
    %cst_37 = arith.constant dense<0xFF800000> : vector<32xf32>
    %56 = vector.multi_reduction <maximumf>, %55, %cst_37 [1] : vector<32x32xf32> to vector<32xf32>
    %57 = vector.shape_cast %56 : vector<32xf32> to vector<32x1xf32>
    %58 = vector.broadcast %57 : vector<32x1xf32> to vector<32x32xf32>
    %59 = arith.subf %55, %58 : vector<32x32xf32>
    %60 = math.exp %59 : vector<32x32xf32>
    %cst_38 = arith.constant dense<0.000000e+00> : vector<32xf32>
    %61 = vector.multi_reduction <add>, %60, %cst_38 [1] : vector<32x32xf32> to vector<32xf32>
    %62 = vector.shape_cast %61 : vector<32xf32> to vector<32x1xf32>
    %63 = tpu.reciprocal %62 {approx = true} : vector<32x1xf32> -> vector<32x1xf32>
    %64 = vector.broadcast %63 : vector<32x1xf32> to vector<32x32xf32>
    %65 = arith.mulf %60, %64 : vector<32x32xf32>
    %cst_39 = arith.constant dense<0.000000e+00> : vector<32x8xf32>
    %66 = tpu.matmul %65, %51, %cst_39 {dimension_numbers = #tpu.dot_dimension_numbers<[1], [0], [0], [1], [0, 0, 1, 1], [], []>} : vector<32x32xf32>, vector<32x8xf32>, vector<32x8xf32> -> vector<32x8xf32>
    %67 = arith.truncf %66 : vector<32x8xf32> to vector<32x8xbf16>
    %c0_40 = arith.constant 0 : index
    %c0_41 = arith.constant 0 : index
    %c0_42 = arith.constant 0 : index
    %c0_43 = arith.constant 0 : index
    %68 = vector.load %arg10[%c0_40, %c0_41, %c0_42, %c0_43] : memref<2x4x8x32xbf16, #tpu.memory_space<vmem>>, vector<1x1x8x32xbf16>
    %69 = vector.shape_cast %68 : vector<1x1x8x32xbf16> to vector<8x32xbf16>
    %cst_44 = arith.constant dense<0.000000e+00> : vector<32x32xf32>
    %70 = tpu.matmul %67, %69, %cst_44 {dimension_numbers = #tpu.dot_dimension_numbers<[1], [0], [0], [1], [0, 0, 1, 1], [], []>} : vector<32x8xbf16>, vector<8x32xbf16>, vector<32x32xf32> -> vector<32x32xf32>
    %71 = arith.addf %48, %70 : vector<32x32xf32>
    %72 = vector.extract_strided_slice %33 {offsets = [0, 8], sizes = [32, 8], strides = [1, 1]} : vector<32x32xf32> to vector<32x8xf32>
    %73 = vector.extract_strided_slice %40 {offsets = [0, 8], sizes = [32, 8], strides = [1, 1]} : vector<32x32xf32> to vector<32x8xf32>
    %74 = vector.extract_strided_slice %47 {offsets = [0, 8], sizes = [32, 8], strides = [1, 1]} : vector<32x32xf32> to vector<32x8xf32>
    "tpu.trace_start"() <{level = 10 : i32, message = "qd,kd->qk"}> : () -> ()
    %cst_45 = arith.constant dense<0.000000e+00> : vector<32x32xf32>
    %75 = tpu.matmul %72, %73, %cst_45 {dimension_numbers = #tpu.dot_dimension_numbers<[1], [1], [0], [0], [0, 0, 1, 0], [], []>} : vector<32x8xf32>, vector<32x8xf32>, vector<32x32xf32> -> vector<32x32xf32>
    "tpu.trace_stop"() : () -> ()
    %cst_46 = arith.constant 0.353553385 : f32
    %76 = vector.broadcast %cst_46 : f32 to vector<32x32xf32>
    %77 = arith.mulf %75, %76 : vector<32x32xf32>
    %78 = arith.addf %77, %1 : vector<32x32xf32>
    %cst_47 = arith.constant dense<0xFF800000> : vector<32xf32>
    %79 = vector.multi_reduction <maximumf>, %78, %cst_47 [1] : vector<32x32xf32> to vector<32xf32>
    %80 = vector.shape_cast %79 : vector<32xf32> to vector<32x1xf32>
    %81 = vector.broadcast %80 : vector<32x1xf32> to vector<32x32xf32>
    %82 = arith.subf %78, %81 : vector<32x32xf32>
    %83 = math.exp %82 : vector<32x32xf32>
    %cst_48 = arith.constant dense<0.000000e+00> : vector<32xf32>
    %84 = vector.multi_reduction <add>, %83, %cst_48 [1] : vector<32x32xf32> to vector<32xf32>
    %85 = vector.shape_cast %84 : vector<32xf32> to vector<32x1xf32>
    %86 = tpu.reciprocal %85 {approx = true} : vector<32x1xf32> -> vector<32x1xf32>
    %87 = vector.broadcast %86 : vector<32x1xf32> to vector<32x32xf32>
    %88 = arith.mulf %83, %87 : vector<32x32xf32>
    %cst_49 = arith.constant dense<0.000000e+00> : vector<32x8xf32>
    %89 = tpu.matmul %88, %74, %cst_49 {dimension_numbers = #tpu.dot_dimension_numbers<[1], [0], [0], [1], [0, 0, 1, 1], [], []>} : vector<32x32xf32>, vector<32x8xf32>, vector<32x8xf32> -> vector<32x8xf32>
    %90 = arith.truncf %89 : vector<32x8xf32> to vector<32x8xbf16>
    %c0_50 = arith.constant 0 : index
    %c1 = arith.constant 1 : index
    %c0_51 = arith.constant 0 : index
    %c0_52 = arith.constant 0 : index
    %91 = vector.load %arg10[%c0_50, %c1, %c0_51, %c0_52] : memref<2x4x8x32xbf16, #tpu.memory_space<vmem>>, vector<1x1x8x32xbf16>
    %92 = vector.shape_cast %91 : vector<1x1x8x32xbf16> to vector<8x32xbf16>
    %cst_53 = arith.constant dense<0.000000e+00> : vector<32x32xf32>
    %93 = tpu.matmul %90, %92, %cst_53 {dimension_numbers = #tpu.dot_dimension_numbers<[1], [0], [0], [1], [0, 0, 1, 1], [], []>} : vector<32x8xbf16>, vector<8x32xbf16>, vector<32x32xf32> -> vector<32x32xf32>
    %94 = arith.addf %71, %93 : vector<32x32xf32>
    %95 = vector.extract_strided_slice %33 {offsets = [0, 16], sizes = [32, 8], strides = [1, 1]} : vector<32x32xf32> to vector<32x8xf32>
    %96 = vector.extract_strided_slice %40 {offsets = [0, 16], sizes = [32, 8], strides = [1, 1]} : vector<32x32xf32> to vector<32x8xf32>
    %97 = vector.extract_strided_slice %47 {offsets = [0, 16], sizes = [32, 8], strides = [1, 1]} : vector<32x32xf32> to vector<32x8xf32>
    "tpu.trace_start"() <{level = 10 : i32, message = "qd,kd->qk"}> : () -> ()
    %cst_54 = arith.constant dense<0.000000e+00> : vector<32x32xf32>
    %98 = tpu.matmul %95, %96, %cst_54 {dimension_numbers = #tpu.dot_dimension_numbers<[1], [1], [0], [0], [0, 0, 1, 0], [], []>} : vector<32x8xf32>, vector<32x8xf32>, vector<32x32xf32> -> vector<32x32xf32>
    "tpu.trace_stop"() : () -> ()
    %cst_55 = arith.constant 0.353553385 : f32
    %99 = vector.broadcast %cst_55 : f32 to vector<32x32xf32>
    %100 = arith.mulf %98, %99 : vector<32x32xf32>
    %101 = arith.addf %100, %1 : vector<32x32xf32>
    %cst_56 = arith.constant dense<0xFF800000> : vector<32xf32>
    %102 = vector.multi_reduction <maximumf>, %101, %cst_56 [1] : vector<32x32xf32> to vector<32xf32>
    %103 = vector.shape_cast %102 : vector<32xf32> to vector<32x1xf32>
    %104 = vector.broadcast %103 : vector<32x1xf32> to vector<32x32xf32>
    %105 = arith.subf %101, %104 : vector<32x32xf32>
    %106 = math.exp %105 : vector<32x32xf32>
    %cst_57 = arith.constant dense<0.000000e+00> : vector<32xf32>
    %107 = vector.multi_reduction <add>, %106, %cst_57 [1] : vector<32x32xf32> to vector<32xf32>
    %108 = vector.shape_cast %107 : vector<32xf32> to vector<32x1xf32>
    %109 = tpu.reciprocal %108 {approx = true} : vector<32x1xf32> -> vector<32x1xf32>
    %110 = vector.broadcast %109 : vector<32x1xf32> to vector<32x32xf32>
    %111 = arith.mulf %106, %110 : vector<32x32xf32>
    %cst_58 = arith.constant dense<0.000000e+00> : vector<32x8xf32>
    %112 = tpu.matmul %111, %97, %cst_58 {dimension_numbers = #tpu.dot_dimension_numbers<[1], [0], [0], [1], [0, 0, 1, 1], [], []>} : vector<32x32xf32>, vector<32x8xf32>, vector<32x8xf32> -> vector<32x8xf32>
    %113 = arith.truncf %112 : vector<32x8xf32> to vector<32x8xbf16>
    %c0_59 = arith.constant 0 : index
    %c2 = arith.constant 2 : index
    %c0_60 = arith.constant 0 : index
    %c0_61 = arith.constant 0 : index
    %114 = vector.load %arg10[%c0_59, %c2, %c0_60, %c0_61] : memref<2x4x8x32xbf16, #tpu.memory_space<vmem>>, vector<1x1x8x32xbf16>
    %115 = vector.shape_cast %114 : vector<1x1x8x32xbf16> to vector<8x32xbf16>
    %cst_62 = arith.constant dense<0.000000e+00> : vector<32x32xf32>
    %116 = tpu.matmul %113, %115, %cst_62 {dimension_numbers = #tpu.dot_dimension_numbers<[1], [0], [0], [1], [0, 0, 1, 1], [], []>} : vector<32x8xbf16>, vector<8x32xbf16>, vector<32x32xf32> -> vector<32x32xf32>
    %117 = arith.addf %94, %116 : vector<32x32xf32>
    %118 = vector.extract_strided_slice %33 {offsets = [0, 24], sizes = [32, 8], strides = [1, 1]} : vector<32x32xf32> to vector<32x8xf32>
    %119 = vector.extract_strided_slice %40 {offsets = [0, 24], sizes = [32, 8], strides = [1, 1]} : vector<32x32xf32> to vector<32x8xf32>
    %120 = vector.extract_strided_slice %47 {offsets = [0, 24], sizes = [32, 8], strides = [1, 1]} : vector<32x32xf32> to vector<32x8xf32>
    "tpu.trace_start"() <{level = 10 : i32, message = "qd,kd->qk"}> : () -> ()
    %cst_63 = arith.constant dense<0.000000e+00> : vector<32x32xf32>
    %121 = tpu.matmul %118, %119, %cst_63 {dimension_numbers = #tpu.dot_dimension_numbers<[1], [1], [0], [0], [0, 0, 1, 0], [], []>} : vector<32x8xf32>, vector<32x8xf32>, vector<32x32xf32> -> vector<32x32xf32>
    "tpu.trace_stop"() : () -> ()
    %cst_64 = arith.constant 0.353553385 : f32
    %122 = vector.broadcast %cst_64 : f32 to vector<32x32xf32>
    %123 = arith.mulf %121, %122 : vector<32x32xf32>
    %124 = arith.addf %123, %1 : vector<32x32xf32>
    %cst_65 = arith.constant dense<0xFF800000> : vector<32xf32>
    %125 = vector.multi_reduction <maximumf>, %124, %cst_65 [1] : vector<32x32xf32> to vector<32xf32>
    %126 = vector.shape_cast %125 : vector<32xf32> to vector<32x1xf32>
    %127 = vector.broadcast %126 : vector<32x1xf32> to vector<32x32xf32>
    %128 = arith.subf %124, %127 : vector<32x32xf32>
    %129 = math.exp %128 : vector<32x32xf32>
    %cst_66 = arith.constant dense<0.000000e+00> : vector<32xf32>
    %130 = vector.multi_reduction <add>, %129, %cst_66 [1] : vector<32x32xf32> to vector<32xf32>
    %131 = vector.shape_cast %130 : vector<32xf32> to vector<32x1xf32>
    %132 = tpu.reciprocal %131 {approx = true} : vector<32x1xf32> -> vector<32x1xf32>
    %133 = vector.broadcast %132 : vector<32x1xf32> to vector<32x32xf32>
    %134 = arith.mulf %129, %133 : vector<32x32xf32>
    %cst_67 = arith.constant dense<0.000000e+00> : vector<32x8xf32>
    %135 = tpu.matmul %134, %120, %cst_67 {dimension_numbers = #tpu.dot_dimension_numbers<[1], [0], [0], [1], [0, 0, 1, 1], [], []>} : vector<32x32xf32>, vector<32x8xf32>, vector<32x8xf32> -> vector<32x8xf32>
    %136 = arith.truncf %135 : vector<32x8xf32> to vector<32x8xbf16>
    %c0_68 = arith.constant 0 : index
    %c3 = arith.constant 3 : index
    %c0_69 = arith.constant 0 : index
    %c0_70 = arith.constant 0 : index
    %137 = vector.load %arg10[%c0_68, %c3, %c0_69, %c0_70] : memref<2x4x8x32xbf16, #tpu.memory_space<vmem>>, vector<1x1x8x32xbf16>
    %138 = vector.shape_cast %137 : vector<1x1x8x32xbf16> to vector<8x32xbf16>
    %cst_71 = arith.constant dense<0.000000e+00> : vector<32x32xf32>
    %139 = tpu.matmul %136, %138, %cst_71 {dimension_numbers = #tpu.dot_dimension_numbers<[1], [0], [0], [1], [0, 0, 1, 1], [], []>} : vector<32x8xbf16>, vector<8x32xbf16>, vector<32x32xf32> -> vector<32x32xf32>
    %140 = arith.addf %117, %139 : vector<32x32xf32>
    %141 = arith.addf %0, %140 : vector<32x32xf32>
    %c0_72 = arith.constant 0 : index
    %c0_73 = arith.constant 0 : index
    %c0_74 = arith.constant 0 : index
    %142 = vector.load %arg11[%c0_72, %c0_73, %c0_74] : memref<2x1x32xf32, #tpu.memory_space<vmem>>, vector<1x1x32xf32>
    %143 = vector.shape_cast %142 : vector<1x1x32xf32> to vector<1x32xf32>
    %144 = vector.broadcast %143 : vector<1x32xf32> to vector<32x32xf32>
    %145 = arith.addf %141, %144 : vector<32x32xf32>
    %c0_75 = arith.constant 0 : index
    %c0_76 = arith.constant 0 : index
    %c0_77 = arith.constant 0 : index
    %146 = vector.load %arg12[%c0_75, %c0_76, %c0_77] : memref<2x1x32xf32, #tpu.memory_space<vmem>>, vector<1x1x32xf32>
    %147 = vector.shape_cast %146 : vector<1x1x32xf32> to vector<1x32xf32>
    %c0_78 = arith.constant 0 : index
    %c0_79 = arith.constant 0 : index
    %c0_80 = arith.constant 0 : index
    %148 = vector.load %arg13[%c0_78, %c0_79, %c0_80] : memref<2x1x32xf32, #tpu.memory_space<vmem>>, vector<1x1x32xf32>
    %149 = vector.shape_cast %148 : vector<1x1x32xf32> to vector<1x32xf32>
    %cst_81 = arith.constant dense<0.000000e+00> : vector<32xf32>
    %150 = vector.multi_reduction <add>, %145, %cst_81 [1] : vector<32x32xf32> to vector<32xf32>
    %151 = vector.shape_cast %150 : vector<32xf32> to vector<32x1xf32>
    %cst_82 = arith.constant 3.200000e+01 : f32
    %152 = vector.broadcast %cst_82 : f32 to vector<32x1xf32>
    %153 = arith.divf %151, %152 : vector<32x1xf32>
    %154 = vector.broadcast %153 : vector<32x1xf32> to vector<32x32xf32>
    %155 = arith.subf %145, %154 : vector<32x32xf32>
    %156 = arith.mulf %155, %155 : vector<32x32xf32>
    %cst_83 = arith.constant dense<0.000000e+00> : vector<32xf32>
    %157 = vector.multi_reduction <add>, %156, %cst_83 [1] : vector<32x32xf32> to vector<32xf32>
    %158 = vector.shape_cast %157 : vector<32xf32> to vector<32x1xf32>
    %cst_84 = arith.constant 3.200000e+01 : f32
    %159 = vector.broadcast %cst_84 : f32 to vector<32x1xf32>
    %160 = arith.divf %158, %159 : vector<32x1xf32>
    %cst_85 = arith.constant 9.99999997E-7 : f32
    %161 = vector.broadcast %cst_85 : f32 to vector<32x1xf32>
    %162 = arith.addf %160, %161 : vector<32x1xf32>
    %163 = math.rsqrt %162 : vector<32x1xf32>
    %164 = vector.broadcast %163 : vector<32x1xf32> to vector<32x32xf32>
    %165 = arith.mulf %155, %164 : vector<32x32xf32>
    %166 = vector.broadcast %147 : vector<1x32xf32> to vector<32x32xf32>
    %167 = arith.mulf %165, %166 : vector<32x32xf32>
    %168 = vector.broadcast %149 : vector<1x32xf32> to vector<32x32xf32>
    %169 = arith.addf %167, %168 : vector<32x32xf32>
    %170 = arith.truncf %169 : vector<32x32xf32> to vector<32x32xbf16>
    %c0_86 = arith.constant 0 : index
    %c0_87 = arith.constant 0 : index
    %c0_88 = arith.constant 0 : index
    %171 = vector.load %arg14[%c0_86, %c0_87, %c0_88] : memref<2x32x64xbf16, #tpu.memory_space<vmem>>, vector<1x32x64xbf16>
    %172 = vector.shape_cast %171 : vector<1x32x64xbf16> to vector<32x64xbf16>
    %cst_89 = arith.constant dense<0.000000e+00> : vector<32x64xf32>
    %173 = tpu.matmul %170, %172, %cst_89 {dimension_numbers = #tpu.dot_dimension_numbers<[1], [0], [0], [1], [0, 0, 1, 1], [], []>} : vector<32x32xbf16>, vector<32x64xbf16>, vector<32x64xf32> -> vector<32x64xf32>
    %c0_90 = arith.constant 0 : index
    %c0_91 = arith.constant 0 : index
    %c0_92 = arith.constant 0 : index
    %174 = vector.load %arg15[%c0_90, %c0_91, %c0_92] : memref<2x1x64xf32, #tpu.memory_space<vmem>>, vector<1x1x64xf32>
    %175 = vector.shape_cast %174 : vector<1x1x64xf32> to vector<1x64xf32>
    %176 = vector.broadcast %175 : vector<1x64xf32> to vector<32x64xf32>
    %177 = arith.addf %173, %176 : vector<32x64xf32>
    %cst_93 = arith.constant 5.000000e-01 : f32
    %178 = vector.broadcast %cst_93 : f32 to vector<32x64xf32>
    %179 = arith.mulf %178, %177 : vector<32x64xf32>
    %180 = arith.mulf %177, %177 : vector<32x64xf32>
    %181 = arith.mulf %180, %177 : vector<32x64xf32>
    %cst_94 = arith.constant 4.471500e-02 : f32
    %182 = vector.broadcast %cst_94 : f32 to vector<32x64xf32>
    %183 = arith.mulf %182, %181 : vector<32x64xf32>
    %184 = arith.addf %177, %183 : vector<32x64xf32>
    %cst_95 = arith.constant 0.797884583 : f32
    %185 = vector.broadcast %cst_95 : f32 to vector<32x64xf32>
    %186 = arith.mulf %185, %184 : vector<32x64xf32>
    %187 = math.tanh %186 : vector<32x64xf32>
    %cst_96 = arith.constant 1.000000e+00 : f32
    %188 = vector.broadcast %cst_96 : f32 to vector<32x64xf32>
    %189 = arith.addf %188, %187 : vector<32x64xf32>
    %190 = arith.mulf %179, %189 : vector<32x64xf32>
    %191 = arith.truncf %190 : vector<32x64xf32> to vector<32x64xbf16>
    %c0_97 = arith.constant 0 : index
    %c0_98 = arith.constant 0 : index
    %c0_99 = arith.constant 0 : index
    %192 = vector.load %arg16[%c0_97, %c0_98, %c0_99] : memref<2x64x32xbf16, #tpu.memory_space<vmem>>, vector<1x64x32xbf16>
    %193 = vector.shape_cast %192 : vector<1x64x32xbf16> to vector<64x32xbf16>
    %cst_100 = arith.constant dense<0.000000e+00> : vector<32x32xf32>
    %194 = tpu.matmul %191, %193, %cst_100 {dimension_numbers = #tpu.dot_dimension_numbers<[1], [0], [0], [1], [0, 0, 1, 1], [], []>} : vector<32x64xbf16>, vector<64x32xbf16>, vector<32x32xf32> -> vector<32x32xf32>
    %c0_101 = arith.constant 0 : index
    %c0_102 = arith.constant 0 : index
    %c0_103 = arith.constant 0 : index
    %195 = vector.load %arg17[%c0_101, %c0_102, %c0_103] : memref<2x1x32xf32, #tpu.memory_space<vmem>>, vector<1x1x32xf32>
    %196 = vector.shape_cast %195 : vector<1x1x32xf32> to vector<1x32xf32>
    %197 = vector.broadcast %196 : vector<1x32xf32> to vector<32x32xf32>
    %198 = arith.addf %194, %197 : vector<32x32xf32>
    %199 = arith.addf %145, %198 : vector<32x32xf32>
    %c1_104 = arith.constant 1 : index
    %c0_105 = arith.constant 0 : index
    %c0_106 = arith.constant 0 : index
    %200 = vector.load %arg2[%c1_104, %c0_105, %c0_106] : memref<2x1x32xf32, #tpu.memory_space<vmem>>, vector<1x1x32xf32>
    %201 = vector.shape_cast %200 : vector<1x1x32xf32> to vector<1x32xf32>
    %c1_107 = arith.constant 1 : index
    %c0_108 = arith.constant 0 : index
    %c0_109 = arith.constant 0 : index
    %202 = vector.load %arg3[%c1_107, %c0_108, %c0_109] : memref<2x1x32xf32, #tpu.memory_space<vmem>>, vector<1x1x32xf32>
    %203 = vector.shape_cast %202 : vector<1x1x32xf32> to vector<1x32xf32>
    %cst_110 = arith.constant dense<0.000000e+00> : vector<32xf32>
    %204 = vector.multi_reduction <add>, %199, %cst_110 [1] : vector<32x32xf32> to vector<32xf32>
    %205 = vector.shape_cast %204 : vector<32xf32> to vector<32x1xf32>
    %cst_111 = arith.constant 3.200000e+01 : f32
    %206 = vector.broadcast %cst_111 : f32 to vector<32x1xf32>
    %207 = arith.divf %205, %206 : vector<32x1xf32>
    %208 = vector.broadcast %207 : vector<32x1xf32> to vector<32x32xf32>
    %209 = arith.subf %199, %208 : vector<32x32xf32>
    %210 = arith.mulf %209, %209 : vector<32x32xf32>
    %cst_112 = arith.constant dense<0.000000e+00> : vector<32xf32>
    %211 = vector.multi_reduction <add>, %210, %cst_112 [1] : vector<32x32xf32> to vector<32xf32>
    %212 = vector.shape_cast %211 : vector<32xf32> to vector<32x1xf32>
    %cst_113 = arith.constant 3.200000e+01 : f32
    %213 = vector.broadcast %cst_113 : f32 to vector<32x1xf32>
    %214 = arith.divf %212, %213 : vector<32x1xf32>
    %cst_114 = arith.constant 9.99999997E-7 : f32
    %215 = vector.broadcast %cst_114 : f32 to vector<32x1xf32>
    %216 = arith.addf %214, %215 : vector<32x1xf32>
    %217 = math.rsqrt %216 : vector<32x1xf32>
    %218 = vector.broadcast %217 : vector<32x1xf32> to vector<32x32xf32>
    %219 = arith.mulf %209, %218 : vector<32x32xf32>
    %220 = vector.broadcast %201 : vector<1x32xf32> to vector<32x32xf32>
    %221 = arith.mulf %219, %220 : vector<32x32xf32>
    %222 = vector.broadcast %203 : vector<1x32xf32> to vector<32x32xf32>
    %223 = arith.addf %221, %222 : vector<32x32xf32>
    %224 = arith.truncf %223 : vector<32x32xf32> to vector<32x32xbf16>
    %c1_115 = arith.constant 1 : index
    %c0_116 = arith.constant 0 : index
    %c0_117 = arith.constant 0 : index
    %225 = vector.load %arg4[%c1_115, %c0_116, %c0_117] : memref<2x32x32xbf16, #tpu.memory_space<vmem>>, vector<1x32x32xbf16>
    %226 = vector.shape_cast %225 : vector<1x32x32xbf16> to vector<32x32xbf16>
    %cst_118 = arith.constant dense<0.000000e+00> : vector<32x32xf32>
    %227 = tpu.matmul %224, %226, %cst_118 {dimension_numbers = #tpu.dot_dimension_numbers<[1], [0], [0], [1], [0, 0, 1, 1], [], []>} : vector<32x32xbf16>, vector<32x32xbf16>, vector<32x32xf32> -> vector<32x32xf32>
    %c1_119 = arith.constant 1 : index
    %c0_120 = arith.constant 0 : index
    %c0_121 = arith.constant 0 : index
    %228 = vector.load %arg5[%c1_119, %c0_120, %c0_121] : memref<2x1x32xf32, #tpu.memory_space<vmem>>, vector<1x1x32xf32>
    %229 = vector.shape_cast %228 : vector<1x1x32xf32> to vector<1x32xf32>
    %230 = vector.broadcast %229 : vector<1x32xf32> to vector<32x32xf32>
    %231 = arith.addf %227, %230 : vector<32x32xf32>
    %c1_122 = arith.constant 1 : index
    %c0_123 = arith.constant 0 : index
    %c0_124 = arith.constant 0 : index
    %232 = vector.load %arg6[%c1_122, %c0_123, %c0_124] : memref<2x32x32xbf16, #tpu.memory_space<vmem>>, vector<1x32x32xbf16>
    %233 = vector.shape_cast %232 : vector<1x32x32xbf16> to vector<32x32xbf16>
    %cst_125 = arith.constant dense<0.000000e+00> : vector<32x32xf32>
    %234 = tpu.matmul %224, %233, %cst_125 {dimension_numbers = #tpu.dot_dimension_numbers<[1], [0], [0], [1], [0, 0, 1, 1], [], []>} : vector<32x32xbf16>, vector<32x32xbf16>, vector<32x32xf32> -> vector<32x32xf32>
    %c1_126 = arith.constant 1 : index
    %c0_127 = arith.constant 0 : index
    %c0_128 = arith.constant 0 : index
    %235 = vector.load %arg7[%c1_126, %c0_127, %c0_128] : memref<2x1x32xf32, #tpu.memory_space<vmem>>, vector<1x1x32xf32>
    %236 = vector.shape_cast %235 : vector<1x1x32xf32> to vector<1x32xf32>
    %237 = vector.broadcast %236 : vector<1x32xf32> to vector<32x32xf32>
    %238 = arith.addf %234, %237 : vector<32x32xf32>
    %c1_129 = arith.constant 1 : index
    %c0_130 = arith.constant 0 : index
    %c0_131 = arith.constant 0 : index
    %239 = vector.load %arg8[%c1_129, %c0_130, %c0_131] : memref<2x32x32xbf16, #tpu.memory_space<vmem>>, vector<1x32x32xbf16>
    %240 = vector.shape_cast %239 : vector<1x32x32xbf16> to vector<32x32xbf16>
    %cst_132 = arith.constant dense<0.000000e+00> : vector<32x32xf32>
    %241 = tpu.matmul %224, %240, %cst_132 {dimension_numbers = #tpu.dot_dimension_numbers<[1], [0], [0], [1], [0, 0, 1, 1], [], []>} : vector<32x32xbf16>, vector<32x32xbf16>, vector<32x32xf32> -> vector<32x32xf32>
    %c1_133 = arith.constant 1 : index
    %c0_134 = arith.constant 0 : index
    %c0_135 = arith.constant 0 : index
    %242 = vector.load %arg9[%c1_133, %c0_134, %c0_135] : memref<2x1x32xf32, #tpu.memory_space<vmem>>, vector<1x1x32xf32>
    %243 = vector.shape_cast %242 : vector<1x1x32xf32> to vector<1x32xf32>
    %244 = vector.broadcast %243 : vector<1x32xf32> to vector<32x32xf32>
    %245 = arith.addf %241, %244 : vector<32x32xf32>
    %cst_136 = arith.constant 0.000000e+00 : f32
    %246 = vector.broadcast %cst_136 : f32 to vector<32x32xf32>
    %247 = vector.extract_strided_slice %231 {offsets = [0, 0], sizes = [32, 8], strides = [1, 1]} : vector<32x32xf32> to vector<32x8xf32>
    %248 = vector.extract_strided_slice %238 {offsets = [0, 0], sizes = [32, 8], strides = [1, 1]} : vector<32x32xf32> to vector<32x8xf32>
    %249 = vector.extract_strided_slice %245 {offsets = [0, 0], sizes = [32, 8], strides = [1, 1]} : vector<32x32xf32> to vector<32x8xf32>
    "tpu.trace_start"() <{level = 10 : i32, message = "qd,kd->qk"}> : () -> ()
    %cst_137 = arith.constant dense<0.000000e+00> : vector<32x32xf32>
    %250 = tpu.matmul %247, %248, %cst_137 {dimension_numbers = #tpu.dot_dimension_numbers<[1], [1], [0], [0], [0, 0, 1, 0], [], []>} : vector<32x8xf32>, vector<32x8xf32>, vector<32x32xf32> -> vector<32x32xf32>
    "tpu.trace_stop"() : () -> ()
    %cst_138 = arith.constant 0.353553385 : f32
    %251 = vector.broadcast %cst_138 : f32 to vector<32x32xf32>
    %252 = arith.mulf %250, %251 : vector<32x32xf32>
    %253 = arith.addf %252, %1 : vector<32x32xf32>
    %cst_139 = arith.constant dense<0xFF800000> : vector<32xf32>
    %254 = vector.multi_reduction <maximumf>, %253, %cst_139 [1] : vector<32x32xf32> to vector<32xf32>
    %255 = vector.shape_cast %254 : vector<32xf32> to vector<32x1xf32>
    %256 = vector.broadcast %255 : vector<32x1xf32> to vector<32x32xf32>
    %257 = arith.subf %253, %256 : vector<32x32xf32>
    %258 = math.exp %257 : vector<32x32xf32>
    %cst_140 = arith.constant dense<0.000000e+00> : vector<32xf32>
    %259 = vector.multi_reduction <add>, %258, %cst_140 [1] : vector<32x32xf32> to vector<32xf32>
    %260 = vector.shape_cast %259 : vector<32xf32> to vector<32x1xf32>
    %261 = tpu.reciprocal %260 {approx = true} : vector<32x1xf32> -> vector<32x1xf32>
    %262 = vector.broadcast %261 : vector<32x1xf32> to vector<32x32xf32>
    %263 = arith.mulf %258, %262 : vector<32x32xf32>
    %cst_141 = arith.constant dense<0.000000e+00> : vector<32x8xf32>
    %264 = tpu.matmul %263, %249, %cst_141 {dimension_numbers = #tpu.dot_dimension_numbers<[1], [0], [0], [1], [0, 0, 1, 1], [], []>} : vector<32x32xf32>, vector<32x8xf32>, vector<32x8xf32> -> vector<32x8xf32>
    %265 = arith.truncf %264 : vector<32x8xf32> to vector<32x8xbf16>
    %c1_142 = arith.constant 1 : index
    %c0_143 = arith.constant 0 : index
    %c0_144 = arith.constant 0 : index
    %c0_145 = arith.constant 0 : index
    %266 = vector.load %arg10[%c1_142, %c0_143, %c0_144, %c0_145] : memref<2x4x8x32xbf16, #tpu.memory_space<vmem>>, vector<1x1x8x32xbf16>
    %267 = vector.shape_cast %266 : vector<1x1x8x32xbf16> to vector<8x32xbf16>
    %cst_146 = arith.constant dense<0.000000e+00> : vector<32x32xf32>
    %268 = tpu.matmul %265, %267, %cst_146 {dimension_numbers = #tpu.dot_dimension_numbers<[1], [0], [0], [1], [0, 0, 1, 1], [], []>} : vector<32x8xbf16>, vector<8x32xbf16>, vector<32x32xf32> -> vector<32x32xf32>
    %269 = arith.addf %246, %268 : vector<32x32xf32>
    %270 = vector.extract_strided_slice %231 {offsets = [0, 8], sizes = [32, 8], strides = [1, 1]} : vector<32x32xf32> to vector<32x8xf32>
    %271 = vector.extract_strided_slice %238 {offsets = [0, 8], sizes = [32, 8], strides = [1, 1]} : vector<32x32xf32> to vector<32x8xf32>
    %272 = vector.extract_strided_slice %245 {offsets = [0, 8], sizes = [32, 8], strides = [1, 1]} : vector<32x32xf32> to vector<32x8xf32>
    "tpu.trace_start"() <{level = 10 : i32, message = "qd,kd->qk"}> : () -> ()
    %cst_147 = arith.constant dense<0.000000e+00> : vector<32x32xf32>
    %273 = tpu.matmul %270, %271, %cst_147 {dimension_numbers = #tpu.dot_dimension_numbers<[1], [1], [0], [0], [0, 0, 1, 0], [], []>} : vector<32x8xf32>, vector<32x8xf32>, vector<32x32xf32> -> vector<32x32xf32>
    "tpu.trace_stop"() : () -> ()
    %cst_148 = arith.constant 0.353553385 : f32
    %274 = vector.broadcast %cst_148 : f32 to vector<32x32xf32>
    %275 = arith.mulf %273, %274 : vector<32x32xf32>
    %276 = arith.addf %275, %1 : vector<32x32xf32>
    %cst_149 = arith.constant dense<0xFF800000> : vector<32xf32>
    %277 = vector.multi_reduction <maximumf>, %276, %cst_149 [1] : vector<32x32xf32> to vector<32xf32>
    %278 = vector.shape_cast %277 : vector<32xf32> to vector<32x1xf32>
    %279 = vector.broadcast %278 : vector<32x1xf32> to vector<32x32xf32>
    %280 = arith.subf %276, %279 : vector<32x32xf32>
    %281 = math.exp %280 : vector<32x32xf32>
    %cst_150 = arith.constant dense<0.000000e+00> : vector<32xf32>
    %282 = vector.multi_reduction <add>, %281, %cst_150 [1] : vector<32x32xf32> to vector<32xf32>
    %283 = vector.shape_cast %282 : vector<32xf32> to vector<32x1xf32>
    %284 = tpu.reciprocal %283 {approx = true} : vector<32x1xf32> -> vector<32x1xf32>
    %285 = vector.broadcast %284 : vector<32x1xf32> to vector<32x32xf32>
    %286 = arith.mulf %281, %285 : vector<32x32xf32>
    %cst_151 = arith.constant dense<0.000000e+00> : vector<32x8xf32>
    %287 = tpu.matmul %286, %272, %cst_151 {dimension_numbers = #tpu.dot_dimension_numbers<[1], [0], [0], [1], [0, 0, 1, 1], [], []>} : vector<32x32xf32>, vector<32x8xf32>, vector<32x8xf32> -> vector<32x8xf32>
    %288 = arith.truncf %287 : vector<32x8xf32> to vector<32x8xbf16>
    %c1_152 = arith.constant 1 : index
    %c1_153 = arith.constant 1 : index
    %c0_154 = arith.constant 0 : index
    %c0_155 = arith.constant 0 : index
    %289 = vector.load %arg10[%c1_152, %c1_153, %c0_154, %c0_155] : memref<2x4x8x32xbf16, #tpu.memory_space<vmem>>, vector<1x1x8x32xbf16>
    %290 = vector.shape_cast %289 : vector<1x1x8x32xbf16> to vector<8x32xbf16>
    %cst_156 = arith.constant dense<0.000000e+00> : vector<32x32xf32>
    %291 = tpu.matmul %288, %290, %cst_156 {dimension_numbers = #tpu.dot_dimension_numbers<[1], [0], [0], [1], [0, 0, 1, 1], [], []>} : vector<32x8xbf16>, vector<8x32xbf16>, vector<32x32xf32> -> vector<32x32xf32>
    %292 = arith.addf %269, %291 : vector<32x32xf32>
    %293 = vector.extract_strided_slice %231 {offsets = [0, 16], sizes = [32, 8], strides = [1, 1]} : vector<32x32xf32> to vector<32x8xf32>
    %294 = vector.extract_strided_slice %238 {offsets = [0, 16], sizes = [32, 8], strides = [1, 1]} : vector<32x32xf32> to vector<32x8xf32>
    %295 = vector.extract_strided_slice %245 {offsets = [0, 16], sizes = [32, 8], strides = [1, 1]} : vector<32x32xf32> to vector<32x8xf32>
    "tpu.trace_start"() <{level = 10 : i32, message = "qd,kd->qk"}> : () -> ()
    %cst_157 = arith.constant dense<0.000000e+00> : vector<32x32xf32>
    %296 = tpu.matmul %293, %294, %cst_157 {dimension_numbers = #tpu.dot_dimension_numbers<[1], [1], [0], [0], [0, 0, 1, 0], [], []>} : vector<32x8xf32>, vector<32x8xf32>, vector<32x32xf32> -> vector<32x32xf32>
    "tpu.trace_stop"() : () -> ()
    %cst_158 = arith.constant 0.353553385 : f32
    %297 = vector.broadcast %cst_158 : f32 to vector<32x32xf32>
    %298 = arith.mulf %296, %297 : vector<32x32xf32>
    %299 = arith.addf %298, %1 : vector<32x32xf32>
    %cst_159 = arith.constant dense<0xFF800000> : vector<32xf32>
    %300 = vector.multi_reduction <maximumf>, %299, %cst_159 [1] : vector<32x32xf32> to vector<32xf32>
    %301 = vector.shape_cast %300 : vector<32xf32> to vector<32x1xf32>
    %302 = vector.broadcast %301 : vector<32x1xf32> to vector<32x32xf32>
    %303 = arith.subf %299, %302 : vector<32x32xf32>
    %304 = math.exp %303 : vector<32x32xf32>
    %cst_160 = arith.constant dense<0.000000e+00> : vector<32xf32>
    %305 = vector.multi_reduction <add>, %304, %cst_160 [1] : vector<32x32xf32> to vector<32xf32>
    %306 = vector.shape_cast %305 : vector<32xf32> to vector<32x1xf32>
    %307 = tpu.reciprocal %306 {approx = true} : vector<32x1xf32> -> vector<32x1xf32>
    %308 = vector.broadcast %307 : vector<32x1xf32> to vector<32x32xf32>
    %309 = arith.mulf %304, %308 : vector<32x32xf32>
    %cst_161 = arith.constant dense<0.000000e+00> : vector<32x8xf32>
    %310 = tpu.matmul %309, %295, %cst_161 {dimension_numbers = #tpu.dot_dimension_numbers<[1], [0], [0], [1], [0, 0, 1, 1], [], []>} : vector<32x32xf32>, vector<32x8xf32>, vector<32x8xf32> -> vector<32x8xf32>
    %311 = arith.truncf %310 : vector<32x8xf32> to vector<32x8xbf16>
    %c1_162 = arith.constant 1 : index
    %c2_163 = arith.constant 2 : index
    %c0_164 = arith.constant 0 : index
    %c0_165 = arith.constant 0 : index
    %312 = vector.load %arg10[%c1_162, %c2_163, %c0_164, %c0_165] : memref<2x4x8x32xbf16, #tpu.memory_space<vmem>>, vector<1x1x8x32xbf16>
    %313 = vector.shape_cast %312 : vector<1x1x8x32xbf16> to vector<8x32xbf16>
    %cst_166 = arith.constant dense<0.000000e+00> : vector<32x32xf32>
    %314 = tpu.matmul %311, %313, %cst_166 {dimension_numbers = #tpu.dot_dimension_numbers<[1], [0], [0], [1], [0, 0, 1, 1], [], []>} : vector<32x8xbf16>, vector<8x32xbf16>, vector<32x32xf32> -> vector<32x32xf32>
    %315 = arith.addf %292, %314 : vector<32x32xf32>
    %316 = vector.extract_strided_slice %231 {offsets = [0, 24], sizes = [32, 8], strides = [1, 1]} : vector<32x32xf32> to vector<32x8xf32>
    %317 = vector.extract_strided_slice %238 {offsets = [0, 24], sizes = [32, 8], strides = [1, 1]} : vector<32x32xf32> to vector<32x8xf32>
    %318 = vector.extract_strided_slice %245 {offsets = [0, 24], sizes = [32, 8], strides = [1, 1]} : vector<32x32xf32> to vector<32x8xf32>
    "tpu.trace_start"() <{level = 10 : i32, message = "qd,kd->qk"}> : () -> ()
    %cst_167 = arith.constant dense<0.000000e+00> : vector<32x32xf32>
    %319 = tpu.matmul %316, %317, %cst_167 {dimension_numbers = #tpu.dot_dimension_numbers<[1], [1], [0], [0], [0, 0, 1, 0], [], []>} : vector<32x8xf32>, vector<32x8xf32>, vector<32x32xf32> -> vector<32x32xf32>
    "tpu.trace_stop"() : () -> ()
    %cst_168 = arith.constant 0.353553385 : f32
    %320 = vector.broadcast %cst_168 : f32 to vector<32x32xf32>
    %321 = arith.mulf %319, %320 : vector<32x32xf32>
    %322 = arith.addf %321, %1 : vector<32x32xf32>
    %cst_169 = arith.constant dense<0xFF800000> : vector<32xf32>
    %323 = vector.multi_reduction <maximumf>, %322, %cst_169 [1] : vector<32x32xf32> to vector<32xf32>
    %324 = vector.shape_cast %323 : vector<32xf32> to vector<32x1xf32>
    %325 = vector.broadcast %324 : vector<32x1xf32> to vector<32x32xf32>
    %326 = arith.subf %322, %325 : vector<32x32xf32>
    %327 = math.exp %326 : vector<32x32xf32>
    %cst_170 = arith.constant dense<0.000000e+00> : vector<32xf32>
    %328 = vector.multi_reduction <add>, %327, %cst_170 [1] : vector<32x32xf32> to vector<32xf32>
    %329 = vector.shape_cast %328 : vector<32xf32> to vector<32x1xf32>
    %330 = tpu.reciprocal %329 {approx = true} : vector<32x1xf32> -> vector<32x1xf32>
    %331 = vector.broadcast %330 : vector<32x1xf32> to vector<32x32xf32>
    %332 = arith.mulf %327, %331 : vector<32x32xf32>
    %cst_171 = arith.constant dense<0.000000e+00> : vector<32x8xf32>
    %333 = tpu.matmul %332, %318, %cst_171 {dimension_numbers = #tpu.dot_dimension_numbers<[1], [0], [0], [1], [0, 0, 1, 1], [], []>} : vector<32x32xf32>, vector<32x8xf32>, vector<32x8xf32> -> vector<32x8xf32>
    %334 = arith.truncf %333 : vector<32x8xf32> to vector<32x8xbf16>
    %c1_172 = arith.constant 1 : index
    %c3_173 = arith.constant 3 : index
    %c0_174 = arith.constant 0 : index
    %c0_175 = arith.constant 0 : index
    %335 = vector.load %arg10[%c1_172, %c3_173, %c0_174, %c0_175] : memref<2x4x8x32xbf16, #tpu.memory_space<vmem>>, vector<1x1x8x32xbf16>
    %336 = vector.shape_cast %335 : vector<1x1x8x32xbf16> to vector<8x32xbf16>
    %cst_176 = arith.constant dense<0.000000e+00> : vector<32x32xf32>
    %337 = tpu.matmul %334, %336, %cst_176 {dimension_numbers = #tpu.dot_dimension_numbers<[1], [0], [0], [1], [0, 0, 1, 1], [], []>} : vector<32x8xbf16>, vector<8x32xbf16>, vector<32x32xf32> -> vector<32x32xf32>
    %338 = arith.addf %315, %337 : vector<32x32xf32>
    %339 = arith.addf %199, %338 : vector<32x32xf32>
    %c1_177 = arith.constant 1 : index
    %c0_178 = arith.constant 0 : index
    %c0_179 = arith.constant 0 : index
    %340 = vector.load %arg11[%c1_177, %c0_178, %c0_179] : memref<2x1x32xf32, #tpu.memory_space<vmem>>, vector<1x1x32xf32>
    %341 = vector.shape_cast %340 : vector<1x1x32xf32> to vector<1x32xf32>
    %342 = vector.broadcast %341 : vector<1x32xf32> to vector<32x32xf32>
    %343 = arith.addf %339, %342 : vector<32x32xf32>
    %c1_180 = arith.constant 1 : index
    %c0_181 = arith.constant 0 : index
    %c0_182 = arith.constant 0 : index
    %344 = vector.load %arg12[%c1_180, %c0_181, %c0_182] : memref<2x1x32xf32, #tpu.memory_space<vmem>>, vector<1x1x32xf32>
    %345 = vector.shape_cast %344 : vector<1x1x32xf32> to vector<1x32xf32>
    %c1_183 = arith.constant 1 : index
    %c0_184 = arith.constant 0 : index
    %c0_185 = arith.constant 0 : index
    %346 = vector.load %arg13[%c1_183, %c0_184, %c0_185] : memref<2x1x32xf32, #tpu.memory_space<vmem>>, vector<1x1x32xf32>
    %347 = vector.shape_cast %346 : vector<1x1x32xf32> to vector<1x32xf32>
    %cst_186 = arith.constant dense<0.000000e+00> : vector<32xf32>
    %348 = vector.multi_reduction <add>, %343, %cst_186 [1] : vector<32x32xf32> to vector<32xf32>
    %349 = vector.shape_cast %348 : vector<32xf32> to vector<32x1xf32>
    %cst_187 = arith.constant 3.200000e+01 : f32
    %350 = vector.broadcast %cst_187 : f32 to vector<32x1xf32>
    %351 = arith.divf %349, %350 : vector<32x1xf32>
    %352 = vector.broadcast %351 : vector<32x1xf32> to vector<32x32xf32>
    %353 = arith.subf %343, %352 : vector<32x32xf32>
    %354 = arith.mulf %353, %353 : vector<32x32xf32>
    %cst_188 = arith.constant dense<0.000000e+00> : vector<32xf32>
    %355 = vector.multi_reduction <add>, %354, %cst_188 [1] : vector<32x32xf32> to vector<32xf32>
    %356 = vector.shape_cast %355 : vector<32xf32> to vector<32x1xf32>
    %cst_189 = arith.constant 3.200000e+01 : f32
    %357 = vector.broadcast %cst_189 : f32 to vector<32x1xf32>
    %358 = arith.divf %356, %357 : vector<32x1xf32>
    %cst_190 = arith.constant 9.99999997E-7 : f32
    %359 = vector.broadcast %cst_190 : f32 to vector<32x1xf32>
    %360 = arith.addf %358, %359 : vector<32x1xf32>
    %361 = math.rsqrt %360 : vector<32x1xf32>
    %362 = vector.broadcast %361 : vector<32x1xf32> to vector<32x32xf32>
    %363 = arith.mulf %353, %362 : vector<32x32xf32>
    %364 = vector.broadcast %345 : vector<1x32xf32> to vector<32x32xf32>
    %365 = arith.mulf %363, %364 : vector<32x32xf32>
    %366 = vector.broadcast %347 : vector<1x32xf32> to vector<32x32xf32>
    %367 = arith.addf %365, %366 : vector<32x32xf32>
    %368 = arith.truncf %367 : vector<32x32xf32> to vector<32x32xbf16>
    %c1_191 = arith.constant 1 : index
    %c0_192 = arith.constant 0 : index
    %c0_193 = arith.constant 0 : index
    %369 = vector.load %arg14[%c1_191, %c0_192, %c0_193] : memref<2x32x64xbf16, #tpu.memory_space<vmem>>, vector<1x32x64xbf16>
    %370 = vector.shape_cast %369 : vector<1x32x64xbf16> to vector<32x64xbf16>
    %cst_194 = arith.constant dense<0.000000e+00> : vector<32x64xf32>
    %371 = tpu.matmul %368, %370, %cst_194 {dimension_numbers = #tpu.dot_dimension_numbers<[1], [0], [0], [1], [0, 0, 1, 1], [], []>} : vector<32x32xbf16>, vector<32x64xbf16>, vector<32x64xf32> -> vector<32x64xf32>
    %c1_195 = arith.constant 1 : index
    %c0_196 = arith.constant 0 : index
    %c0_197 = arith.constant 0 : index
    %372 = vector.load %arg15[%c1_195, %c0_196, %c0_197] : memref<2x1x64xf32, #tpu.memory_space<vmem>>, vector<1x1x64xf32>
    %373 = vector.shape_cast %372 : vector<1x1x64xf32> to vector<1x64xf32>
    %374 = vector.broadcast %373 : vector<1x64xf32> to vector<32x64xf32>
    %375 = arith.addf %371, %374 : vector<32x64xf32>
    %cst_198 = arith.constant 5.000000e-01 : f32
    %376 = vector.broadcast %cst_198 : f32 to vector<32x64xf32>
    %377 = arith.mulf %376, %375 : vector<32x64xf32>
    %378 = arith.mulf %375, %375 : vector<32x64xf32>
    %379 = arith.mulf %378, %375 : vector<32x64xf32>
    %cst_199 = arith.constant 4.471500e-02 : f32
    %380 = vector.broadcast %cst_199 : f32 to vector<32x64xf32>
    %381 = arith.mulf %380, %379 : vector<32x64xf32>
    %382 = arith.addf %375, %381 : vector<32x64xf32>
    %cst_200 = arith.constant 0.797884583 : f32
    %383 = vector.broadcast %cst_200 : f32 to vector<32x64xf32>
    %384 = arith.mulf %383, %382 : vector<32x64xf32>
    %385 = math.tanh %384 : vector<32x64xf32>
    %cst_201 = arith.constant 1.000000e+00 : f32
    %386 = vector.broadcast %cst_201 : f32 to vector<32x64xf32>
    %387 = arith.addf %386, %385 : vector<32x64xf32>
    %388 = arith.mulf %377, %387 : vector<32x64xf32>
    %389 = arith.truncf %388 : vector<32x64xf32> to vector<32x64xbf16>
    %c1_202 = arith.constant 1 : index
    %c0_203 = arith.constant 0 : index
    %c0_204 = arith.constant 0 : index
    %390 = vector.load %arg16[%c1_202, %c0_203, %c0_204] : memref<2x64x32xbf16, #tpu.memory_space<vmem>>, vector<1x64x32xbf16>
    %391 = vector.shape_cast %390 : vector<1x64x32xbf16> to vector<64x32xbf16>
    %cst_205 = arith.constant dense<0.000000e+00> : vector<32x32xf32>
    %392 = tpu.matmul %389, %391, %cst_205 {dimension_numbers = #tpu.dot_dimension_numbers<[1], [0], [0], [1], [0, 0, 1, 1], [], []>} : vector<32x64xbf16>, vector<64x32xbf16>, vector<32x32xf32> -> vector<32x32xf32>
    %c1_206 = arith.constant 1 : index
    %c0_207 = arith.constant 0 : index
    %c0_208 = arith.constant 0 : index
    %393 = vector.load %arg17[%c1_206, %c0_207, %c0_208] : memref<2x1x32xf32, #tpu.memory_space<vmem>>, vector<1x1x32xf32>
    %394 = vector.shape_cast %393 : vector<1x1x32xf32> to vector<1x32xf32>
    %395 = vector.broadcast %394 : vector<1x32xf32> to vector<32x32xf32>
    %396 = arith.addf %392, %395 : vector<32x32xf32>
    %397 = arith.addf %343, %396 : vector<32x32xf32>
    %c0_209 = arith.constant 0 : index
    %c0_210 = arith.constant 0 : index
    %398 = vector.load %arg18[%c0_209, %c0_210] : memref<1x32xf32, #tpu.memory_space<vmem>>, vector<1x32xf32>
    %c0_211 = arith.constant 0 : index
    %c0_212 = arith.constant 0 : index
    %399 = vector.load %arg19[%c0_211, %c0_212] : memref<1x32xf32, #tpu.memory_space<vmem>>, vector<1x32xf32>
    %cst_213 = arith.constant dense<0.000000e+00> : vector<32xf32>
    %400 = vector.multi_reduction <add>, %397, %cst_213 [1] : vector<32x32xf32> to vector<32xf32>
    %401 = vector.shape_cast %400 : vector<32xf32> to vector<32x1xf32>
    %cst_214 = arith.constant 3.200000e+01 : f32
    %402 = vector.broadcast %cst_214 : f32 to vector<32x1xf32>
    %403 = arith.divf %401, %402 : vector<32x1xf32>
    %404 = vector.broadcast %403 : vector<32x1xf32> to vector<32x32xf32>
    %405 = arith.subf %397, %404 : vector<32x32xf32>
    %406 = arith.mulf %405, %405 : vector<32x32xf32>
    %cst_215 = arith.constant dense<0.000000e+00> : vector<32xf32>
    %407 = vector.multi_reduction <add>, %406, %cst_215 [1] : vector<32x32xf32> to vector<32xf32>
    %408 = vector.shape_cast %407 : vector<32xf32> to vector<32x1xf32>
    %cst_216 = arith.constant 3.200000e+01 : f32
    %409 = vector.broadcast %cst_216 : f32 to vector<32x1xf32>
    %410 = arith.divf %408, %409 : vector<32x1xf32>
    %cst_217 = arith.constant 9.99999997E-7 : f32
    %411 = vector.broadcast %cst_217 : f32 to vector<32x1xf32>
    %412 = arith.addf %410, %411 : vector<32x1xf32>
    %413 = math.rsqrt %412 : vector<32x1xf32>
    %414 = vector.broadcast %413 : vector<32x1xf32> to vector<32x32xf32>
    %415 = arith.mulf %405, %414 : vector<32x32xf32>
    %416 = vector.broadcast %398 : vector<1x32xf32> to vector<32x32xf32>
    %417 = arith.mulf %415, %416 : vector<32x32xf32>
    %418 = vector.broadcast %399 : vector<1x32xf32> to vector<32x32xf32>
    %419 = arith.addf %417, %418 : vector<32x32xf32>
    %c0_218 = arith.constant 0 : index
    %c0_219 = arith.constant 0 : index
    %420 = vector.load %arg20[%c0_218, %c0_219] : memref<32x32xf32, #tpu.memory_space<vmem>>, vector<32x32xf32>
    tpu.vector_store %arg20[%c0_218, %c0_219], %419 {strides = array<i32>} : memref<32x32xf32, #tpu.memory_space<vmem>>, vector<32x32xf32>,
    return
  }
}

</mosaic_0001>

<bundles_post_ra>
// kernel: eq.8
= control target key start
LH: loop header
LB: loop body
LE: loop exit
PB: predicated region body
PF: predicated region fallthrough
CT: control target
= control target key end

     0   :  { %vm7_vm0 = vcmask 130048   ;;  %vm13_vm1 = vcmask 261248   ;;  %s39_s0 = inlined_call_operand.vmem [shape: s32[2,16], index: 0, kind: input, shape index: {}]   ;;  %s40_s1 = inlined_call_operand.vmem [shape: s32[32], index: 1, kind: output, shape index: {}]  }
   0x1   :  { %v4_v0 = vld [vmem:[%s39_s0] sm:$0x3]  ;;  %s22_s0 = smov 16  }
   0x2   :  { %5 = vst [vmem:[#allocation1] sm:$0x3] %v4_v0 }
   0x9   :  { %v10_v1 = vld [vmem:[#allocation1 + $0x1] sm:$0x1]   ;;  %v6_v2 = vld [vmem:[#allocation1] sm:$0x1]  }
   0xa   :  { %11 = vrot.lane.b32.xlu0 %v10_v1, %s22_s0  ;;  %8 = vst.msk [vmem:[#allocation0] sm:$0x1] %vm7_vm0, %v6_v2  }
  0x7c   :  { %v12_v3 = vpop.permute.xlu0 %11  }
  0x7d   :  { %14 = vst.msk [vmem:[#allocation0] sm:$0x1] %vm13_vm1, %v12_v3  }
  0x84   :  { %v18_v4 = vld [vmem:[#allocation0] sm:$0x1] }
  0x85   :  { %20 = vst [vmem:[%s40_s1] sm:$0x1] %v18_v4 }

// kernel: encoder_forward.1
= control target key start
LH: loop header
LB: loop body
LE: loop exit
PB: predicated region body
PF: predicated region fallthrough
CT: control target
= control target key end

     0   :  { %s6418_s0 = inlined_call_operand.vmem [shape: f32[32,32], index: 0, kind: input, shape index: {}]   ;;  %s6419_s1 = inlined_call_operand.vmem [shape: f32[32,32], index: 1, kind: input, shape index: {}]   ;;  %s6420_s2 = inlined_call_operand.vmem [shape: f32[2,1,32], index: 2, kind: input, shape index: {}]   ;;  %s6421_s3 = inlined_call_operand.vmem [shape: f32[2,1,32], index: 3, kind: input, shape index: {}]   ;;  %s6422_s4 = inlined_call_operand.vmem [shape: bf16[2,32,32], index: 4, kind: input, shape index: {}]   ;;  %s6423_s5 = inlined_call_operand.vmem [shape: f32[2,1,32], index: 5, kind: input, shape index: {}]   ;;  %s6424_s6 = inlined_call_operand.vmem [shape: bf16[2,32,32], index: 6, kind: input, shape index: {}]   ;;  %s6425_s7 = inlined_call_operand.vmem [shape: f32[2,1,32], index: 7, kind: input, shape index: {}]   ;;  %s6426_s8 = inlined_call_operand.vmem [shape: bf16[2,32,32], index: 8, kind: input, shape index: {}]   ;;  %s6427_s9 = inlined_call_operand.vmem [shape: f32[2,1,32], index: 9, kind: input, shape index: {}]   ;;  %s6428_s10 = inlined_call_operand.vmem [shape: bf16[2,4,8,32], index: 10, kind: input, shape index: {}]   ;;  %s6429_s11 = inlined_call_operand.vmem [shape: f32[2,1,32], index: 11, kind: input, shape index: {}]   ;;  %s6430_s12 = inlined_call_operand.vmem [shape: f32[2,1,32], index: 12, kind: input, shape index: {}]   ;;  %s6431_s13 = inlined_call_operand.vmem [shape: f32[2,1,32], index: 13, kind: input, shape index: {}]   ;;  %s6432_s14 = inlined_call_operand.vmem [shape: bf16[2,32,64], index: 14, kind: input, shape index: {}]   ;;  %s6433_s15 = inlined_call_operand.vmem [shape: f32[2,1,64], index: 15, kind: input, shape index: {}]   ;;  %s6434_s16 = inlined_call_operand.vmem [shape: bf16[2,64,32], index: 16, kind: input, shape index: {}]   ;;  %s6435_s17 = inlined_call_operand.vmem [shape: f32[2,1,32], index: 17, kind: input, shape index: {}]   ;;  %s6436_s18 = inlined_call_operand.vmem [shape: f32[1,32], index: 18, kind: input, shape index: {}]   ;;  %s6437_s19 = inlined_call_operand.vmem [shape: f32[1,32], index: 19, kind: input, shape index: {}]   ;;  %s6438_s20 = inlined_call_operand.hbm [shape: f32[32,32], index: 20, kind: output, shape index: {}]  }
   0x1   :  { %6446 = sst [smem:[#allocation5_spill]] %s6418_s0 }
   0x2   :  { %6447 = sst [smem:[#allocation6_spill]] %s6419_s1 }
   0x3   :  { %6448 = sst [smem:[#allocation7_spill]] %s6420_s2 }
   0x4   :  { %6449 = sst [smem:[#allocation8_spill]] %s6421_s3 }
   0x5   :  { %6450 = sst [smem:[#allocation9_spill]] %s6422_s4 }
   0x6   :  { %s6451_s23 = sld [smem:[#allocation5_spill]]  ;;  %vm77_vm0 = vcmask 261120  }
   0xc   :  { %v67_v0 = vld [vmem:[%s6451_s23] sm:$0xff]  ;;  %v69_v1 = vld [vmem:[%s6451_s23 + $0x10] sm:$0xff]  ;;  %v68_v2 = vld [vmem:[%s6451_s23 + $0x8] sm:$0xff] }
   0xd   :  { %v78_v3 = vsel %vm77_vm0, %v67_v0, 0.0  ;;  %v84_v4 = vsel %vm77_vm0, %v69_v1, 0.0  ;;  %v70_v5 = vld [vmem:[%s6451_s23 + $0x18] sm:$0xff]  ;;  %v81_v6 = vsel %vm77_vm0, %v68_v2, 0.0 }
   0xe   :  { %79 = vadd.xlane.f32.xlu0 %v78_v3  ;;  %85 = vadd.xlane.f32.xlu1 %v84_v4  ;;  %v87_v7 = vsel %vm77_vm0, %v70_v5, 0.0 }
  0x12   :  { %82 = vadd.xlane.f32.xlu0 %v81_v6  ;;  %88 = vadd.xlane.f32.xlu1 %v87_v7 }
  0x13   :  { %25 = vsyncpa [#allocation3], 0  ;;  %s6452_s29 = sld [smem:[#allocation9_spill]]  ;;  %v5192_v29 = vld [vmem:[%s6426_s8] sm:$0xff]   ;;  %v5194_v31 = vld [vmem:[%s6426_s8 + $0x8] sm:$0xff]   ;;  %s6453_s27 = sld [smem:[#allocation7_spill]] }
  0x14   :  { %4529 = vmatprep.subr.bf16.mxu0 %v5192_v29  ;;  %v5195_v32 = vld [vmem:[%s6424_s6] sm:$0xff]   ;;  %s6454_s30 = sld [smem:[#allocation8_spill]]  ;;  %vm375_vm1 = vcmask 64512   ;;  %s6457_s4 = sld [smem:[#allocation6_spill]]  ;;  %vm929_vm3 = vcmask 1043456   ;;  %vm1974_vm4 = vcmask 523264  }
  0x15   :  { %4530 = vmatpush3.bf16.msra.mxu0 %v5192_v29  ;;  %vm5611_vm2 = vmpackc.low %vm375_vm1, %vm375_vm1  ;;  %s5431_s25 = smov 120   ;;  %s5432_s3 = smov 112  }
  0x16   :  { %4531 = vmatprep.subr.bf16.mxu0 %v5194_v31  ;;  %s6444_s26 = smov 104   ;;  %s5434_s28 = smov [#allocation2]  }
  0x19   :  { %v5191_v28 = vld [vmem:[%s6452_s29] sm:$0xff]   ;;  %v5193_v30 = vld [vmem:[%s6452_s29 + $0x8] sm:$0xff]   ;;  %4532 = vmatpush3.bf16.msra.mxu0 %v5194_v31 }
  0x1a   :  { %4513 = vmatprep.subr.bf16.mxu1 %v5191_v28  ;;  %v4098_v47 = vld [vmem:[%s6453_s27] ss:$0 sm:$0xff] }
  0x1b   :  { %4514 = vmatpush3.bf16.msra.mxu1 %v5191_v28  ;;  %v4099_v52 = vld [vmem:[%s6454_s30] ss:$0 sm:$0xff] }
  0x1c   :  { %4515 = vmatprep.subr.bf16.mxu1 %v5193_v30 }
  0x1f   :  { %4516 = vmatpush3.bf16.msra.mxu1 %v5193_v30 }
  0x20   :  { %4521 = vmatprep.subr.bf16.mxu1 %v5195_v32 }
  0x9b   :  { %v80_v8 = vpop.xlane.xlu0 %79  ;;  %v86_v9 = vpop.xlane.xlu1 %85 }
  0x9c   :  { %v91_v10 = vmul.f32 0.03125, %v80_v8  ;;  %v93_v11 = vmul.f32 0.03125, %v86_v9 }
  0x9e   :  { %v95_v12 = vsub.f32 %v67_v0, %v91_v10  ;;  %v97_v13 = vsub.f32 %v69_v1, %v93_v11  ;;  %v5196_v1 = vld [vmem:[%s6424_s6 + $0x8] sm:$0xff]  }
  0x9f   :  { %v83_v14 = vpop.xlane.xlu0 %82  ;;  %v89_v15 = vpop.xlane.xlu1 %88 }
  0xa0   :  { %v92_v16 = vmul.f32 0.03125, %v83_v14  ;;  %v94_v17 = vmul.f32 0.03125, %v89_v15  ;;  %v99_v18 = vmul.f32 %v95_v12, %v95_v12  ;;  %v101_v19 = vmul.f32 %v97_v13, %v97_v13 }
  0xa2   :  { %v96_v20 = vsub.f32 %v68_v2, %v92_v16  ;;  %v98_v21 = vsub.f32 %v70_v5, %v94_v17  ;;  %v103_v22 = vsel %vm77_vm0, %v99_v18, 0.0  ;;  %v109_v23 = vsel %vm77_vm0, %v101_v19, 0.0  ;;  %v4100_v2 = vld [vmem:[%s6423_s5] ss:$0 sm:$0xff] }
  0xa3   :  { %104 = vadd.xlane.f32.xlu0 %v103_v22  ;;  %v4110_v5 = vld [vmem:[%s6427_s9] ss:$0 sm:$0xff] }
  0xa4   :  { %v100_v24 = vmul.f32 %v96_v20, %v96_v20  ;;  %v102_v25 = vmul.f32 %v98_v21, %v98_v21  ;;  %v4105_v22 = vld [vmem:[%s6425_s7] ss:$0 sm:$0xff] }
  0xa6   :  { %v106_v26 = vsel %vm77_vm0, %v100_v24, 0.0  ;;  %v112_v27 = vsel %vm77_vm0, %v102_v25, 0.0 }
  0xa7   :  { %110 = vadd.xlane.f32.xlu0 %v109_v23  ;;  %107 = vadd.xlane.f32.xlu1 %v106_v26 }
  0xab   :  { %113 = vadd.xlane.f32.xlu1 %v112_v27 }
 0x130   :  { %v105_v33 = vpop.xlane.xlu0 %104 }
 0x131   :  { %v115_v34 = vmul.f32 0.03125, %v105_v33 }
 0x133   :  { %v119_v35 = vadd.f32 1e-06, %v115_v34 }
 0x134   :  { %v108_v36 = vpop.xlane.xlu1 %107  ;;  %v111_v37 = vpop.xlane.xlu0 %110 }
 0x135   :  { %5215 = vrsqrt.f32 %v119_v35  ;;  %v116_v38 = vmul.f32 0.03125, %v108_v36  ;;  %v117_v39 = vmul.f32 0.03125, %v111_v37 }
 0x137   :  { %v120_v40 = vadd.f32 1e-06, %v116_v38  ;;  %v121_v41 = vadd.f32 1e-06, %v117_v39  ;;  %v5642_v39 = vld [vmem:[%s6457_s4 + $0x8] sm:$0xff] }
 0x138   :  { %v114_v42 = vpop.xlane.xlu1 %113 }
 0x139   :  { %5217 = vrsqrt.f32 %v120_v40  ;;  %v118_v43 = vmul.f32 0.03125, %v114_v42  ;;  %v5647_v42 = vld [vmem:[%s6457_s4] sm:$0xff] }
 0x13a   :  { %5219 = vrsqrt.f32 %v121_v41 }
 0x13b   :  { %v122_v44 = vadd.f32 1e-06, %v118_v43 }
 0x13d   :  { %5221 = vrsqrt.f32 %v122_v44 }
 0x13f   :  { %v5216_v45 = vpop.eup %5215 }
 0x140   :  { %v127_v46 = vmul.f32 %v5216_v45, %v95_v12 }
 0x142   :  { %v137_v51 = vmul.f32 %v4098_v47, %v127_v46 }
 0x143   :  { %v5218_v48 = vpop.eup %5217 }
 0x144   :  { %v5220_v49 = vpop.eup %5219  ;;  %v128_v50 = vmul.f32 %v5218_v48, %v96_v20  ;;  %v147_v56 = vadd.f32 %v4099_v52, %v137_v51  ;;  %v5660_v51 = vld [vmem:[%s6457_s4 + $0x10] sm:$0xff] }
 0x145   :  { %v129_v53 = vmul.f32 %v5220_v49, %v97_v13 }
 0x146   :  { %v138_v54 = vmul.f32 %v4098_v47, %v128_v50 }
 0x147   :  { %v5222_v55 = vpop.eup %5221  ;;  %v139_v59 = vmul.f32 %v4098_v47, %v129_v53 }
 0x148   :  { %v148_v57 = vadd.f32 %v4099_v52, %v138_v54  ;;  %v130_v58 = vmul.f32 %v5222_v55, %v98_v21 }
 0x149   :  { %v149_v62 = vadd.f32 %v4099_v52, %v139_v59 }
 0x14a   :  { %v151_v60 = vpack.c.bf16 %v148_v57, %v147_v56  ;;  %v140_v61 = vmul.f32 %v4098_v47, %v130_v58  ;;  %v5654_v47 = vld [vmem:[%s6457_s4 + $0x18] sm:$0xff] }
 0x14c   :  { %4517 = vmatprep.mubr.msk.bf16.mxu1 %vm77_vm0, %v151_v60  ;;  %4533 = vmatprep.mubr.msk.bf16.mxu0 %vm77_vm0, %v151_v60  ;;  %v150_v63 = vadd.f32 %v4099_v52, %v140_v61 }
 0x14e   :  { %v152_v0 = vpack.c.bf16 %v150_v63, %v149_v62 }
 0x150   :  { %4518 = vmatmul.mubr.msk.bf16.vlgmr.msra.gmra.mrb[0].mxu1 %vm77_vm0, %v152_v0  ;;  %4534 = vmatmul.mubr.msk.bf16.vlgmr.msra.gmra.mrb[0].mxu0 %vm77_vm0, %v152_v0 }
 0x151   :  { %4522 = vmatpush3.bf16.msra.mxu1 %v5195_v32  ;;  %4525 = vmatprep.mubr.msk.bf16.mxu1 %vm77_vm0, %v151_v60 }
 0x152   :  { %4523 = vmatprep.subr.bf16.mxu1 %v5196_v1 }
 0x155   :  { %4524 = vmatpush3.bf16.msra.mxu1 %v5196_v1 }
 0x158   :  { %4526 = vmatmul.mubr.msk.bf16.vlgmr.msra.gmra.mrb[4].mxu1 %vm77_vm0, %v152_v0 }
 0x223   :  { %v4519_v3 = vpop.f32.mrb[0].mxu1  ;;  %v4535_v4 = vpop.f32.mrb[0].mxu0 }
 0x224   :  { %v216_v6 = vpop.f32.mrb[1].mxu1  ;;  %v360_v7 = vpop.f32.mrb[1].mxu0  ;;  %v369_v11 = vadd.f32 %v4535_v4, %v4110_v5  ;;  %v5629_v36 = vadd.f32 %v4519_v3, %v4100_v2 }
 0x225   :  { %v5598_v8 = vadd.f32 %v4100_v2, %v216_v6  ;;  %v4520_v9 = vpop.f32.mrb[2].mxu1  ;;  %v4536_v10 = vpop.f32.mrb[2].mxu0  ;;  %v361_v15 = vadd.f32 %v4110_v5, %v360_v7 }
 0x226   :  { %v372_v12 = vadd.f32 %v4536_v10, %v4110_v5  ;;  %v219_v13 = vpop.f32.mrb[3].mxu1  ;;  %v363_v14 = vpop.f32.mrb[3].mxu0  ;;  %v5635_v37 = vadd.f32 %v4520_v9, %v4100_v2 }
 0x227   :  { %v364_v16 = vadd.f32 %v4110_v5, %v363_v14  ;;  %4545 = vmatprep.mubr.msk.f32.mxu1 %vm375_vm1, %v5598_v8  ;;  %v5627_v35 = vadd.f32 %v4100_v2, %v219_v13 }
 0x228   :  { %v4889_v17 = vpack.c.bf16 %v372_v12, %v369_v11  ;;  %v5602_v18 = vpack.i.bf16 %v372_v12, %v369_v11 }
 0x229   :  { %v4885_v19 = vpack.c.bf16 %v364_v16, %v361_v15  ;;  %v5604_v20 = vpack.i.bf16 %v364_v16, %v361_v15 }
 0x22b   :  { %v4527_v21 = vpop.f32.mrb[4].mxu1  ;;  %4886 = vmatprep.subr.bf16.mxu0 %v4885_v19 }
 0x22c   :  { %v288_v23 = vpop.f32.mrb[5].mxu1  ;;  %4888 = vmatpush3.bf16.msra.mxu0 %v4885_v19  ;;  %v297_v25 = vadd.f32 %v4527_v21, %v4105_v22 }
 0x22d   :  { %v4528_v24 = vpop.f32.mrb[6].mxu1  ;;  %4890 = vmatprep.subr.bf16.mxu0 %v4889_v17  ;;  %v289_v28 = vadd.f32 %v4105_v22, %v288_v23 }
 0x22e   :  { %v300_v26 = vadd.f32 %v4528_v24, %v4105_v22  ;;  %v291_v27 = vpop.f32.mrb[7].mxu1 }
 0x22f   :  { %v292_v29 = vadd.f32 %v4105_v22, %v291_v27 }
 0x230   :  { %4892 = vmatpush3.bf16.msra.mxu0 %v4889_v17  ;;  %v4879_v31 = vpack.c.bf16 %v300_v26, %v297_v25  ;;  %v5615_v32 = vpack.i.bf16 %v300_v26, %v297_v25 }
 0x231   :  { %v4873_v33 = vpack.c.bf16 %v292_v29, %v289_v28  ;;  %v5617_v34 = vpack.i.bf16 %v292_v29, %v289_v28 }
 0x233   :  { %4875 = vmatprep.subr.msk.bf16.mxu1 %vm5611_vm2, %v4873_v33 }
 0x234   :  { %4878 = vmatpush3.bf16.xpose.msk.msra.mxu1 %vm5611_vm2, %v4873_v33 }
 0x235   :  { %4881 = vmatprep.subr.msk.bf16.mxu1 %vm5611_vm2, %v4879_v31 }
 0x23c   :  { %4884 = vmatpush3.bf16.xpose.msk.msra.mxu1 %vm5611_vm2, %v4879_v31 }
 0x243   :  { %4546 = vmatmul.mubr.msk.f32.vlgmr.msra.gmra.mrb[8].mxu1 %vm375_vm1, %v5627_v35 }
 0x244   :  { %4548 = vmatprep.mubr.msk.f32.mxu1 %vm375_vm1, %v5629_v36 }
 0x247   :  { %4549 = vmatmul.mubr.msk.f32.gmra.mrb[10].mxu1 %vm375_vm1, %v5635_v37 }
 0x316   :  { %v4547_v38 = vpop.f32.mrb[8].mxu1 }
 0x317   :  { %v486_v40 = vmul.f32 0.35355338, %v4547_v38  ;;  %v466_v41 = vpop.f32.mrb[9].mxu1 }
 0x318   :  { %v485_v43 = vmul.f32 0.35355338, %v466_v41 }
 0x319   :  { %v490_v44 = vadd.f32 %v486_v40, %v5642_v39 }
 0x31a   :  { %v4550_v45 = vpop.f32.mrb[10].mxu1  ;;  %v489_v46 = vadd.f32 %v485_v43, %v5647_v42 }
 0x31b   :  { %v488_v48 = vmul.f32 0.35355338, %v4550_v45  ;;  %v476_v49 = vpop.f32.mrb[11].mxu1  ;;  %v496_v50 = vsel %vm77_vm0, %v490_v44, -inf }
 0x31c   :  { %v487_v52 = vmul.f32 0.35355338, %v476_v49  ;;  %497 = vmax.xlane.f32.xlu1 %v496_v50  ;;  %v493_v53 = vsel %vm77_vm0, %v489_v46, -inf }
 0x31d   :  { %494 = vmax.xlane.f32.xlu0 %v493_v53  ;;  %v492_v54 = vadd.f32 %v488_v48, %v5654_v47 }
 0x31e   :  { %v491_v55 = vadd.f32 %v487_v52, %v5660_v51 }
 0x31f   :  { %v502_v56 = vsel %vm77_vm0, %v492_v54, -inf }
 0x320   :  { %503 = vmax.xlane.f32.xlu1 %v502_v56  ;;  %v499_v57 = vsel %vm77_vm0, %v491_v55, -inf }
 0x321   :  { %500 = vmax.xlane.f32.xlu0 %v499_v57 }
 0x3a9   :  { %v498_v58 = vpop.xlane.xlu1 %497 }
 0x3aa   :  { %v506_v59 = vsub.f32 %v490_v44, %v498_v58  ;;  %v495_v60 = vpop.xlane.xlu0 %494 }
 0x3ab   :  { %v505_v61 = vsub.f32 %v489_v46, %v495_v60 }
 0x3ac   :  { %v511_v62 = vmul.f32 1.442695, %v506_v59 }
 0x3ad   :  { %v509_v63 = vmul.f32 1.442695, %v505_v61  ;;  %v504_v0 = vpop.xlane.xlu1 %503 }
 0x3ae   :  { %5223 = vpow2.f32 %v511_v62  ;;  %v508_v1 = vsub.f32 %v492_v54, %v504_v0  ;;  %v501_v2 = vpop.xlane.xlu0 %500 }
 0x3af   :  { %5225 = vpow2.f32 %v509_v63  ;;  %v507_v3 = vsub.f32 %v491_v55, %v501_v2 }
 0x3b0   :  { %v515_v4 = vmul.f32 1.442695, %v508_v1 }
 0x3b1   :  { %v513_v5 = vmul.f32 1.442695, %v507_v3 }
 0x3b2   :  { %5227 = vpow2.f32 %v515_v4 }
 0x3b3   :  { %5229 = vpow2.f32 %v513_v5 }
 0x3b8   :  { %v5224_v6 = vpop.eup %5223 }
 0x3b9   :  { %v5226_v7 = vpop.eup %5225  ;;  %v520_v9 = vsel %vm77_vm0, %v5224_v6, 0.0 }
 0x3ba   :  { %521 = vadd.xlane.f32.xlu1 %v520_v9  ;;  %v517_v10 = vsel %vm77_vm0, %v5226_v7, 0.0 }
 0x3bb   :  { %518 = vadd.xlane.f32.xlu0 %v517_v10 }
 0x3bc   :  { %v5228_v11 = vpop.eup %5227 }
 0x3bd   :  { %v5230_v12 = vpop.eup %5229  ;;  %v526_v13 = vsel %vm77_vm0, %v5228_v11, 0.0 }
 0x3be   :  { %527 = vadd.xlane.f32.xlu1 %v526_v13  ;;  %v523_v14 = vsel %vm77_vm0, %v5230_v12, 0.0 }
 0x3bf   :  { %524 = vadd.xlane.f32.xlu0 %v523_v14 }
 0x3cf   :  { %5077 = vrot.lane.b32.xlu1 %v5615_v32, %s5431_s25 }
 0x3d3   :  { %637 = vrot.lane.b32.xlu1 %v5598_v8, %s5431_s25 }
 0x3d5   :  { %5072 = vrot.lane.b32.xlu0 %v5617_v34, %s5431_s25 }
 0x3d7   :  { %639 = vrot.lane.b32.xlu1 %v5627_v35, %s5431_s25 }
 0x3d9   :  { %641 = vrot.lane.b32.xlu0 %v5629_v36, %s5431_s25 }
 0x3db   :  { %643 = vrot.lane.b32.xlu1 %v5635_v37, %s5431_s25 }
 0x3dd   :  { %5082 = vrot.lane.b32.xlu0 %v5617_v34, %s5432_s3 }
 0x3df   :  { %5087 = vrot.lane.b32.xlu1 %v5615_v32, %s5432_s3 }
 0x3e1   :  { %1040 = vrot.lane.b32.xlu0 %v5598_v8, %s5432_s3 }
 0x3e3   :  { %1042 = vrot.lane.b32.xlu1 %v5627_v35, %s5432_s3 }
 0x3e5   :  { %1044 = vrot.lane.b32.xlu0 %v5629_v36, %s5432_s3 }
 0x3e7   :  { %1046 = vrot.lane.b32.xlu1 %v5635_v37, %s5432_s3 }
 0x447   :  { %v522_v15 = vpop.xlane.xlu1 %521 }
 0x448   :  { %5231 = vrcp.f32 %v522_v15  ;;  %v519_v16 = vpop.xlane.xlu0 %518 }
 0x449   :  { %5233 = vrcp.f32 %v519_v16 }
 0x44b   :  { %v528_v17 = vpop.xlane.xlu1 %527 }
 0x44c   :  { %5235 = vrcp.f32 %v528_v17  ;;  %v525_v19 = vpop.xlane.xlu0 %524 }
 0x44d   :  { %5237 = vrcp.f32 %v525_v19 }
 0x44f   :  { %v5078_v21 = vpop.permute.xlu1 %5077 }
 0x450   :  { %v5073_v22 = vpop.permute.xlu0 %5072  ;;  %v5080_v27 = vunpack.i.h.bf16 %v5078_v21  ;;  %v5079_v28 = vunpack.i.l.bf16 %v5078_v21 }
 0x451   :  { %v5075_v23 = vunpack.i.h.bf16 %v5073_v22  ;;  %v5074_v24 = vunpack.i.l.bf16 %v5073_v22 }
 0x452   :  { %v5232_v25 = vpop.eup %5231  ;;  %v4899_v44 = vpack.c.bf16 %v5080_v27, %v5079_v28 }
 0x453   :  { %v5234_v26 = vpop.eup %5233  ;;  %v4893_v29 = vpack.c.bf16 %v5075_v23, %v5074_v24  ;;  %v638_v31 = vpop.permute.xlu1 %637  ;;  %v534_v40 = vmul.f32 %v5232_v25, %v5224_v6 }
 0x454   :  { %v642_v33 = vpop.permute.xlu0 %641  ;;  %v533_v38 = vmul.f32 %v5234_v26, %v5226_v7 }
 0x455   :  { %4895 = vmatprep.subr.msk.bf16.mxu0 %vm5611_vm2, %v4893_v29 }
 0x456   :  { %v5236_v41 = vpop.eup %5235  ;;  %4559 = vmatprep.mubr.msk.f32.mxu0 %vm77_vm0, %v533_v38 }
 0x457   :  { %v5238_v43 = vpop.eup %5237  ;;  %v640_v45 = vpop.permute.xlu1 %639  ;;  %4560 = vmatmul.mubr.msk.f32.vlgmr.msra.gmra.mrb[4].mxu0 %vm77_vm0, %v534_v40  ;;  %v536_v49 = vmul.f32 %v5236_v41, %v5228_v11 }
 0x458   :  { %4898 = vmatpush3.bf16.xpose.msk.msra.mxu0 %vm5611_vm2, %v4893_v29  ;;  %v5083_v46 = vpop.permute.xlu0 %5082  ;;  %v535_v48 = vmul.f32 %v5238_v43, %v5230_v12 }
 0x459   :  { %4901 = vmatprep.subr.msk.bf16.mxu0 %vm5611_vm2, %v4899_v44  ;;  %v5085_v50 = vunpack.i.h.bf16 %v5083_v46  ;;  %v5084_v52 = vunpack.i.l.bf16 %v5083_v46 }
 0x45a   :  { %4562 = vmatprep.mubr.msk.f32.mxu0 %vm77_vm0, %v535_v48 }
 0x45b   :  { %v644_v53 = vpop.permute.xlu1 %643  ;;  %4563 = vmatmul.mubr.msk.f32.gmra.mrb[6].mxu0 %vm77_vm0, %v536_v49  ;;  %v4913_v54 = vpack.c.bf16 %v5085_v50, %v5084_v52 }
 0x45c   :  { %4573 = vmatprep.mubr.msk.f32.mxu0 %vm375_vm1, %v638_v31  ;;  %v1041_v59 = vpop.permute.xlu0 %1040 }
 0x45f   :  { %v5088_v55 = vpop.permute.xlu1 %5087 }
 0x460   :  { %4904 = vmatpush3.bf16.xpose.msk.msra.mxu0 %vm5611_vm2, %v4899_v44  ;;  %v5090_v56 = vunpack.i.h.bf16 %v5088_v55  ;;  %v5089_v57 = vunpack.i.l.bf16 %v5088_v55  ;;  %v1045_v61 = vpop.permute.xlu0 %1044 }
 0x461   :  { %4915 = vmatprep.subr.msk.bf16.mxu0 %vm5611_vm2, %v4913_v54 }
 0x462   :  { %v4919_v58 = vpack.c.bf16 %v5090_v56, %v5089_v57 }
 0x463   :  { %v1043_v60 = vpop.permute.xlu1 %1042 }
 0x467   :  { %4574 = vmatmul.mubr.msk.f32.vlgmr.msra.gmra.mrb[8].mxu0 %vm375_vm1, %v640_v45  ;;  %v1047_v62 = vpop.permute.xlu1 %1046 }
 0x468   :  { %4576 = vmatprep.mubr.msk.f32.mxu0 %vm375_vm1, %v642_v33  ;;  %4918 = vmatpush3.bf16.xpose.msk.msra.mxu0 %vm5611_vm2, %v4913_v54 }
 0x469   :  { %4921 = vmatprep.subr.msk.bf16.mxu0 %vm5611_vm2, %v4919_v58 }
 0x46b   :  { %4577 = vmatmul.mubr.msk.f32.gmra.mrb[10].mxu0 %vm375_vm1, %v644_v53 }
 0x46c   :  { %4613 = vmatprep.mubr.msk.f32.mxu0 %vm375_vm1, %v1041_v59 }
 0x470   :  { %4924 = vmatpush3.bf16.xpose.msk.msra.mxu0 %vm5611_vm2, %v4919_v58 }
 0x477   :  { %4614 = vmatmul.mubr.msk.f32.vlgmr.msra.gmra.mrb[12].mxu0 %vm375_vm1, %v1043_v60 }
 0x478   :  { %4616 = vmatprep.mubr.msk.f32.mxu0 %vm375_vm1, %v1045_v61 }
 0x47b   :  { %4617 = vmatmul.mubr.msk.f32.gmra.mrb[14].mxu0 %vm375_vm1, %v1047_v62 }
 0x52a   :  { %v5723_v63 = vpop.f32.mrb[4].mxu0 }
 0x52b   :  { %v5725_v0 = vpop.f32.mrb[5].mxu0 }
 0x52c   :  { %v634_v1 = vpack.c.bf16 %v5723_v63, %v5725_v0 }
 0x52e   :  { %v5729_v2 = vpop.f32.mrb[6].mxu0 }
 0x52f   :  { %v5731_v3 = vpop.f32.mrb[7].mxu0 }
 0x530   :  { %v635_v4 = vpack.c.bf16 %v5729_v2, %v5731_v3 }
 0x53a   :  { %v4575_v5 = vpop.f32.mrb[8].mxu0 }
 0x53b   :  { %v755_v6 = vmul.f32 0.35355338, %v4575_v5  ;;  %v735_v7 = vpop.f32.mrb[9].mxu0 }
 0x53c   :  { %v754_v9 = vmul.f32 0.35355338, %v735_v7 }
 0x53d   :  { %v759_v10 = vadd.f32 %v755_v6, %v5642_v39 }
 0x53e   :  { %v4578_v11 = vpop.f32.mrb[10].mxu0  ;;  %v758_v12 = vadd.f32 %v754_v9, %v5647_v42 }
 0x53f   :  { %v745_v13 = vpop.f32.mrb[11].mxu0  ;;  %v765_v14 = vsel %vm77_vm0, %v759_v10, -inf  ;;  %v757_v15 = vmul.f32 0.35355338, %v4578_v11 }
 0x540   :  { %v756_v16 = vmul.f32 0.35355338, %v745_v13  ;;  %766 = vmax.xlane.f32.xlu1 %v765_v14  ;;  %v762_v17 = vsel %vm77_vm0, %v758_v12, -inf }
 0x541   :  { %763 = vmax.xlane.f32.xlu0 %v762_v17  ;;  %v761_v22 = vadd.f32 %v757_v15, %v5654_v47 }
 0x542   :  { %v760_v19 = vadd.f32 %v756_v16, %v5660_v51 }
 0x543   :  { %v771_v23 = vsel %vm77_vm0, %v761_v22, -inf }
 0x544   :  { %v768_v21 = vsel %vm77_vm0, %v760_v19, -inf }
 0x545   :  { %769 = vmax.xlane.f32.xlu0 %v768_v21 }
 0x549   :  { %772 = vmax.xlane.f32.xlu0 %v771_v23 }
 0x54a   :  { %v4615_v24 = vpop.f32.mrb[12].mxu0 }
 0x54b   :  { %v1138_v25 = vpop.f32.mrb[13].mxu0 }
 0x54c   :  { %v1157_v58 = vmul.f32 0.35355338, %v1138_v25 }
 0x54e   :  { %v4618_v26 = vpop.f32.mrb[14].mxu0  ;;  %v5773_v60 = vadd.f32 %v1157_v58, %v5647_v42 }
 0x54f   :  { %v1148_v27 = vpop.f32.mrb[15].mxu0 }
 0x550   :  { %v1159_v59 = vmul.f32 0.35355338, %v1148_v27 }
 0x5cd   :  { %v767_v28 = vpop.xlane.xlu1 %766 }
 0x5ce   :  { %v775_v29 = vsub.f32 %v759_v10, %v767_v28  ;;  %v764_v31 = vpop.xlane.xlu0 %763 }
 0x5cf   :  { %v774_v33 = vsub.f32 %v758_v12, %v764_v31 }
 0x5d0   :  { %v780_v38 = vmul.f32 1.442695, %v775_v29 }
 0x5d1   :  { %v778_v40 = vmul.f32 1.442695, %v774_v33 }
 0x5d2   :  { %5239 = vpow2.f32 %v780_v38  ;;  %v770_v41 = vpop.xlane.xlu0 %769 }
 0x5d3   :  { %5241 = vpow2.f32 %v778_v40  ;;  %v776_v43 = vsub.f32 %v760_v19, %v770_v41 }
 0x5d5   :  { %v782_v44 = vmul.f32 1.442695, %v776_v43 }
 0x5d6   :  { %v773_v45 = vpop.xlane.xlu0 %772 }
 0x5d7   :  { %5243 = vpow2.f32 %v782_v44  ;;  %v777_v46 = vsub.f32 %v761_v22, %v773_v45 }
 0x5d9   :  { %v784_v48 = vmul.f32 1.442695, %v777_v46 }
 0x5db   :  { %5245 = vpow2.f32 %v784_v48 }
 0x5dc   :  { %v5743_v49 = vpop.eup %5239 }
 0x5dd   :  { %v5242_v50 = vpop.eup %5241  ;;  %v789_v52 = vsel %vm77_vm0, %v5743_v49, 0.0 }
 0x5de   :  { %790 = vadd.xlane.f32.xlu1 %v789_v52  ;;  %v786_v53 = vsel %vm77_vm0, %v5242_v50, 0.0 }
 0x5df   :  { %787 = vadd.xlane.f32.xlu0 %v786_v53 }
 0x5e1   :  { %v5748_v54 = vpop.eup %5243 }
 0x5e2   :  { %v792_v55 = vsel %vm77_vm0, %v5748_v54, 0.0 }
 0x5e3   :  { %793 = vadd.xlane.f32.xlu0 %v792_v55 }
 0x5e5   :  { %v5752_v56 = vpop.eup %5245 }
 0x5e6   :  { %v795_v57 = vsel %vm77_vm0, %v5752_v56, 0.0 }
 0x5e7   :  { %796 = vadd.xlane.f32.xlu1 %v795_v57 }
 0x5f8   :  { %5097 = vrot.lane.b32.xlu1 %v5602_v18, %s5431_s25 }
 0x5f9   :  { %5092 = vrot.lane.b32.xlu0 %v5604_v20, %s5431_s25 }
 0x5fc   :  { %5102 = vrot.lane.b32.xlu1 %v5617_v34, %s6444_s26  ;;  %v1160_v34 = vmul.f32 0.35355338, %v4618_v26 }
 0x5fd   :  { %1384 = vrot.lane.b32.xlu0 %v5598_v8, %s6444_s26  ;;  %v1165_v8 = vsel %vm77_vm0, %v5773_v60, -inf }
 0x5fe   :  { %v5783_v61 = vadd.f32 %v1160_v34, %v5654_v47 }
 0x600   :  { %5107 = vrot.lane.b32.xlu1 %v5615_v32, %s6444_s26  ;;  %v5778_v32 = vadd.f32 %v1159_v59, %v5660_v51 }
 0x601   :  { %1388 = vrot.lane.b32.xlu0 %v5629_v36, %s6444_s26  ;;  %v1158_v36 = vmul.f32 0.35355338, %v4615_v24 }
 0x603   :  { %v5788_v62 = vadd.f32 %v1158_v36, %v5642_v39 }
 0x604   :  { %1386 = vrot.lane.b32.xlu1 %v5627_v35, %s6444_s26  ;;  %v1171_v35 = vsel %vm77_vm0, %v5778_v32, -inf }
 0x605   :  { %v1168_v5 = vsel %vm77_vm0, %v5788_v62, -inf }
 0x608   :  { %1390 = vrot.lane.b32.xlu1 %v5635_v37, %s6444_s26  ;;  %v1174_v37 = vsel %vm77_vm0, %v5783_v61, -inf }
 0x620   :  { %1166 = vmax.xlane.f32.xlu0 %v1165_v8 }
 0x624   :  { %1172 = vmax.xlane.f32.xlu0 %v1171_v35 }
 0x628   :  { %1175 = vmax.xlane.f32.xlu0 %v1174_v37 }
 0x62c   :  { %1169 = vmax.xlane.f32.xlu1 %v1168_v5 }
 0x66b   :  { %v791_v7 = vpop.xlane.xlu1 %790 }
 0x66c   :  { %v788_v6 = vpop.xlane.xlu0 %787 }
 0x66d   :  { %5247 = vrcp.f32 %v788_v6 }
 0x66e   :  { %5249 = vrcp.f32 %v791_v7  ;;  %v4139_v7 = vld [vmem:[%s6428_s10 + $0x4] sm:$0xf] }
 0x670   :  { %v794_v9 = vpop.xlane.xlu0 %793 }
 0x671   :  { %5251 = vrcp.f32 %v794_v9  ;;  %v931_v9 = vsel %vm929_vm3, %v4139_v7, 0 }
 0x674   :  { %v797_v10 = vpop.xlane.xlu1 %796  ;;  %v5093_v11 = vpop.permute.xlu0 %5092 }
 0x675   :  { %v5095_v12 = vunpack.i.h.bf16 %v5093_v11  ;;  %v5094_v13 = vunpack.i.l.bf16 %v5093_v11  ;;  %5253 = vrcp.f32 %v797_v10  ;;  %v636_v10 = vld [vmem:[%s6428_s10] sm:$0xf] }
 0x677   :  { %v5248_v14 = vpop.eup %5247  ;;  %v4905_v15 = vpack.c.bf16 %v5095_v12, %v5094_v13 }
 0x678   :  { %v5098_v16 = vpop.permute.xlu1 %5097  ;;  %v1385_v17 = vpop.permute.xlu0 %1384  ;;  %v802_v19 = vmul.f32 %v5248_v14, %v5242_v50 }
 0x679   :  { %v5100_v21 = vunpack.i.h.bf16 %v5098_v16  ;;  %v5099_v22 = vunpack.i.l.bf16 %v5098_v16  ;;  %4906 = vmatprep.subr.bf16.mxu1 %v4905_v15  ;;  %4647 = vmatprep.mubr.msk.f32.mxu0 %vm375_vm1, %v1385_v17  ;;  %v5250_v24 = vpop.eup %5249 }
 0x67a   :  { %4908 = vmatpush3.bf16.msra.mxu1 %v4905_v15  ;;  %4587 = vmatprep.mubr.msk.f32.mxu1 %vm77_vm0, %v802_v19  ;;  %v803_v29 = vmul.f32 %v5250_v24, %v5743_v49 }
 0x67b   :  { %v4909_v23 = vpack.c.bf16 %v5100_v21, %v5099_v22  ;;  %v5252_v26 = vpop.eup %5251 }
 0x67c   :  { %v5103_v25 = vpop.permute.xlu1 %5102  ;;  %v804_v40 = vmul.f32 %v5252_v26, %v5748_v54  ;;  %v1389_v48 = vpop.permute.xlu0 %1388 }
 0x67d   :  { %v5105_v27 = vunpack.i.h.bf16 %v5103_v25  ;;  %v5104_v28 = vunpack.i.l.bf16 %v5103_v25  ;;  %4910 = vmatprep.subr.bf16.mxu1 %v4909_v23  ;;  %v989_v25 = vsel %vm929_vm3, %v636_v10, 0 }
 0x67e   :  { %4912 = vmatpush3.bf16.msra.mxu1 %v4909_v23 }
 0x67f   :  { %v4933_v31 = vpack.c.bf16 %v5105_v27, %v5104_v28  ;;  %v5254_v33 = vpop.eup %5253  ;;  %5057 = vmatprep.subr.msk.bf16.mxu1 %vm929_vm3, %v4139_v7 }
 0x680   :  { %v5108_v38 = vpop.permute.xlu1 %5107  ;;  %v805_v45 = vmul.f32 %v5254_v33, %v5752_v56 }
 0x681   :  { %v5110_v41 = vunpack.i.h.bf16 %v5108_v38  ;;  %v5109_v43 = vunpack.i.l.bf16 %v5108_v38  ;;  %4588 = vmatmul.mubr.msk.f32.vlgmr.msra.gmra.mrb[12].mxu1 %vm77_vm0, %v803_v29  ;;  %4935 = vmatprep.subr.msk.bf16.mxu0 %vm5611_vm2, %v4933_v31 }
 0x682   :  { %4590 = vmatprep.mubr.msk.f32.mxu1 %vm77_vm0, %v804_v40  ;;  %4938 = vmatpush3.bf16.xpose.msk.msra.mxu0 %vm5611_vm2, %v4933_v31 }
 0x683   :  { %v4939_v44 = vpack.c.bf16 %v5110_v41, %v5109_v43  ;;  %4594 = vmatpush3.bf16.msra.mxu1 %v931_v9 }
 0x684   :  { %v1387_v46 = vpop.permute.xlu1 %1386  ;;  %5058 = vmatprep.subr.msk.bf16.mxu1 %vm929_vm3, %v636_v10 }
 0x685   :  { %4591 = vmatmul.mubr.msk.f32.gmra.mrb[14].mxu1 %vm77_vm0, %v805_v45  ;;  %4941 = vmatprep.subr.msk.bf16.mxu0 %vm5611_vm2, %v4939_v44 }
 0x688   :  { %v1391_v49 = vpop.permute.xlu1 %1390 }
 0x68a   :  { %4944 = vmatpush3.bf16.xpose.msk.msra.mxu0 %vm5611_vm2, %v4939_v44 }
 0x691   :  { %4648 = vmatmul.mubr.msk.f32.vlgmr.msra.gmra.mrb[16].mxu0 %vm375_vm1, %v1387_v46 }
 0x692   :  { %4650 = vmatprep.mubr.msk.f32.mxu0 %vm375_vm1, %v1389_v48 }
 0x695   :  { %4651 = vmatmul.mubr.msk.f32.gmra.mrb[18].mxu0 %vm375_vm1, %v1391_v49 }
 0x6ad   :  { %v1167_v50 = vpop.xlane.xlu0 %1166 }
 0x6ae   :  { %v1177_v52 = vsub.f32 %v5773_v60, %v1167_v50 }
 0x6b0   :  { %v1181_v53 = vmul.f32 1.442695, %v1177_v52 }
 0x6b1   :  { %v1173_v54 = vpop.xlane.xlu0 %1172 }
 0x6b2   :  { %5255 = vpow2.f32 %v1181_v53  ;;  %v1179_v55 = vsub.f32 %v5778_v32, %v1173_v54 }
 0x6b4   :  { %v1185_v56 = vmul.f32 1.442695, %v1179_v55 }
 0x6b5   :  { %v1176_v57 = vpop.xlane.xlu0 %1175 }
 0x6b6   :  { %5257 = vpow2.f32 %v1185_v56  ;;  %v1180_v58 = vsub.f32 %v5783_v61, %v1176_v57 }
 0x6b8   :  { %v1187_v36 = vmul.f32 1.442695, %v1180_v58 }
 0x6b9   :  { %v1170_v59 = vpop.xlane.xlu1 %1169 }
 0x6ba   :  { %v1178_v34 = vsub.f32 %v5788_v62, %v1170_v59 }
 0x6bc   :  { %v5256_v8 = vpop.eup %5255  ;;  %v1183_v35 = vmul.f32 1.442695, %v1178_v34 }
 0x6bd   :  { %v1189_v37 = vsel %vm77_vm0, %v5256_v8, 0.0 }
 0x6be   :  { %5259 = vpow2.f32 %v1183_v35  ;;  %1190 = vadd.xlane.f32.xlu0 %v1189_v37 }
 0x6bf   :  { %5261 = vpow2.f32 %v1187_v36 }
 0x6c0   :  { %v5816_v60 = vpop.eup %5257 }
 0x6c1   :  { %v1195_v32 = vsel %vm77_vm0, %v5816_v60, 0.0 }
 0x6c2   :  { %1196 = vadd.xlane.f32.xlu0 %v1195_v32 }
 0x6c8   :  { %v5820_v5 = vpop.eup %5259 }
 0x6c9   :  { %v1192_v61 = vsel %vm77_vm0, %v5820_v5, 0.0  ;;  %v5824_v62 = vpop.eup %5261 }
 0x6ca   :  { %1193 = vadd.xlane.f32.xlu1 %v1192_v61  ;;  %v1198_v6 = vsel %vm77_vm0, %v5824_v62, 0.0 }
 0x6ce   :  { %1199 = vadd.xlane.f32.xlu1 %v1198_v6 }
 0x6d8   :  { %5112 = vrot.lane.b32.xlu0 %v5604_v20, %s5432_s3 }
 0x6df   :  { %5117 = vrot.lane.b32.xlu1 %v5602_v18, %s5432_s3 }
 0x74b   :  { %v1191_v11 = vpop.xlane.xlu0 %1190 }
 0x74c   :  { %5263 = vrcp.f32 %v1191_v11 }
 0x74f   :  { %v1197_v12 = vpop.xlane.xlu0 %1196 }
 0x753   :  { %v5113_v14 = vpop.permute.xlu0 %5112 }
 0x754   :  { %v4589_v13 = vpop.f32.mrb[12].mxu1  ;;  %v5115_v19 = vunpack.i.h.bf16 %v5113_v14  ;;  %v5114_v21 = vunpack.i.l.bf16 %v5113_v14 }
 0x755   :  { %v900_v15 = vpop.f32.mrb[13].mxu1 }
 0x756   :  { %v919_v16 = vpack.c.bf16 %v4589_v13, %v900_v15  ;;  %v4925_v27 = vpack.c.bf16 %v5115_v19, %v5114_v21  ;;  %v5264_v29 = vpop.eup %5263 }
 0x757   :  { %v1194_v17 = vpop.xlane.xlu1 %1193  ;;  %v1205_v44 = vmul.f32 %v5264_v29, %v5256_v8 }
 0x758   :  { %v4592_v22 = vpop.f32.mrb[14].mxu1  ;;  %4595 = vmatprep.mubr.msk.bf16.mxu1 %vm375_vm1, %v919_v16  ;;  %5265 = vrcp.f32 %v1194_v17 }
 0x759   :  { %v910_v23 = vpop.f32.mrb[15].mxu1  ;;  %5267 = vrcp.f32 %v1197_v12 }
 0x75a   :  { %v920_v24 = vpack.c.bf16 %v4592_v22, %v910_v23 }
 0x75b   :  { %v1200_v26 = vpop.xlane.xlu1 %1199 }
 0x75c   :  { %4596 = vmatmul.mubr.msk.bf16.vlgmr.msra.gmra.mrb[16].mxu1 %vm375_vm1, %v920_v24  ;;  %5269 = vrcp.f32 %v1200_v26 }
 0x75d   :  { %4600 = vmatpush3.bf16.msra.mxu1 %v989_v25  ;;  %4601 = vmatprep.mubr.msk.bf16.mxu1 %vm375_vm1, %v634_v1 }
 0x75e   :  { %4926 = vmatprep.subr.bf16.mxu1 %v4925_v27 }
 0x75f   :  { %v5118_v28 = vpop.permute.xlu1 %5117 }
 0x760   :  { %v5120_v31 = vunpack.i.h.bf16 %v5118_v28  ;;  %v5119_v33 = vunpack.i.l.bf16 %v5118_v28 }
 0x762   :  { %v4929_v0 = vpack.c.bf16 %v5120_v31, %v5119_v33  ;;  %v5266_v52 = vpop.eup %5265 }
 0x763   :  { %v5268_v3 = vpop.eup %5267  ;;  %v1206_v54 = vmul.f32 %v5266_v52, %v5820_v5 }
 0x764   :  { %v4649_v38 = vpop.f32.mrb[16].mxu0  ;;  %v1207_v56 = vmul.f32 %v5268_v3, %v5816_v60 }
 0x765   :  { %v1502_v40 = vmul.f32 0.35355338, %v4649_v38  ;;  %v1482_v41 = vpop.f32.mrb[17].mxu0 }
 0x766   :  { %v1501_v43 = vmul.f32 0.35355338, %v1482_v41  ;;  %v5270_v55 = vpop.eup %5269 }
 0x767   :  { %v1506_v45 = vadd.f32 %v1502_v40, %v5642_v39 }
 0x768   :  { %4602 = vmatmul.mubr.msk.bf16.vlgmr.msra.gmra.mrb[16].mxu1 %vm375_vm1, %v635_v4  ;;  %v4652_v63 = vpop.f32.mrb[18].mxu0  ;;  %v1505_v1 = vadd.f32 %v1501_v43, %v5647_v42 }
 0x769   :  { %4928 = vmatpush3.bf16.msra.mxu1 %v4925_v27  ;;  %v1504_v46 = vmul.f32 0.35355338, %v4652_v63  ;;  %4627 = vmatprep.mubr.msk.f32.mxu1 %vm77_vm0, %v1205_v44  ;;  %v1492_v48 = vpop.f32.mrb[19].mxu0  ;;  %v1512_v49 = vsel %vm77_vm0, %v1506_v45, -inf }
 0x76a   :  { %4930 = vmatprep.subr.bf16.mxu1 %v4929_v0  ;;  %v1503_v50 = vmul.f32 0.35355338, %v1492_v48  ;;  %1513 = vmax.xlane.f32.xlu0 %v1512_v49  ;;  %v1509_v39 = vsel %vm77_vm0, %v1505_v1, -inf }
 0x76b   :  { %1510 = vmax.xlane.f32.xlu1 %v1509_v39  ;;  %v1508_v2 = vadd.f32 %v1504_v46, %v5654_v47  ;;  %v1208_v47 = vmul.f32 %v5270_v55, %v5824_v62  ;;  %v4171_v46 = vld [vmem:[%s6428_s10 + $0xc] sm:$0xf] }
 0x76c   :  { %v1507_v4 = vadd.f32 %v1503_v50, %v5660_v51  ;;  %v4156_v51 = vld [vmem:[%s6428_s10 + $0x8] sm:$0xf]  ;;  %v1673_v48 = vsel %vm929_vm3, %v4171_v46, 0 }
 0x76d   :  { %4932 = vmatpush3.bf16.msra.mxu1 %v4929_v0  ;;  %v1518_v42 = vsel %vm77_vm0, %v1508_v2, -inf  ;;  %v1329_v57 = vsel %vm929_vm3, %v4156_v51, 0 }
 0x76e   :  { %v1515_v53 = vsel %vm77_vm0, %v1507_v4, -inf  ;;  %5059 = vmatprep.subr.msk.bf16.mxu1 %vm929_vm3, %v4156_v51 }
 0x76f   :  { %1516 = vmax.xlane.f32.xlu0 %v1515_v53  ;;  %1519 = vmax.xlane.f32.xlu1 %v1518_v42  ;;  %v4174_v42 = vld [vmem:[%s6429_s11] ss:$0 sm:$0xff] }
 0x770   :  { %4628 = vmatmul.mubr.msk.f32.vlgmr.msra.gmra.mrb[20].mxu1 %vm77_vm0, %v1206_v54  ;;  %v5399_v54 = vld [vmem:[%s6451_s23] sm:$0xff] }
 0x771   :  { %4630 = vmatprep.mubr.msk.f32.mxu1 %vm77_vm0, %v1207_v56  ;;  %4634 = vmatpush3.bf16.msra.mxu1 %v1329_v57 }
 0x774   :  { %4631 = vmatmul.mubr.msk.f32.gmra.mrb[22].mxu1 %vm77_vm0, %v1208_v47  ;;  %v5400_v47 = vld [vmem:[%s6451_s23 + $0x18] sm:$0xff] }
 0x7f7   :  { %v1514_v58 = vpop.xlane.xlu0 %1513 }
 0x7f8   :  { %v1522_v59 = vsub.f32 %v1506_v45, %v1514_v58  ;;  %v1511_v34 = vpop.xlane.xlu1 %1510  ;;  %v5401_v58 = vld [vmem:[%s6451_s23 + $0x10] sm:$0xff] }
 0x7f9   :  { %v1521_v8 = vsub.f32 %v1505_v1, %v1511_v34 }
 0x7fa   :  { %v1527_v36 = vmul.f32 1.442695, %v1522_v59 }
 0x7fb   :  { %v1525_v35 = vmul.f32 1.442695, %v1521_v8  ;;  %v5402_v8 = vld [vmem:[%s6451_s23 + $0x8] sm:$0xff] }
 0x7fc   :  { %5271 = vpow2.f32 %v1527_v36  ;;  %v1520_v37 = vpop.xlane.xlu1 %1519  ;;  %v1517_v60 = vpop.xlane.xlu0 %1516 }
 0x7fd   :  { %5273 = vpow2.f32 %v1525_v35  ;;  %v1524_v32 = vsub.f32 %v1508_v2, %v1520_v37  ;;  %v1523_v5 = vsub.f32 %v1507_v4, %v1517_v60 }
 0x7ff   :  { %v1531_v61 = vmul.f32 1.442695, %v1524_v32  ;;  %v1529_v62 = vmul.f32 1.442695, %v1523_v5 }
 0x801   :  { %5275 = vpow2.f32 %v1531_v61 }
 0x802   :  { %5277 = vpow2.f32 %v1529_v62 }
 0x806   :  { %v5272_v6 = vpop.eup %5271 }
 0x807   :  { %v5274_v7 = vpop.eup %5273  ;;  %v1536_v9 = vsel %vm77_vm0, %v5272_v6, 0.0 }
 0x808   :  { %1537 = vadd.xlane.f32.xlu1 %v1536_v9  ;;  %v1533_v10 = vsel %vm77_vm0, %v5274_v7, 0.0 }
 0x809   :  { %1534 = vadd.xlane.f32.xlu0 %v1533_v10 }
 0x80b   :  { %v5276_v11 = vpop.eup %5275 }
 0x80c   :  { %v5278_v12 = vpop.eup %5277  ;;  %v1542_v13 = vsel %vm77_vm0, %v5276_v11, 0.0 }
 0x80d   :  { %1543 = vadd.xlane.f32.xlu1 %v1542_v13  ;;  %v1539_v14 = vsel %vm77_vm0, %v5278_v12, 0.0 }
 0x80e   :  { %1540 = vadd.xlane.f32.xlu0 %v1539_v14 }
 0x81e   :  { %5127 = vrot.lane.b32.xlu1 %v5602_v18, %s6444_s26 }
 0x824   :  { %5122 = vrot.lane.b32.xlu0 %v5604_v20, %s6444_s26 }
 0x843   :  { %v4629_v15 = vpop.f32.mrb[20].mxu1 }
 0x844   :  { %v1299_v16 = vpop.f32.mrb[21].mxu1 }
 0x845   :  { %v1318_v17 = vpack.c.bf16 %v4629_v15, %v1299_v16 }
 0x847   :  { %v4632_v19 = vpop.f32.mrb[22].mxu1  ;;  %4635 = vmatprep.mubr.msk.bf16.mxu1 %vm375_vm1, %v1318_v17 }
 0x848   :  { %v1309_v21 = vpop.f32.mrb[23].mxu1 }
 0x849   :  { %v1319_v22 = vpack.c.bf16 %v4632_v19, %v1309_v21 }
 0x84b   :  { %4636 = vmatmul.mubr.msk.bf16.vlgmr.msra.gmra.mrb[16].mxu1 %vm375_vm1, %v1319_v22 }
 0x895   :  { %v1538_v23 = vpop.xlane.xlu1 %1537 }
 0x896   :  { %v1535_v24 = vpop.xlane.xlu0 %1534 }
 0x897   :  { %5279 = vrcp.f32 %v1535_v24 }
 0x898   :  { %5281 = vrcp.f32 %v1538_v23 }
 0x89a   :  { %v1544_v25 = vpop.xlane.xlu1 %1543 }
 0x89b   :  { %v1541_v26 = vpop.xlane.xlu0 %1540 }
 0x89c   :  { %5283 = vrcp.f32 %v1541_v26 }
 0x89d   :  { %5285 = vrcp.f32 %v1544_v25 }
 0x89e   :  { %v5128_v18 = vpop.permute.xlu1 %5127 }
 0x89f   :  { %v5123_v27 = vpop.permute.xlu0 %5122  ;;  %v5130_v20 = vunpack.i.h.bf16 %v5128_v18  ;;  %v5129_v28 = vunpack.i.l.bf16 %v5128_v18 }
 0x8a0   :  { %v5125_v29 = vunpack.i.h.bf16 %v5123_v27  ;;  %v5124_v31 = vunpack.i.l.bf16 %v5123_v27 }
 0x8a1   :  { %v5280_v33 = vpop.eup %5279  ;;  %v4949_v41 = vpack.c.bf16 %v5130_v20, %v5129_v28  ;;  %v5197_v20 = vld [vmem:[%s6432_s14] sm:$0xff]   ;;  %v5198_v28 = vld [vmem:[%s6432_s14 + $0x8] sm:$0xff]  }
 0x8a2   :  { %v4945_v38 = vpack.c.bf16 %v5125_v29, %v5124_v31  ;;  %v1549_v40 = vmul.f32 %v5280_v33, %v5274_v7  ;;  %v5282_v43 = vpop.eup %5281  ;;  %4673 = vmatprep.subr.bf16.mxu0 %v5197_v20 }
 0x8a3   :  { %v1550_v45 = vmul.f32 %v5282_v43, %v5272_v6  ;;  %4674 = vmatpush3.bf16.msra.mxu0 %v5197_v20 }
 0x8a4   :  { %4946 = vmatprep.subr.bf16.mxu1 %v4945_v38  ;;  %4661 = vmatprep.mubr.msk.f32.mxu1 %vm77_vm0, %v1549_v40 }
 0x8a5   :  { %4948 = vmatpush3.bf16.msra.mxu1 %v4945_v38  ;;  %4675 = vmatprep.subr.bf16.mxu0 %v5198_v28 }
 0x8a6   :  { %4950 = vmatprep.subr.bf16.mxu1 %v4949_v41  ;;  %v5284_v44 = vpop.eup %5283 }
 0x8a7   :  { %v5286_v63 = vpop.eup %5285  ;;  %v1551_v0 = vmul.f32 %v5284_v44, %v5278_v12  ;;  %4676 = vmatpush3.bf16.msra.mxu0 %v5198_v28 }
 0x8a8   :  { %v1552_v1 = vmul.f32 %v5286_v63, %v5276_v11 }
 0x8a9   :  { %4952 = vmatpush3.bf16.msra.mxu1 %v4949_v41 }
 0x8aa   :  { %5060 = vmatprep.subr.msk.bf16.mxu1 %vm929_vm3, %v4171_v46 }
 0x8ac   :  { %4662 = vmatmul.mubr.msk.f32.vlgmr.msra.gmra.mrb[24].mxu1 %vm77_vm0, %v1550_v45 }
 0x8ad   :  { %4664 = vmatprep.mubr.msk.f32.mxu1 %vm77_vm0, %v1551_v0  ;;  %4668 = vmatpush3.bf16.msra.mxu1 %v1673_v48  ;;  %v4175_v48 = vld [vmem:[%s6430_s12] ss:$0 sm:$0xff] }
 0x8b0   :  { %4665 = vmatmul.mubr.msk.f32.gmra.mrb[26].mxu1 %vm77_vm0, %v1552_v1 }
 0x97f   :  { %v4663_v49 = vpop.f32.mrb[24].mxu1 }
 0x980   :  { %v1643_v50 = vpop.f32.mrb[25].mxu1 }
 0x981   :  { %v1662_v39 = vpack.c.bf16 %v4663_v49, %v1643_v50 }
 0x983   :  { %v4666_v52 = vpop.f32.mrb[26].mxu1  ;;  %4669 = vmatprep.mubr.msk.bf16.mxu1 %vm375_vm1, %v1662_v39 }
 0x984   :  { %v1653_v2 = vpop.f32.mrb[27].mxu1 }
 0x985   :  { %v1663_v3 = vpack.c.bf16 %v4666_v52, %v1653_v2  ;;  %v4176_v2 = vld [vmem:[%s6431_s13] ss:$0 sm:$0xff] }
 0x987   :  { %4670 = vmatmul.mubr.msk.bf16.vlgmr.msra.gmra.mrb[16].mxu1 %vm375_vm1, %v1663_v3 }
 0xa5a   :  { %v4671_v4 = vpop.f32.mrb[16].mxu1 }
 0xa5b   :  { %v1709_v53 = vpop.f32.mrb[17].mxu1  ;;  %v1730_v59 = vadd.f32 %v5401_v58, %v4671_v4 }
 0xa5c   :  { %v1728_v55 = vadd.f32 %v5399_v54, %v1709_v53  ;;  %v4672_v56 = vpop.f32.mrb[18].mxu1 }
 0xa5d   :  { %v1731_v51 = vadd.f32 %v5400_v47, %v4672_v56  ;;  %v1712_v57 = vpop.f32.mrb[19].mxu1  ;;  %v5916_v32 = vadd.f32 %v4174_v42, %v1730_v59 }
 0xa5e   :  { %v5905_v34 = vadd.f32 %v4174_v42, %v1728_v55  ;;  %v1729_v36 = vadd.f32 %v5402_v8, %v1712_v57 }
 0xa5f   :  { %v5910_v35 = vadd.f32 %v4174_v42, %v1731_v51  ;;  %v1751_v62 = vsel %vm77_vm0, %v5916_v32, 0.0 }
 0xa60   :  { %v5912_v37 = vadd.f32 %v4174_v42, %v1729_v36  ;;  %v1745_v60 = vsel %vm77_vm0, %v5905_v34, 0.0  ;;  %v5199_v36 = vld [vmem:[%s6434_s16] sm:$0xff]  }
 0xa61   :  { %1746 = vadd.xlane.f32.xlu1 %v1745_v60  ;;  %v1754_v61 = vsel %vm77_vm0, %v5910_v35, 0.0  ;;  %4681 = vmatprep.subr.bf16.mxu0 %v5199_v36  ;;  %v5200_v60 = vld [vmem:[%s6434_s16 + $0x8] sm:$0xff]  }
 0xa62   :  { %v1748_v5 = vsel %vm77_vm0, %v5912_v37, 0.0 }
 0xa63   :  { %1749 = vadd.xlane.f32.xlu0 %v1748_v5  ;;  %v5201_v5 = vld [vmem:[%s6434_s16 + $0x10] sm:$0xff]  }
 0xa65   :  { %1755 = vadd.xlane.f32.xlu1 %v1754_v61  ;;  %v5202_v61 = vld [vmem:[%s6434_s16 + $0x18] sm:$0xff]  }
 0xa67   :  { %1752 = vadd.xlane.f32.xlu0 %v1751_v62  ;;  %v4177_v62 = vld [vmem:[%s6433_s15] ss:$0 sm:$0xff] }
 0xaee   :  { %v1747_v6 = vpop.xlane.xlu1 %1746 }
 0xaef   :  { %v1757_v7 = vmul.f32 0.03125, %v1747_v6 }
 0xaf0   :  { %v1750_v9 = vpop.xlane.xlu0 %1749 }
 0xaf1   :  { %v1761_v10 = vsub.f32 %v5905_v34, %v1757_v7  ;;  %v1758_v11 = vmul.f32 0.03125, %v1750_v9 }
 0xaf2   :  { %v1756_v12 = vpop.xlane.xlu1 %1755 }
 0xaf3   :  { %v1762_v13 = vsub.f32 %v5912_v37, %v1758_v11  ;;  %v1760_v14 = vmul.f32 0.03125, %v1756_v12  ;;  %v1765_v15 = vmul.f32 %v1761_v10, %v1761_v10 }
 0xaf4   :  { %v1753_v16 = vpop.xlane.xlu0 %1752 }
 0xaf5   :  { %v1764_v17 = vsub.f32 %v5910_v35, %v1760_v14  ;;  %v1759_v19 = vmul.f32 0.03125, %v1753_v16  ;;  %v1769_v21 = vsel %vm77_vm0, %v1765_v15, 0.0  ;;  %v1766_v22 = vmul.f32 %v1762_v13, %v1762_v13 }
 0xaf6   :  { %1770 = vadd.xlane.f32.xlu0 %v1769_v21 }
 0xaf7   :  { %v1763_v23 = vsub.f32 %v5916_v32, %v1759_v19  ;;  %v1772_v24 = vsel %vm77_vm0, %v1766_v22, 0.0  ;;  %v1768_v25 = vmul.f32 %v1764_v17, %v1764_v17 }
 0xaf8   :  { %1773 = vadd.xlane.f32.xlu1 %v1772_v24 }
 0xaf9   :  { %v1767_v26 = vmul.f32 %v1763_v23, %v1763_v23  ;;  %v1778_v18 = vsel %vm77_vm0, %v1768_v25, 0.0 }
 0xafb   :  { %v1775_v27 = vsel %vm77_vm0, %v1767_v26, 0.0 }
 0xafc   :  { %1779 = vadd.xlane.f32.xlu1 %v1778_v18  ;;  %1776 = vadd.xlane.f32.xlu0 %v1775_v27 }
 0xb83   :  { %v1771_v29 = vpop.xlane.xlu0 %1770 }
 0xb84   :  { %v1781_v31 = vmul.f32 0.03125, %v1771_v29 }
 0xb85   :  { %v1774_v33 = vpop.xlane.xlu1 %1773 }
 0xb86   :  { %v1785_v38 = vadd.f32 1e-06, %v1781_v31  ;;  %v1782_v40 = vmul.f32 0.03125, %v1774_v33 }
 0xb88   :  { %5287 = vrsqrt.f32 %v1785_v38  ;;  %v1786_v41 = vadd.f32 1e-06, %v1782_v40 }
 0xb89   :  { %v1780_v43 = vpop.xlane.xlu1 %1779  ;;  %v1777_v44 = vpop.xlane.xlu0 %1776 }
 0xb8a   :  { %5289 = vrsqrt.f32 %v1786_v41  ;;  %v1784_v45 = vmul.f32 0.03125, %v1780_v43  ;;  %v1783_v63 = vmul.f32 0.03125, %v1777_v44 }
 0xb8c   :  { %v1788_v0 = vadd.f32 1e-06, %v1784_v45  ;;  %v1787_v1 = vadd.f32 1e-06, %v1783_v63 }
 0xb8e   :  { %5291 = vrsqrt.f32 %v1788_v0 }
 0xb8f   :  { %5293 = vrsqrt.f32 %v1787_v1 }
 0xb92   :  { %v5288_v46 = vpop.eup %5287 }
 0xb93   :  { %v1793_v49 = vmul.f32 %v5288_v46, %v1761_v10 }
 0xb94   :  { %v5290_v50 = vpop.eup %5289 }
 0xb95   :  { %v1794_v39 = vmul.f32 %v5290_v50, %v1762_v13  ;;  %v1803_v52 = vmul.f32 %v4175_v48, %v1793_v49 }
 0xb97   :  { %v1804_v3 = vmul.f32 %v4175_v48, %v1794_v39  ;;  %v1813_v54 = vadd.f32 %v4176_v2, %v1803_v52 }
 0xb98   :  { %v5292_v4 = vpop.eup %5291 }
 0xb99   :  { %v5294_v42 = vpop.eup %5293  ;;  %v1796_v53 = vmul.f32 %v5292_v4, %v1764_v17  ;;  %v1814_v55 = vadd.f32 %v4176_v2, %v1804_v3 }
 0xb9a   :  { %v1795_v56 = vmul.f32 %v5294_v42, %v1763_v23 }
 0xb9b   :  { %v1806_v47 = vmul.f32 %v4175_v48, %v1796_v53  ;;  %v1817_v51 = vpack.c.bf16 %v1814_v55, %v1813_v54  ;;  %v4182_v55 = vld [vmem:[%s6435_s17] ss:$0 sm:$0xff] }
 0xb9c   :  { %v1805_v57 = vmul.f32 %v4175_v48, %v1795_v56 }
 0xb9d   :  { %v1816_v58 = vadd.f32 %v4176_v2, %v1806_v47  ;;  %4677 = vmatprep.mubr.msk.bf16.mxu0 %vm77_vm0, %v1817_v51 }
 0xb9e   :  { %v1815_v59 = vadd.f32 %v4176_v2, %v1805_v57 }
 0xba0   :  { %v1818_v8 = vpack.c.bf16 %v1816_v58, %v1815_v59 }
 0xba2   :  { %4678 = vmatmul.mubr.msk.bf16.vlgmr.msra.gmra.mrb[20].mxu0 %vm77_vm0, %v1818_v8 }
 0xba3   :  { %4682 = vmatpush3.bf16.msra.mxu0 %v5199_v36 }
 0xba4   :  { %4683 = vmatprep.subr.bf16.mxu0 %v5200_v60 }
 0xba7   :  { %4684 = vmatpush3.bf16.msra.mxu0 %v5200_v60 }
 0xba8   :  { %4685 = vmatprep.subr.bf16.mxu0 %v5201_v5 }
 0xbab   :  { %4686 = vmatpush3.bf16.msra.mxu0 %v5201_v5 }
 0xbac   :  { %4687 = vmatprep.subr.bf16.mxu0 %v5202_v61 }
 0xbaf   :  { %4688 = vmatpush3.bf16.msra.mxu0 %v5202_v61 }
 0xc75   :  { %v4679_v6 = vpop.f32.mrb[20].mxu0 }
 0xc76   :  { %v1891_v7 = vadd.f32 %v4679_v6, %v4177_v62  ;;  %v1882_v9 = vpop.f32.mrb[21].mxu0 }
 0xc77   :  { %v1883_v10 = vadd.f32 %v4177_v62, %v1882_v9  ;;  %v4680_v11 = vpop.f32.mrb[22].mxu0 }
 0xc78   :  { %v1903_v12 = vmul.f32 %v1891_v7, %v1891_v7  ;;  %v1894_v13 = vadd.f32 %v4680_v11, %v4177_v62  ;;  %v1885_v14 = vpop.f32.mrb[23].mxu0  ;;  %v1899_v46 = vmul.f32 0.5, %v1891_v7 }
 0xc79   :  { %v1901_v15 = vmul.f32 %v1883_v10, %v1883_v10  ;;  %v1886_v16 = vadd.f32 %v4177_v62, %v1885_v14  ;;  %v1897_v50 = vmul.f32 0.5, %v1883_v10 }
 0xc7a   :  { %v1907_v17 = vmul.f32 %v1903_v12, %v1891_v7  ;;  %v1904_v19 = vmul.f32 %v1894_v13, %v1894_v13  ;;  %v1900_v48 = vmul.f32 0.5, %v1894_v13 }
 0xc7b   :  { %v1905_v21 = vmul.f32 %v1901_v15, %v1883_v10  ;;  %v1902_v22 = vmul.f32 %v1886_v16, %v1886_v16  ;;  %v1898_v39 = vmul.f32 0.5, %v1886_v16 }
 0xc7c   :  { %v1911_v23 = vmul.f32 0.044715, %v1907_v17  ;;  %v1908_v24 = vmul.f32 %v1904_v19, %v1894_v13 }
 0xc7d   :  { %v1909_v25 = vmul.f32 0.044715, %v1905_v21  ;;  %v1906_v26 = vmul.f32 %v1902_v22, %v1886_v16 }
 0xc7e   :  { %v1915_v18 = vadd.f32 %v1911_v23, %v1891_v7  ;;  %v1912_v27 = vmul.f32 0.044715, %v1908_v24 }
 0xc7f   :  { %v1913_v20 = vadd.f32 %v1909_v25, %v1883_v10  ;;  %v1910_v28 = vmul.f32 0.044715, %v1906_v26 }
 0xc80   :  { %v1919_v29 = vmul.f32 0.7978846, %v1915_v18  ;;  %v1916_v31 = vadd.f32 %v1912_v27, %v1894_v13 }
 0xc81   :  { %v1917_v33 = vmul.f32 0.7978846, %v1913_v20  ;;  %v1914_v38 = vadd.f32 %v1910_v28, %v1886_v16  ;;  %v5203_v20 = vld [vmem:[%s6452_s29 + $0x10] sm:$0xff]  }
 0xc82   :  { %5295 = vtanh.f32 %v1919_v29  ;;  %v1920_v40 = vmul.f32 0.7978846, %v1916_v31  ;;  %v5204_v28 = vld [vmem:[%s6426_s8 + $0x10] sm:$0xff]   ;;  %4693 = vmatprep.subr.bf16.mxu1 %v5203_v20  ;;  %v5205_v29 = vld [vmem:[%s6452_s29 + $0x18] sm:$0xff]  }
 0xc83   :  { %5297 = vtanh.f32 %v1917_v33  ;;  %v1918_v41 = vmul.f32 0.7978846, %v1914_v38  ;;  %4709 = vmatprep.subr.bf16.mxu0 %v5204_v28  ;;  %4694 = vmatpush3.bf16.msra.mxu1 %v5203_v20  ;;  %v5206_v31 = vld [vmem:[%s6426_s8 + $0x18] sm:$0xff]   ;;  %v5207_v33 = vld [vmem:[%s6424_s6 + $0x10] sm:$0xff]  }
 0xc84   :  { %5299 = vtanh.f32 %v1920_v40  ;;  %4695 = vmatprep.subr.bf16.mxu1 %v5205_v29 }
 0xc85   :  { %5301 = vtanh.f32 %v1918_v41 }
 0xc87   :  { %4696 = vmatpush3.bf16.msra.mxu1 %v5205_v29 }
 0xc88   :  { %4701 = vmatprep.subr.bf16.mxu1 %v5207_v33 }
 0xc8c   :  { %v5296_v43 = vpop.eup %5295 }
 0xc8d   :  { %v5298_v44 = vpop.eup %5297  ;;  %v1927_v45 = vadd.f32 1.0, %v5296_v43 }
 0xc8e   :  { %v5300_v63 = vpop.eup %5299  ;;  %v1925_v0 = vadd.f32 1.0, %v5298_v44 }
 0xc8f   :  { %v5302_v1 = vpop.eup %5301  ;;  %v1928_v49 = vadd.f32 1.0, %v5300_v63  ;;  %v1931_v2 = vmul.f32 %v1927_v45, %v1899_v46 }
 0xc90   :  { %v1926_v52 = vadd.f32 1.0, %v5302_v1  ;;  %v1929_v4 = vmul.f32 %v1925_v0, %v1897_v50 }
 0xc91   :  { %v1932_v3 = vmul.f32 %v1928_v49, %v1900_v48 }
 0xc92   :  { %v1930_v42 = vmul.f32 %v1926_v52, %v1898_v39  ;;  %v4191_v39 = vld [vmem:[%s6453_s27 + $0x1] ss:$0 sm:$0xff] }
 0xc93   :  { %v1934_v53 = vpack.c.bf16 %v1932_v3, %v1931_v2 }
 0xc94   :  { %v1933_v54 = vpack.c.bf16 %v1930_v42, %v1929_v4 }
 0xc96   :  { %4689 = vmatprep.mubr.msk.bf16.mxu0 %vm1974_vm4, %v1933_v54 }
 0xc97   :  { %4690 = vmatmul.mubr.msk.bf16.vlgmr.msra.gmra.mrb[24].mxu0 %vm1974_vm4, %v1934_v53  ;;  %v4192_v53 = vld [vmem:[%s6454_s30 + $0x1] ss:$0 sm:$0xff] }
 0xc98   :  { %4710 = vmatpush3.bf16.msra.mxu0 %v5204_v28 }
 0xc99   :  { %4711 = vmatprep.subr.bf16.mxu0 %v5206_v31 }
 0xc9c   :  { %4712 = vmatpush3.bf16.msra.mxu0 %v5206_v31 }
 0xd6a   :  { %v4691_v56 = vpop.f32.mrb[24].mxu0 }
 0xd6b   :  { %v2015_v47 = vpop.f32.mrb[25].mxu0  ;;  %v2024_v51 = vadd.f32 %v4691_v56, %v4182_v55 }
 0xd6c   :  { %v2016_v57 = vadd.f32 %v4182_v55, %v2015_v47  ;;  %v4692_v58 = vpop.f32.mrb[26].mxu0 }
 0xd6d   :  { %v2018_v59 = vpop.f32.mrb[27].mxu0  ;;  %v2027_v36 = vadd.f32 %v4692_v58, %v4182_v55  ;;  %v5970_v5 = vadd.f32 %v2024_v51, %v5916_v32 }
 0xd6e   :  { %v5967_v8 = vadd.f32 %v2016_v57, %v5905_v34  ;;  %v2019_v60 = vadd.f32 %v4182_v55, %v2018_v59 }
 0xd6f   :  { %v5978_v6 = vadd.f32 %v2027_v36, %v5910_v35  ;;  %v2044_v34 = vsel %vm77_vm0, %v5970_v5, 0.0 }
 0xd70   :  { %v5973_v61 = vadd.f32 %v2019_v60, %v5912_v37  ;;  %v2038_v62 = vsel %vm77_vm0, %v5967_v8, 0.0 }
 0xd71   :  { %2039 = vadd.xlane.f32.xlu0 %v2038_v62  ;;  %v2047_v32 = vsel %vm77_vm0, %v5978_v6, 0.0 }
 0xd72   :  { %v2041_v7 = vsel %vm77_vm0, %v5973_v61, 0.0 }
 0xd73   :  { %2042 = vadd.xlane.f32.xlu1 %v2041_v7 }
 0xd75   :  { %2045 = vadd.xlane.f32.xlu0 %v2044_v34  ;;  %v5208_v34 = vld [vmem:[%s6424_s6 + $0x18] sm:$0xff]  }
 0xd77   :  { %2048 = vadd.xlane.f32.xlu1 %v2047_v32  ;;  %v4198_v32 = vld [vmem:[%s6423_s5 + $0x1] ss:$0 sm:$0xff] }
 0xdfe   :  { %v2040_v37 = vpop.xlane.xlu0 %2039 }
 0xdff   :  { %v2050_v9 = vmul.f32 0.03125, %v2040_v37 }
 0xe00   :  { %v2043_v10 = vpop.xlane.xlu1 %2042 }
 0xe01   :  { %v2054_v11 = vsub.f32 %v5967_v8, %v2050_v9  ;;  %v2051_v12 = vmul.f32 0.03125, %v2043_v10  ;;  %v4218_v10 = vld [vmem:[%s6427_s9 + $0x1] ss:$0 sm:$0xff] }
 0xe02   :  { %v2046_v35 = vpop.xlane.xlu0 %2045 }
 0xe03   :  { %v2055_v13 = vsub.f32 %v5973_v61, %v2051_v12  ;;  %v2052_v14 = vmul.f32 0.03125, %v2046_v35  ;;  %v2058_v15 = vmul.f32 %v2054_v11, %v2054_v11 }
 0xe04   :  { %v2049_v16 = vpop.xlane.xlu1 %2048 }
 0xe05   :  { %v2056_v17 = vsub.f32 %v5970_v5, %v2052_v14  ;;  %v2053_v19 = vmul.f32 0.03125, %v2049_v16  ;;  %v2062_v21 = vsel %vm77_vm0, %v2058_v15, 0.0  ;;  %v2059_v22 = vmul.f32 %v2055_v13, %v2055_v13 }
 0xe06   :  { %2063 = vadd.xlane.f32.xlu0 %v2062_v21 }
 0xe07   :  { %v2057_v23 = vsub.f32 %v5978_v6, %v2053_v19  ;;  %v2065_v24 = vsel %vm77_vm0, %v2059_v22, 0.0  ;;  %v2060_v25 = vmul.f32 %v2056_v17, %v2056_v17 }
 0xe08   :  { %2066 = vadd.xlane.f32.xlu1 %v2065_v24 }
 0xe09   :  { %v2068_v26 = vsel %vm77_vm0, %v2060_v25, 0.0  ;;  %v2061_v18 = vmul.f32 %v2057_v23, %v2057_v23 }
 0xe0a   :  { %2069 = vadd.xlane.f32.xlu0 %v2068_v26 }
 0xe0b   :  { %v2071_v27 = vsel %vm77_vm0, %v2061_v18, 0.0 }
 0xe0c   :  { %2072 = vadd.xlane.f32.xlu1 %v2071_v27  ;;  %v4208_v27 = vld [vmem:[%s6425_s7 + $0x1] ss:$0 sm:$0xff] }
 0xe93   :  { %v2064_v38 = vpop.xlane.xlu0 %2063 }
 0xe94   :  { %v2074_v40 = vmul.f32 0.03125, %v2064_v38 }
 0xe95   :  { %v2067_v41 = vpop.xlane.xlu1 %2066 }
 0xe96   :  { %v2078_v43 = vadd.f32 1e-06, %v2074_v40  ;;  %v2075_v44 = vmul.f32 0.03125, %v2067_v41 }
 0xe97   :  { %v2070_v45 = vpop.xlane.xlu0 %2069 }
 0xe98   :  { %5303 = vrsqrt.f32 %v2078_v43  ;;  %v2079_v63 = vadd.f32 1e-06, %v2075_v44  ;;  %v2076_v0 = vmul.f32 0.03125, %v2070_v45 }
 0xe99   :  { %v2073_v1 = vpop.xlane.xlu1 %2072 }
 0xe9a   :  { %5305 = vrsqrt.f32 %v2079_v63  ;;  %v2080_v46 = vadd.f32 1e-06, %v2076_v0  ;;  %v2077_v48 = vmul.f32 0.03125, %v2073_v1 }
 0xe9c   :  { %5307 = vrsqrt.f32 %v2080_v46  ;;  %v2081_v49 = vadd.f32 1e-06, %v2077_v48 }
 0xe9e   :  { %5309 = vrsqrt.f32 %v2081_v49 }
 0xea2   :  { %v5304_v50 = vpop.eup %5303 }
 0xea3   :  { %v2086_v52 = vmul.f32 %v5304_v50, %v2054_v11 }
 0xea4   :  { %v5306_v2 = vpop.eup %5305 }
 0xea5   :  { %v2087_v3 = vmul.f32 %v5306_v2, %v2055_v13  ;;  %v2096_v4 = vmul.f32 %v4191_v39, %v2086_v52 }
 0xea6   :  { %v5308_v42 = vpop.eup %5307 }
 0xea7   :  { %v2088_v54 = vmul.f32 %v5308_v42, %v2056_v17  ;;  %v2097_v55 = vmul.f32 %v4191_v39, %v2087_v3  ;;  %v2106_v57 = vadd.f32 %v4192_v53, %v2096_v4  ;;  %v6074_v3 = vld [vmem:[%s6457_s4] sm:$0xff] }
 0xea8   :  { %v5310_v56 = vpop.eup %5309 }
 0xea9   :  { %v2098_v47 = vmul.f32 %v4191_v39, %v2088_v54  ;;  %v2089_v51 = vmul.f32 %v5310_v56, %v2057_v23  ;;  %v2107_v58 = vadd.f32 %v4192_v53, %v2097_v55 }
 0xeab   :  { %v2099_v59 = vmul.f32 %v4191_v39, %v2089_v51  ;;  %v2110_v36 = vpack.c.bf16 %v2107_v58, %v2106_v57  ;;  %v2108_v60 = vadd.f32 %v4192_v53, %v2098_v47  ;;  %v6068_v39 = vld [vmem:[%s6457_s4 + $0x8] sm:$0xff]  ;;  %v6082_v47 = vld [vmem:[%s6457_s4 + $0x18] sm:$0xff]  ;;  %v6088_v57 = vld [vmem:[%s6457_s4 + $0x10] sm:$0xff]  ;;  %s6458_s4 = smov 104  }
 0xead   :  { %4697 = vmatprep.mubr.msk.bf16.mxu1 %vm77_vm0, %v2110_v36  ;;  %4713 = vmatprep.mubr.msk.bf16.mxu0 %vm77_vm0, %v2110_v36  ;;  %v2109_v62 = vadd.f32 %v4192_v53, %v2099_v59 }
 0xeaf   :  { %v2111_v7 = vpack.c.bf16 %v2109_v62, %v2108_v60 }
 0xeb1   :  { %4698 = vmatmul.mubr.msk.bf16.vlgmr.msra.gmra.mrb[28].mxu1 %vm77_vm0, %v2111_v7  ;;  %4714 = vmatmul.mubr.msk.bf16.vlgmr.msra.gmra.mrb[28].mxu0 %vm77_vm0, %v2111_v7 }
 0xeb2   :  { %4702 = vmatpush3.bf16.msra.mxu1 %v5207_v33  ;;  %4705 = vmatprep.mubr.msk.bf16.mxu1 %vm77_vm0, %v2110_v36 }
 0xeb3   :  { %4703 = vmatprep.subr.bf16.mxu1 %v5208_v34 }
 0xeb6   :  { %4704 = vmatpush3.bf16.msra.mxu1 %v5208_v34 }
 0xeb9   :  { %4706 = vmatmul.mubr.msk.bf16.vlgmr.msra.gmra.mrb[32].mxu1 %vm77_vm0, %v2111_v7 }
 0xf84   :  { %v4699_v37 = vpop.f32.mrb[28].mxu1  ;;  %v4715_v9 = vpop.f32.mrb[28].mxu0 }
 0xf85   :  { %v2177_v11 = vpop.f32.mrb[29].mxu1  ;;  %v2325_v12 = vpop.f32.mrb[29].mxu0  ;;  %v2334_v15 = vadd.f32 %v4715_v9, %v4218_v10  ;;  %v6055_v0 = vadd.f32 %v4699_v37, %v4198_v32 }
 0xf86   :  { %v6030_v35 = vadd.f32 %v4198_v32, %v2177_v11  ;;  %v4700_v13 = vpop.f32.mrb[30].mxu1  ;;  %v4716_v14 = vpop.f32.mrb[30].mxu0  ;;  %v2326_v21 = vadd.f32 %v4218_v10, %v2325_v12 }
 0xf87   :  { %v2337_v16 = vadd.f32 %v4716_v14, %v4218_v10  ;;  %v2180_v17 = vpop.f32.mrb[31].mxu1  ;;  %v2328_v19 = vpop.f32.mrb[31].mxu0  ;;  %v6061_v1 = vadd.f32 %v4700_v13, %v4198_v32 }
 0xf88   :  { %v2329_v22 = vadd.f32 %v4218_v10, %v2328_v19  ;;  %4725 = vmatprep.mubr.msk.f32.mxu1 %vm375_vm1, %v6030_v35  ;;  %v6053_v63 = vadd.f32 %v4198_v32, %v2180_v17 }
 0xf89   :  { %v4969_v23 = vpack.c.bf16 %v2337_v16, %v2334_v15  ;;  %v6034_v24 = vpack.i.bf16 %v2337_v16, %v2334_v15 }
 0xf8a   :  { %v4965_v25 = vpack.c.bf16 %v2329_v22, %v2326_v21  ;;  %v6036_v26 = vpack.i.bf16 %v2329_v22, %v2326_v21 }
 0xf8c   :  { %v4707_v18 = vpop.f32.mrb[32].mxu1  ;;  %4966 = vmatprep.subr.bf16.mxu0 %v4965_v25 }
 0xf8d   :  { %v2251_v20 = vpop.f32.mrb[33].mxu1  ;;  %4968 = vmatpush3.bf16.msra.mxu0 %v4965_v25  ;;  %v2260_v29 = vadd.f32 %v4707_v18, %v4208_v27 }
 0xf8e   :  { %v4708_v28 = vpop.f32.mrb[34].mxu1  ;;  %4970 = vmatprep.subr.bf16.mxu0 %v4969_v23  ;;  %v2252_v38 = vadd.f32 %v4208_v27, %v2251_v20 }
 0xf8f   :  { %v2263_v31 = vadd.f32 %v4708_v28, %v4208_v27  ;;  %v2254_v33 = vpop.f32.mrb[35].mxu1 }
 0xf90   :  { %v2255_v40 = vadd.f32 %v4208_v27, %v2254_v33 }
 0xf91   :  { %4972 = vmatpush3.bf16.msra.mxu0 %v4969_v23  ;;  %v4959_v41 = vpack.c.bf16 %v2263_v31, %v2260_v29  ;;  %v6041_v43 = vpack.i.bf16 %v2263_v31, %v2260_v29 }
 0xf92   :  { %v4953_v44 = vpack.c.bf16 %v2255_v40, %v2252_v38  ;;  %v6043_v45 = vpack.i.bf16 %v2255_v40, %v2252_v38 }
 0xf94   :  { %4955 = vmatprep.subr.msk.bf16.mxu1 %vm5611_vm2, %v4953_v44 }
 0xf95   :  { %4958 = vmatpush3.bf16.xpose.msk.msra.mxu1 %vm5611_vm2, %v4953_v44 }
 0xf96   :  { %4961 = vmatprep.subr.msk.bf16.mxu1 %vm5611_vm2, %v4959_v41 }
 0xf9d   :  { %4964 = vmatpush3.bf16.xpose.msk.msra.mxu1 %vm5611_vm2, %v4959_v41 }
 0xfa4   :  { %4726 = vmatmul.mubr.msk.f32.vlgmr.msra.gmra.mrb[36].mxu1 %vm375_vm1, %v6053_v63 }
 0xfa5   :  { %4728 = vmatprep.mubr.msk.f32.mxu1 %vm375_vm1, %v6055_v0 }
 0xfa8   :  { %4729 = vmatmul.mubr.msk.f32.gmra.mrb[38].mxu1 %vm375_vm1, %v6061_v1 }
0x1077   :  { %v4727_v46 = vpop.f32.mrb[36].mxu1 }
0x1078   :  { %v2450_v48 = vmul.f32 0.35355338, %v4727_v46  ;;  %v2430_v49 = vpop.f32.mrb[37].mxu1 }
0x1079   :  { %v2449_v50 = vmul.f32 0.35355338, %v2430_v49 }
0x107a   :  { %v2454_v52 = vadd.f32 %v6068_v39, %v2450_v48 }
0x107b   :  { %v4730_v2 = vpop.f32.mrb[38].mxu1  ;;  %v2453_v4 = vadd.f32 %v6074_v3, %v2449_v50 }
0x107c   :  { %v2452_v42 = vmul.f32 0.35355338, %v4730_v2  ;;  %v2440_v53 = vpop.f32.mrb[39].mxu1  ;;  %v2460_v54 = vsel %vm77_vm0, %v2454_v52, -inf }
0x107d   :  { %v2451_v55 = vmul.f32 0.35355338, %v2440_v53  ;;  %2461 = vmax.xlane.f32.xlu1 %v2460_v54  ;;  %v2457_v56 = vsel %vm77_vm0, %v2453_v4, -inf }
0x107e   :  { %2458 = vmax.xlane.f32.xlu0 %v2457_v56  ;;  %v2456_v51 = vadd.f32 %v6082_v47, %v2452_v42 }
0x107f   :  { %v2455_v58 = vadd.f32 %v6088_v57, %v2451_v55 }
0x1080   :  { %v2466_v59 = vsel %vm77_vm0, %v2456_v51, -inf }
0x1081   :  { %2467 = vmax.xlane.f32.xlu1 %v2466_v59  ;;  %v2463_v36 = vsel %vm77_vm0, %v2455_v58, -inf }
0x1082   :  { %2464 = vmax.xlane.f32.xlu0 %v2463_v36 }
0x110a   :  { %v2462_v60 = vpop.xlane.xlu1 %2461 }
0x110b   :  { %v2470_v62 = vsub.f32 %v2454_v52, %v2462_v60  ;;  %v2459_v7 = vpop.xlane.xlu0 %2458 }
0x110c   :  { %v2469_v34 = vsub.f32 %v2453_v4, %v2459_v7 }
0x110d   :  { %v2475_v32 = vmul.f32 1.442695, %v2470_v62 }
0x110e   :  { %v2473_v37 = vmul.f32 1.442695, %v2469_v34  ;;  %v2468_v9 = vpop.xlane.xlu1 %2467 }
0x110f   :  { %5311 = vpow2.f32 %v2475_v32  ;;  %v2472_v10 = vsub.f32 %v2456_v51, %v2468_v9  ;;  %v2465_v11 = vpop.xlane.xlu0 %2464 }
0x1110   :  { %5313 = vpow2.f32 %v2473_v37  ;;  %v2471_v12 = vsub.f32 %v2455_v58, %v2465_v11 }
0x1111   :  { %v2479_v13 = vmul.f32 1.442695, %v2472_v10 }
0x1112   :  { %v2477_v14 = vmul.f32 1.442695, %v2471_v12 }
0x1113   :  { %5315 = vpow2.f32 %v2479_v13 }
0x1114   :  { %5317 = vpow2.f32 %v2477_v14 }
0x1119   :  { %v5312_v15 = vpop.eup %5311 }
0x111a   :  { %v5314_v16 = vpop.eup %5313  ;;  %v2484_v17 = vsel %vm77_vm0, %v5312_v15, 0.0 }
0x111b   :  { %2485 = vadd.xlane.f32.xlu1 %v2484_v17  ;;  %v2481_v19 = vsel %vm77_vm0, %v5314_v16, 0.0 }
0x111c   :  { %2482 = vadd.xlane.f32.xlu0 %v2481_v19 }
0x111d   :  { %v5316_v21 = vpop.eup %5315 }
0x111e   :  { %v5318_v22 = vpop.eup %5317  ;;  %v2490_v23 = vsel %vm77_vm0, %v5316_v21, 0.0 }
0x111f   :  { %2491 = vadd.xlane.f32.xlu1 %v2490_v23  ;;  %v2487_v25 = vsel %vm77_vm0, %v5318_v22, 0.0 }
0x1120   :  { %2488 = vadd.xlane.f32.xlu0 %v2487_v25 }
0x1130   :  { %5137 = vrot.lane.b32.xlu1 %v6041_v43, %s5431_s25 }
0x1134   :  { %2602 = vrot.lane.b32.xlu1 %v6030_v35, %s5431_s25 }
0x1136   :  { %5132 = vrot.lane.b32.xlu0 %v6043_v45, %s5431_s25 }
0x1138   :  { %2604 = vrot.lane.b32.xlu1 %v6053_v63, %s5431_s25 }
0x113a   :  { %2606 = vrot.lane.b32.xlu0 %v6055_v0, %s5431_s25 }
0x113c   :  { %2608 = vrot.lane.b32.xlu1 %v6061_v1, %s5431_s25 }
0x113e   :  { %5142 = vrot.lane.b32.xlu0 %v6043_v45, %s5432_s3 }
0x1140   :  { %5147 = vrot.lane.b32.xlu1 %v6041_v43, %s5432_s3 }
0x1142   :  { %3004 = vrot.lane.b32.xlu0 %v6030_v35, %s5432_s3 }
0x1144   :  { %3006 = vrot.lane.b32.xlu1 %v6053_v63, %s5432_s3 }
0x1146   :  { %3008 = vrot.lane.b32.xlu0 %v6055_v0, %s5432_s3 }
0x1148   :  { %3010 = vrot.lane.b32.xlu1 %v6061_v1, %s5432_s3 }
0x11a8   :  { %v2486_v18 = vpop.xlane.xlu1 %2485 }
0x11a9   :  { %5319 = vrcp.f32 %v2486_v18  ;;  %v2483_v27 = vpop.xlane.xlu0 %2482 }
0x11aa   :  { %5321 = vrcp.f32 %v2483_v27 }
0x11ac   :  { %v2492_v20 = vpop.xlane.xlu1 %2491 }
0x11ad   :  { %5323 = vrcp.f32 %v2492_v20  ;;  %v2489_v28 = vpop.xlane.xlu0 %2488 }
0x11ae   :  { %5325 = vrcp.f32 %v2489_v28 }
0x11b0   :  { %v5138_v29 = vpop.permute.xlu1 %5137 }
0x11b1   :  { %v5133_v31 = vpop.permute.xlu0 %5132  ;;  %v5140_v44 = vunpack.i.h.bf16 %v5138_v29  ;;  %v5139_v46 = vunpack.i.l.bf16 %v5138_v29 }
0x11b2   :  { %v5135_v33 = vunpack.i.h.bf16 %v5133_v31  ;;  %v5134_v38 = vunpack.i.l.bf16 %v5133_v31 }
0x11b3   :  { %v5320_v40 = vpop.eup %5319  ;;  %v4979_v53 = vpack.c.bf16 %v5140_v44, %v5139_v46 }
0x11b4   :  { %v5322_v41 = vpop.eup %5321  ;;  %v4973_v48 = vpack.c.bf16 %v5135_v33, %v5134_v38  ;;  %v2603_v49 = vpop.permute.xlu1 %2602  ;;  %v2498_v2 = vmul.f32 %v5320_v40, %v5312_v15 }
0x11b5   :  { %v2607_v50 = vpop.permute.xlu0 %2606  ;;  %v2497_v52 = vmul.f32 %v5322_v41, %v5314_v16 }
0x11b6   :  { %4975 = vmatprep.subr.msk.bf16.mxu0 %vm5611_vm2, %v4973_v48 }
0x11b7   :  { %v5324_v4 = vpop.eup %5323  ;;  %4739 = vmatprep.mubr.msk.f32.mxu0 %vm77_vm0, %v2497_v52 }
0x11b8   :  { %v5326_v42 = vpop.eup %5325  ;;  %v2605_v54 = vpop.permute.xlu1 %2604  ;;  %4740 = vmatmul.mubr.msk.f32.vlgmr.msra.gmra.mrb[32].mxu0 %vm77_vm0, %v2498_v2  ;;  %v2500_v51 = vmul.f32 %v5324_v4, %v5316_v21 }
0x11b9   :  { %4978 = vmatpush3.bf16.xpose.msk.msra.mxu0 %vm5611_vm2, %v4973_v48  ;;  %v5143_v55 = vpop.permute.xlu0 %5142  ;;  %v2499_v56 = vmul.f32 %v5326_v42, %v5318_v22 }
0x11ba   :  { %4981 = vmatprep.subr.msk.bf16.mxu0 %vm5611_vm2, %v4979_v53  ;;  %v5145_v58 = vunpack.i.h.bf16 %v5143_v55  ;;  %v5144_v59 = vunpack.i.l.bf16 %v5143_v55 }
0x11bb   :  { %4742 = vmatprep.mubr.msk.f32.mxu0 %vm77_vm0, %v2499_v56 }
0x11bc   :  { %v2609_v36 = vpop.permute.xlu1 %2608  ;;  %4743 = vmatmul.mubr.msk.f32.gmra.mrb[34].mxu0 %vm77_vm0, %v2500_v51  ;;  %v4993_v60 = vpack.c.bf16 %v5145_v58, %v5144_v59 }
0x11bd   :  { %4753 = vmatprep.mubr.msk.f32.mxu0 %vm375_vm1, %v2603_v49  ;;  %v3005_v37 = vpop.permute.xlu0 %3004 }
0x11c0   :  { %v5148_v62 = vpop.permute.xlu1 %5147 }
0x11c1   :  { %4984 = vmatpush3.bf16.xpose.msk.msra.mxu0 %vm5611_vm2, %v4979_v53  ;;  %v5150_v7 = vunpack.i.h.bf16 %v5148_v62  ;;  %v5149_v34 = vunpack.i.l.bf16 %v5148_v62  ;;  %v3009_v10 = vpop.permute.xlu0 %3008 }
0x11c2   :  { %4995 = vmatprep.subr.msk.bf16.mxu0 %vm5611_vm2, %v4993_v60 }
0x11c3   :  { %v4999_v32 = vpack.c.bf16 %v5150_v7, %v5149_v34 }
0x11c4   :  { %v3007_v9 = vpop.permute.xlu1 %3006 }
0x11c8   :  { %4754 = vmatmul.mubr.msk.f32.vlgmr.msra.gmra.mrb[36].mxu0 %vm375_vm1, %v2605_v54  ;;  %v3011_v11 = vpop.permute.xlu1 %3010 }
0x11c9   :  { %4756 = vmatprep.mubr.msk.f32.mxu0 %vm375_vm1, %v2607_v50  ;;  %4998 = vmatpush3.bf16.xpose.msk.msra.mxu0 %vm5611_vm2, %v4993_v60 }
0x11ca   :  { %5001 = vmatprep.subr.msk.bf16.mxu0 %vm5611_vm2, %v4999_v32 }
0x11cc   :  { %4757 = vmatmul.mubr.msk.f32.gmra.mrb[38].mxu0 %vm375_vm1, %v2609_v36 }
0x11cd   :  { %4793 = vmatprep.mubr.msk.f32.mxu0 %vm375_vm1, %v3005_v37 }
0x11d1   :  { %5004 = vmatpush3.bf16.xpose.msk.msra.mxu0 %vm5611_vm2, %v4999_v32 }
0x11d8   :  { %4794 = vmatmul.mubr.msk.f32.vlgmr.msra.gmra.mrb[40].mxu0 %vm375_vm1, %v3007_v9 }
0x11d9   :  { %4796 = vmatprep.mubr.msk.f32.mxu0 %vm375_vm1, %v3009_v10 }
0x11dc   :  { %4797 = vmatmul.mubr.msk.f32.gmra.mrb[42].mxu0 %vm375_vm1, %v3011_v11 }
0x128b   :  { %v6149_v12 = vpop.f32.mrb[32].mxu0 }
0x128c   :  { %v6151_v13 = vpop.f32.mrb[33].mxu0 }
0x128d   :  { %v2598_v14 = vpack.c.bf16 %v6149_v12, %v6151_v13 }
0x128f   :  { %v6155_v15 = vpop.f32.mrb[34].mxu0 }
0x1290   :  { %v6157_v16 = vpop.f32.mrb[35].mxu0 }
0x1291   :  { %v2599_v17 = vpack.c.bf16 %v6155_v15, %v6157_v16 }
0x129b   :  { %v4755_v19 = vpop.f32.mrb[36].mxu0 }
0x129c   :  { %v2720_v21 = vmul.f32 0.35355338, %v4755_v19  ;;  %v2700_v22 = vpop.f32.mrb[37].mxu0 }
0x129d   :  { %v2719_v23 = vmul.f32 0.35355338, %v2700_v22 }
0x129e   :  { %v2724_v25 = vadd.f32 %v6068_v39, %v2720_v21 }
0x129f   :  { %v2723_v18 = vadd.f32 %v6074_v3, %v2719_v23  ;;  %v4758_v27 = vpop.f32.mrb[38].mxu0 }
0x12a0   :  { %v2710_v20 = vpop.f32.mrb[39].mxu0  ;;  %v2730_v28 = vsel %vm77_vm0, %v2724_v25, -inf  ;;  %v2722_v29 = vmul.f32 0.35355338, %v4758_v27 }
0x12a1   :  { %v2721_v31 = vmul.f32 0.35355338, %v2710_v20  ;;  %2731 = vmax.xlane.f32.xlu1 %v2730_v28  ;;  %v2727_v33 = vsel %vm77_vm0, %v2723_v18, -inf }
0x12a2   :  { %2728 = vmax.xlane.f32.xlu0 %v2727_v33  ;;  %v2726_v40 = vadd.f32 %v6082_v47, %v2722_v29 }
0x12a3   :  { %v2725_v38 = vadd.f32 %v6088_v57, %v2721_v31 }
0x12a4   :  { %v2736_v44 = vsel %vm77_vm0, %v2726_v40, -inf }
0x12a5   :  { %v2733_v41 = vsel %vm77_vm0, %v2725_v38, -inf }
0x12a6   :  { %2734 = vmax.xlane.f32.xlu0 %v2733_v41 }
0x12aa   :  { %2737 = vmax.xlane.f32.xlu0 %v2736_v44 }
0x12ab   :  { %v4795_v46 = vpop.f32.mrb[40].mxu0 }
0x12ac   :  { %v3102_v48 = vpop.f32.mrb[41].mxu0 }
0x12ad   :  { %v3121_v11 = vmul.f32 0.35355338, %v3102_v48 }
0x12af   :  { %v4798_v49 = vpop.f32.mrb[42].mxu0  ;;  %v6199_v19 = vadd.f32 %v6074_v3, %v3121_v11 }
0x12b0   :  { %v3112_v50 = vpop.f32.mrb[43].mxu0  ;;  %v3124_v21 = vmul.f32 0.35355338, %v4798_v49 }
0x12b2   :  { %v6207_v22 = vadd.f32 %v6082_v47, %v3124_v21 }
0x12b4   :  { %v3138_v23 = vsel %vm77_vm0, %v6207_v22, -inf }
0x132e   :  { %v2732_v52 = vpop.xlane.xlu1 %2731 }
0x132f   :  { %v2740_v2 = vsub.f32 %v2724_v25, %v2732_v52  ;;  %v2729_v4 = vpop.xlane.xlu0 %2728 }
0x1330   :  { %v2739_v42 = vsub.f32 %v2723_v18, %v2729_v4 }
0x1331   :  { %v2745_v53 = vmul.f32 1.442695, %v2740_v2 }
0x1332   :  { %v2743_v54 = vmul.f32 1.442695, %v2739_v42 }
0x1333   :  { %5327 = vpow2.f32 %v2745_v53  ;;  %v2735_v55 = vpop.xlane.xlu0 %2734 }
0x1334   :  { %5329 = vpow2.f32 %v2743_v54  ;;  %v2741_v56 = vsub.f32 %v2725_v38, %v2735_v55 }
0x1336   :  { %v2747_v51 = vmul.f32 1.442695, %v2741_v56 }
0x1337   :  { %v2738_v58 = vpop.xlane.xlu0 %2737 }
0x1338   :  { %5331 = vpow2.f32 %v2747_v51  ;;  %v2742_v59 = vsub.f32 %v2726_v40, %v2738_v58 }
0x133a   :  { %v2749_v36 = vmul.f32 1.442695, %v2742_v59 }
0x133c   :  { %5333 = vpow2.f32 %v2749_v36 }
0x133d   :  { %v6169_v60 = vpop.eup %5327 }
0x133e   :  { %v5330_v62 = vpop.eup %5329  ;;  %v2754_v7 = vsel %vm77_vm0, %v6169_v60, 0.0 }
0x133f   :  { %2755 = vadd.xlane.f32.xlu1 %v2754_v7  ;;  %v2751_v34 = vsel %vm77_vm0, %v5330_v62, 0.0 }
0x1340   :  { %2752 = vadd.xlane.f32.xlu0 %v2751_v34 }
0x1342   :  { %v6174_v32 = vpop.eup %5331 }
0x1343   :  { %v2757_v37 = vsel %vm77_vm0, %v6174_v32, 0.0 }
0x1344   :  { %2758 = vadd.xlane.f32.xlu0 %v2757_v37 }
0x1346   :  { %v6178_v9 = vpop.eup %5333 }
0x1347   :  { %v2760_v10 = vsel %vm77_vm0, %v6178_v9, 0.0 }
0x1348   :  { %2761 = vadd.xlane.f32.xlu1 %v2760_v10 }
0x1359   :  { %5157 = vrot.lane.b32.xlu1 %v6034_v24, %s5431_s25 }
0x135a   :  { %5152 = vrot.lane.b32.xlu0 %v6036_v26, %s5431_s25 }
0x135d   :  { %5162 = vrot.lane.b32.xlu1 %v6043_v45, %s6458_s4  ;;  %v3123_v45 = vmul.f32 0.35355338, %v3112_v50 }
0x135e   :  { %3348 = vrot.lane.b32.xlu0 %v6030_v35, %s6458_s4 }
0x135f   :  { %v6202_v35 = vadd.f32 %v6088_v57, %v3123_v45 }
0x1361   :  { %5167 = vrot.lane.b32.xlu1 %v6041_v43, %s6458_s4  ;;  %v3129_v43 = vsel %vm77_vm0, %v6199_v19, -inf }
0x1362   :  { %3352 = vrot.lane.b32.xlu0 %v6055_v0, %s6458_s4  ;;  %v3122_v0 = vmul.f32 0.35355338, %v4795_v46 }
0x1365   :  { %3350 = vrot.lane.b32.xlu1 %v6053_v63, %s6458_s4  ;;  %v3135_v63 = vsel %vm77_vm0, %v6202_v35, -inf }
0x1369   :  { %3354 = vrot.lane.b32.xlu1 %v6061_v1, %s6458_s4  ;;  %v6212_v1 = vadd.f32 %v6068_v39, %v3122_v0 }
0x136b   :  { %v3132_v25 = vsel %vm77_vm0, %v6212_v1, -inf }
0x1381   :  { %3130 = vmax.xlane.f32.xlu0 %v3129_v43 }
0x1385   :  { %3136 = vmax.xlane.f32.xlu0 %v3135_v63 }
0x1389   :  { %3139 = vmax.xlane.f32.xlu0 %v3138_v23 }
0x138d   :  { %3133 = vmax.xlane.f32.xlu1 %v3132_v25 }
0x13cc   :  { %v2756_v27 = vpop.xlane.xlu1 %2755 }
0x13cd   :  { %v2753_v18 = vpop.xlane.xlu0 %2752 }
0x13ce   :  { %5335 = vrcp.f32 %v2753_v18 }
0x13cf   :  { %5337 = vrcp.f32 %v2756_v27 }
0x13d1   :  { %v2759_v20 = vpop.xlane.xlu0 %2758 }
0x13d2   :  { %5339 = vrcp.f32 %v2759_v20 }
0x13d5   :  { %v2762_v28 = vpop.xlane.xlu1 %2761  ;;  %v5153_v29 = vpop.permute.xlu0 %5152 }
0x13d6   :  { %v5155_v31 = vunpack.i.h.bf16 %v5153_v29  ;;  %v5154_v33 = vunpack.i.l.bf16 %v5153_v29  ;;  %5341 = vrcp.f32 %v2762_v28  ;;  %v4248_v29 = vld [vmem:[%s6428_s10 + $0x14] sm:$0xf] }
0x13d8   :  { %v5336_v38 = vpop.eup %5335  ;;  %v4985_v40 = vpack.c.bf16 %v5155_v31, %v5154_v33  ;;  %v2895_v31 = vsel %vm929_vm3, %v4248_v29, 0  ;;  %v4235_v33 = vld [vmem:[%s6428_s10 + $0x10] sm:$0xf] }
0x13d9   :  { %v5158_v41 = vpop.permute.xlu1 %5157  ;;  %v3349_v44 = vpop.permute.xlu0 %3348  ;;  %v2767_v46 = vmul.f32 %v5336_v38, %v5330_v62 }
0x13da   :  { %v5160_v48 = vunpack.i.h.bf16 %v5158_v41  ;;  %v5159_v49 = vunpack.i.l.bf16 %v5158_v41  ;;  %4986 = vmatprep.subr.bf16.mxu1 %v4985_v40  ;;  %4827 = vmatprep.mubr.msk.f32.mxu0 %vm375_vm1, %v3349_v44  ;;  %v5338_v52 = vpop.eup %5337 }
0x13db   :  { %4988 = vmatpush3.bf16.msra.mxu1 %v4985_v40  ;;  %4767 = vmatprep.mubr.msk.f32.mxu1 %vm77_vm0, %v2767_v46  ;;  %v2768_v54 = vmul.f32 %v5338_v52, %v6169_v60 }
0x13dc   :  { %v4989_v50 = vpack.c.bf16 %v5160_v48, %v5159_v49  ;;  %v5340_v4 = vpop.eup %5339 }
0x13dd   :  { %v5163_v2 = vpop.permute.xlu1 %5162  ;;  %v2769_v58 = vmul.f32 %v5340_v4, %v6174_v32  ;;  %v3353_v34 = vpop.permute.xlu0 %3352 }
0x13de   :  { %v5165_v42 = vunpack.i.h.bf16 %v5163_v2  ;;  %v5164_v53 = vunpack.i.l.bf16 %v5163_v2  ;;  %4990 = vmatprep.subr.bf16.mxu1 %v4989_v50 }
0x13df   :  { %4992 = vmatpush3.bf16.msra.mxu1 %v4989_v50 }
0x13e0   :  { %v5013_v55 = vpack.c.bf16 %v5165_v42, %v5164_v53  ;;  %v5342_v56 = vpop.eup %5341  ;;  %5061 = vmatprep.subr.msk.bf16.mxu1 %vm929_vm3, %v4248_v29  ;;  %v2953_v53 = vsel %vm929_vm3, %v4235_v33, 0 }
0x13e1   :  { %v5168_v51 = vpop.permute.xlu1 %5167  ;;  %v2770_v60 = vmul.f32 %v5342_v56, %v6178_v9 }
0x13e2   :  { %v5170_v59 = vunpack.i.h.bf16 %v5168_v51  ;;  %v5169_v36 = vunpack.i.l.bf16 %v5168_v51  ;;  %4768 = vmatmul.mubr.msk.f32.vlgmr.msra.gmra.mrb[40].mxu1 %vm77_vm0, %v2768_v54  ;;  %5015 = vmatprep.subr.msk.bf16.mxu0 %vm5611_vm2, %v5013_v55 }
0x13e3   :  { %4770 = vmatprep.mubr.msk.f32.mxu1 %vm77_vm0, %v2769_v58  ;;  %5018 = vmatpush3.bf16.xpose.msk.msra.mxu0 %vm5611_vm2, %v5013_v55 }
0x13e4   :  { %v5019_v62 = vpack.c.bf16 %v5170_v59, %v5169_v36  ;;  %4774 = vmatpush3.bf16.msra.mxu1 %v2895_v31 }
0x13e5   :  { %v3351_v7 = vpop.permute.xlu1 %3350  ;;  %5062 = vmatprep.subr.msk.bf16.mxu1 %vm929_vm3, %v4235_v33 }
0x13e6   :  { %4771 = vmatmul.mubr.msk.f32.gmra.mrb[42].mxu1 %vm77_vm0, %v2770_v60  ;;  %5021 = vmatprep.subr.msk.bf16.mxu0 %vm5611_vm2, %v5019_v62 }
0x13e9   :  { %v3355_v32 = vpop.permute.xlu1 %3354 }
0x13eb   :  { %5024 = vmatpush3.bf16.xpose.msk.msra.mxu0 %vm5611_vm2, %v5019_v62 }
0x13f2   :  { %4828 = vmatmul.mubr.msk.f32.vlgmr.msra.gmra.mrb[44].mxu0 %vm375_vm1, %v3351_v7 }
0x13f3   :  { %4830 = vmatprep.mubr.msk.f32.mxu0 %vm375_vm1, %v3353_v34 }
0x13f6   :  { %4831 = vmatmul.mubr.msk.f32.gmra.mrb[46].mxu0 %vm375_vm1, %v3355_v32 }
0x140e   :  { %v3131_v37 = vpop.xlane.xlu0 %3130 }
0x140f   :  { %v3141_v9 = vsub.f32 %v6199_v19, %v3131_v37 }
0x1411   :  { %v3145_v10 = vmul.f32 1.442695, %v3141_v9 }
0x1412   :  { %v3137_v11 = vpop.xlane.xlu0 %3136 }
0x1413   :  { %5343 = vpow2.f32 %v3145_v10  ;;  %v3143_v45 = vsub.f32 %v6202_v35, %v3137_v11 }
0x1415   :  { %v3149_v21 = vmul.f32 1.442695, %v3143_v45 }
0x1416   :  { %v3140_v30 = vpop.xlane.xlu0 %3139 }
0x1417   :  { %5345 = vpow2.f32 %v3149_v21  ;;  %v3144_v43 = vsub.f32 %v6207_v22, %v3140_v30 }
0x1419   :  { %v3151_v25 = vmul.f32 1.442695, %v3144_v43 }
0x141a   :  { %v3134_v0 = vpop.xlane.xlu1 %3133 }
0x141b   :  { %v3142_v63 = vsub.f32 %v6212_v1, %v3134_v0 }
0x141d   :  { %v5344_v23 = vpop.eup %5343  ;;  %v3147_v18 = vmul.f32 1.442695, %v3142_v63 }
0x141e   :  { %v3153_v27 = vsel %vm77_vm0, %v5344_v23, 0.0 }
0x141f   :  { %5347 = vpow2.f32 %v3147_v18  ;;  %3154 = vadd.xlane.f32.xlu0 %v3153_v27 }
0x1420   :  { %5349 = vpow2.f32 %v3151_v25 }
0x1421   :  { %v6242_v19 = vpop.eup %5345 }
0x1422   :  { %v3159_v35 = vsel %vm77_vm0, %v6242_v19, 0.0 }
0x1423   :  { %3160 = vadd.xlane.f32.xlu0 %v3159_v35 }
0x1429   :  { %v6246_v20 = vpop.eup %5347 }
0x142a   :  { %v3156_v22 = vsel %vm77_vm0, %v6246_v20, 0.0  ;;  %v6250_v1 = vpop.eup %5349 }
0x142b   :  { %3157 = vadd.xlane.f32.xlu1 %v3156_v22  ;;  %v3162_v28 = vsel %vm77_vm0, %v6250_v1, 0.0 }
0x142f   :  { %3163 = vadd.xlane.f32.xlu1 %v3162_v28 }
0x1439   :  { %5172 = vrot.lane.b32.xlu0 %v6036_v26, %s5432_s3 }
0x1440   :  { %5177 = vrot.lane.b32.xlu1 %v6034_v24, %s5432_s3 }
0x14ac   :  { %v3155_v38 = vpop.xlane.xlu0 %3154 }
0x14ad   :  { %5351 = vrcp.f32 %v3155_v38 }
0x14b0   :  { %v3161_v40 = vpop.xlane.xlu0 %3160 }
0x14b4   :  { %v5173_v44 = vpop.permute.xlu0 %5172 }
0x14b5   :  { %v4769_v41 = vpop.f32.mrb[40].mxu1  ;;  %v5175_v50 = vunpack.i.h.bf16 %v5173_v44  ;;  %v5174_v52 = vunpack.i.l.bf16 %v5173_v44 }
0x14b6   :  { %v2865_v46 = vpop.f32.mrb[41].mxu1 }
0x14b7   :  { %v2884_v48 = vpack.c.bf16 %v4769_v41, %v2865_v46  ;;  %v5005_v55 = vpack.c.bf16 %v5175_v50, %v5174_v52  ;;  %v5352_v51 = vpop.eup %5351 }
0x14b8   :  { %v3158_v49 = vpop.xlane.xlu1 %3157  ;;  %v3169_v32 = vmul.f32 %v5352_v51, %v5344_v23 }
0x14b9   :  { %v4772_v2 = vpop.f32.mrb[42].mxu1  ;;  %4775 = vmatprep.mubr.msk.bf16.mxu1 %vm375_vm1, %v2884_v48  ;;  %5353 = vrcp.f32 %v3158_v49 }
0x14ba   :  { %v2875_v4 = vpop.f32.mrb[43].mxu1  ;;  %5355 = vrcp.f32 %v3161_v40 }
0x14bb   :  { %v2885_v42 = vpack.c.bf16 %v4772_v2, %v2875_v4 }
0x14bc   :  { %v3164_v54 = vpop.xlane.xlu1 %3163 }
0x14bd   :  { %4776 = vmatmul.mubr.msk.bf16.vlgmr.msra.gmra.mrb[44].mxu1 %vm375_vm1, %v2885_v42  ;;  %5357 = vrcp.f32 %v3164_v54 }
0x14be   :  { %4780 = vmatpush3.bf16.msra.mxu1 %v2953_v53  ;;  %4781 = vmatprep.mubr.msk.bf16.mxu1 %vm375_vm1, %v2598_v14 }
0x14bf   :  { %5006 = vmatprep.subr.bf16.mxu1 %v5005_v55 }
0x14c0   :  { %v5178_v56 = vpop.permute.xlu1 %5177 }
0x14c1   :  { %v5180_v58 = vunpack.i.h.bf16 %v5178_v56  ;;  %v5179_v59 = vunpack.i.l.bf16 %v5178_v56 }
0x14c3   :  { %v5009_v37 = vpack.c.bf16 %v5180_v58, %v5179_v59  ;;  %v5354_v45 = vpop.eup %5353 }
0x14c4   :  { %v5356_v15 = vpop.eup %5355  ;;  %v3170_v21 = vmul.f32 %v5354_v45, %v6246_v20 }
0x14c5   :  { %v4829_v36 = vpop.f32.mrb[44].mxu0  ;;  %v3171_v0 = vmul.f32 %v5356_v15, %v6242_v19 }
0x14c6   :  { %v3466_v62 = vmul.f32 0.35355338, %v4829_v36  ;;  %v3446_v60 = vpop.f32.mrb[45].mxu0 }
0x14c7   :  { %v3465_v7 = vmul.f32 0.35355338, %v3446_v60  ;;  %v5358_v43 = vpop.eup %5357 }
0x14c8   :  { %v3470_v34 = vadd.f32 %v6068_v39, %v3466_v62 }
0x14c9   :  { %v3469_v12 = vadd.f32 %v6074_v3, %v3465_v7  ;;  %4782 = vmatmul.mubr.msk.bf16.vlgmr.msra.gmra.mrb[44].mxu1 %vm375_vm1, %v2599_v17  ;;  %v4832_v13 = vpop.f32.mrb[46].mxu0 }
0x14ca   :  { %5008 = vmatpush3.bf16.msra.mxu1 %v5005_v55  ;;  %v3468_v14 = vmul.f32 0.35355338, %v4832_v13  ;;  %4807 = vmatprep.mubr.msk.f32.mxu1 %vm77_vm0, %v3169_v32  ;;  %v3456_v9 = vpop.f32.mrb[47].mxu0  ;;  %v3476_v10 = vsel %vm77_vm0, %v3470_v34, -inf }
0x14cb   :  { %5010 = vmatprep.subr.bf16.mxu1 %v5009_v37  ;;  %v3467_v11 = vmul.f32 0.35355338, %v3456_v9  ;;  %3477 = vmax.xlane.f32.xlu0 %v3476_v10  ;;  %v3473_v39 = vsel %vm77_vm0, %v3469_v12, -inf }
0x14cc   :  { %v3472_v3 = vadd.f32 %v6082_v47, %v3468_v14  ;;  %3474 = vmax.xlane.f32.xlu1 %v3473_v39  ;;  %v3172_v47 = vmul.f32 %v5358_v43, %v6250_v1  ;;  %v4284_v43 = vld [vmem:[%s6429_s11 + $0x1] ss:$0 sm:$0xff] }
0x14cd   :  { %v3471_v16 = vadd.f32 %v6088_v57, %v3467_v11  ;;  %v4265_v57 = vld [vmem:[%s6428_s10 + $0x18] sm:$0xf]  ;;  %v4280_v11 = vld [vmem:[%s6428_s10 + $0x1c] sm:$0xf] }
0x14ce   :  { %5012 = vmatpush3.bf16.msra.mxu1 %v5009_v37  ;;  %v3482_v17 = vsel %vm77_vm0, %v3472_v3, -inf  ;;  %v3293_v63 = vsel %vm929_vm3, %v4265_v57, 0  ;;  %v3637_v39 = vsel %vm929_vm3, %v4280_v11, 0 }
0x14cf   :  { %v3479_v30 = vsel %vm77_vm0, %v3471_v16, -inf  ;;  %5063 = vmatprep.subr.msk.bf16.mxu1 %vm929_vm3, %v4265_v57 }
0x14d0   :  { %3480 = vmax.xlane.f32.xlu0 %v3479_v30  ;;  %3483 = vmax.xlane.f32.xlu1 %v3482_v17 }
0x14d1   :  { %4808 = vmatmul.mubr.msk.f32.vlgmr.msra.gmra.mrb[48].mxu1 %vm77_vm0, %v3170_v21 }
0x14d2   :  { %4810 = vmatprep.mubr.msk.f32.mxu1 %vm77_vm0, %v3171_v0  ;;  %4814 = vmatpush3.bf16.msra.mxu1 %v3293_v63 }
0x14d5   :  { %4811 = vmatmul.mubr.msk.f32.gmra.mrb[50].mxu1 %vm77_vm0, %v3172_v47 }
0x1558   :  { %v3478_v23 = vpop.xlane.xlu0 %3477 }
0x1559   :  { %v3486_v25 = vsub.f32 %v3470_v34, %v3478_v23  ;;  %v3475_v18 = vpop.xlane.xlu1 %3474 }
0x155a   :  { %v3485_v27 = vsub.f32 %v3469_v12, %v3475_v18 }
0x155b   :  { %v3491_v19 = vmul.f32 1.442695, %v3486_v25 }
0x155c   :  { %v3489_v35 = vmul.f32 1.442695, %v3485_v27 }
0x155d   :  { %5359 = vpow2.f32 %v3491_v19  ;;  %v3484_v20 = vpop.xlane.xlu1 %3483  ;;  %v3481_v22 = vpop.xlane.xlu0 %3480 }
0x155e   :  { %5361 = vpow2.f32 %v3489_v35  ;;  %v3488_v1 = vsub.f32 %v3472_v3, %v3484_v20  ;;  %v3487_v28 = vsub.f32 %v3471_v16, %v3481_v22 }
0x1560   :  { %v3495_v29 = vmul.f32 1.442695, %v3488_v1  ;;  %v3493_v31 = vmul.f32 1.442695, %v3487_v28 }
0x1562   :  { %5363 = vpow2.f32 %v3495_v29 }
0x1563   :  { %5365 = vpow2.f32 %v3493_v31 }
0x1567   :  { %v5360_v33 = vpop.eup %5359 }
0x1568   :  { %v5362_v38 = vpop.eup %5361  ;;  %v3500_v40 = vsel %vm77_vm0, %v5360_v33, 0.0 }
0x1569   :  { %3501 = vadd.xlane.f32.xlu1 %v3500_v40  ;;  %v3497_v41 = vsel %vm77_vm0, %v5362_v38, 0.0 }
0x156a   :  { %3498 = vadd.xlane.f32.xlu0 %v3497_v41 }
0x156c   :  { %v5364_v44 = vpop.eup %5363 }
0x156d   :  { %v5366_v46 = vpop.eup %5365  ;;  %v3506_v48 = vsel %vm77_vm0, %v5364_v44, 0.0 }
0x156e   :  { %3507 = vadd.xlane.f32.xlu1 %v3506_v48  ;;  %v3503_v49 = vsel %vm77_vm0, %v5366_v46, 0.0 }
0x156f   :  { %3504 = vadd.xlane.f32.xlu0 %v3503_v49 }
0x157f   :  { %5187 = vrot.lane.b32.xlu1 %v6034_v24, %s6458_s4 }
0x1585   :  { %5182 = vrot.lane.b32.xlu0 %v6036_v26, %s6458_s4 }
0x15a4   :  { %v4809_v50 = vpop.f32.mrb[48].mxu1 }
0x15a5   :  { %v3263_v52 = vpop.f32.mrb[49].mxu1 }
0x15a6   :  { %v3282_v2 = vpack.c.bf16 %v4809_v50, %v3263_v52 }
0x15a8   :  { %v4812_v4 = vpop.f32.mrb[50].mxu1  ;;  %4815 = vmatprep.mubr.msk.bf16.mxu1 %vm375_vm1, %v3282_v2 }
0x15a9   :  { %v3273_v42 = vpop.f32.mrb[51].mxu1 }
0x15aa   :  { %v3283_v53 = vpack.c.bf16 %v4812_v4, %v3273_v42 }
0x15ac   :  { %4816 = vmatmul.mubr.msk.bf16.vlgmr.msra.gmra.mrb[44].mxu1 %vm375_vm1, %v3283_v53 }
0x15f6   :  { %v3502_v54 = vpop.xlane.xlu1 %3501 }
0x15f7   :  { %v3499_v55 = vpop.xlane.xlu0 %3498 }
0x15f8   :  { %5367 = vrcp.f32 %v3499_v55  ;;  %v5209_v55 = vld [vmem:[%s6432_s14 + $0x10] sm:$0xff]  }
0x15f9   :  { %5369 = vrcp.f32 %v3502_v54  ;;  %4853 = vmatprep.subr.bf16.mxu0 %v5209_v55 }
0x15fa   :  { %4854 = vmatpush3.bf16.msra.mxu0 %v5209_v55 }
0x15fb   :  { %v3508_v56 = vpop.xlane.xlu1 %3507 }
0x15fc   :  { %v3505_v51 = vpop.xlane.xlu0 %3504 }
0x15fd   :  { %5371 = vrcp.f32 %v3505_v51 }
0x15fe   :  { %5373 = vrcp.f32 %v3508_v56  ;;  %v5210_v56 = vld [vmem:[%s6432_s14 + $0x18] sm:$0xff]  }
0x15ff   :  { %v5188_v24 = vpop.permute.xlu1 %5187  ;;  %4855 = vmatprep.subr.bf16.mxu0 %v5210_v56 }
0x1600   :  { %v5183_v58 = vpop.permute.xlu0 %5182  ;;  %v5190_v26 = vunpack.i.h.bf16 %v5188_v24  ;;  %v5189_v59 = vunpack.i.l.bf16 %v5188_v24  ;;  %4856 = vmatpush3.bf16.msra.mxu0 %v5210_v56 }
0x1601   :  { %v5185_v36 = vunpack.i.h.bf16 %v5183_v58  ;;  %v5184_v62 = vunpack.i.l.bf16 %v5183_v58 }
0x1602   :  { %v5368_v60 = vpop.eup %5367  ;;  %v5029_v32 = vpack.c.bf16 %v5190_v26, %v5189_v59 }
0x1603   :  { %v5025_v7 = vpack.c.bf16 %v5185_v36, %v5184_v62  ;;  %v3513_v34 = vmul.f32 %v5368_v60, %v5362_v38  ;;  %v5370_v37 = vpop.eup %5369 }
0x1604   :  { %v3514_v13 = vmul.f32 %v5370_v37, %v5360_v33 }
0x1605   :  { %5026 = vmatprep.subr.bf16.mxu1 %v5025_v7  ;;  %4841 = vmatprep.mubr.msk.f32.mxu1 %vm77_vm0, %v3513_v34 }
0x1606   :  { %5028 = vmatpush3.bf16.msra.mxu1 %v5025_v7 }
0x1607   :  { %5030 = vmatprep.subr.bf16.mxu1 %v5029_v32  ;;  %v5372_v12 = vpop.eup %5371 }
0x1608   :  { %v5374_v14 = vpop.eup %5373  ;;  %v3515_v9 = vmul.f32 %v5372_v12, %v5366_v46 }
0x1609   :  { %v3516_v10 = vmul.f32 %v5374_v14, %v5364_v44 }
0x160a   :  { %5032 = vmatpush3.bf16.msra.mxu1 %v5029_v32 }
0x160b   :  { %5064 = vmatprep.subr.msk.bf16.mxu1 %vm929_vm3, %v4280_v11 }
0x160d   :  { %4842 = vmatmul.mubr.msk.f32.vlgmr.msra.gmra.mrb[52].mxu1 %vm77_vm0, %v3514_v13  ;;  %v4287_v13 = vld [vmem:[%s6430_s12 + $0x1] ss:$0 sm:$0xff] }
0x160e   :  { %4844 = vmatprep.mubr.msk.f32.mxu1 %vm77_vm0, %v3515_v9  ;;  %4848 = vmatpush3.bf16.msra.mxu1 %v3637_v39  ;;  %v4288_v39 = vld [vmem:[%s6431_s13 + $0x1] ss:$0 sm:$0xff] }
0x1611   :  { %4845 = vmatmul.mubr.msk.f32.gmra.mrb[54].mxu1 %vm77_vm0, %v3516_v10 }
0x16e0   :  { %v4843_v45 = vpop.f32.mrb[52].mxu1 }
0x16e1   :  { %v3607_v3 = vpop.f32.mrb[53].mxu1 }
0x16e2   :  { %v3626_v15 = vpack.c.bf16 %v4843_v45, %v3607_v3 }
0x16e4   :  { %v4846_v16 = vpop.f32.mrb[54].mxu1  ;;  %4849 = vmatprep.mubr.msk.bf16.mxu1 %vm375_vm1, %v3626_v15 }
0x16e5   :  { %v3617_v17 = vpop.f32.mrb[55].mxu1 }
0x16e6   :  { %v3627_v21 = vpack.c.bf16 %v4846_v16, %v3617_v17 }
0x16e8   :  { %4850 = vmatmul.mubr.msk.bf16.vlgmr.msra.gmra.mrb[44].mxu1 %vm375_vm1, %v3627_v21 }
0x17bb   :  { %v4851_v30 = vpop.f32.mrb[44].mxu1 }
0x17bc   :  { %v3673_v0 = vpop.f32.mrb[45].mxu1  ;;  %v3694_v25 = vadd.f32 %v4851_v30, %v5970_v5 }
0x17bd   :  { %v3692_v47 = vadd.f32 %v3673_v0, %v5967_v8  ;;  %v4852_v57 = vpop.f32.mrb[46].mxu1 }
0x17be   :  { %v3695_v63 = vadd.f32 %v4852_v57, %v5978_v6  ;;  %v3676_v23 = vpop.f32.mrb[47].mxu1  ;;  %v6334_v22 = vadd.f32 %v4284_v43, %v3694_v25  ;;  %v5211_v25 = vld [vmem:[%s6434_s16 + $0x20] sm:$0xff]  }
0x17bf   :  { %v6325_v18 = vadd.f32 %v4284_v43, %v3692_v47  ;;  %v3693_v27 = vadd.f32 %v3676_v23, %v5973_v61  ;;  %4861 = vmatprep.subr.bf16.mxu0 %v5211_v25 }
0x17c0   :  { %v6328_v19 = vadd.f32 %v4284_v43, %v3695_v63  ;;  %v3718_v61 = vsel %vm77_vm0, %v6334_v22, 0.0 }
0x17c1   :  { %v6330_v35 = vadd.f32 %v4284_v43, %v3693_v27  ;;  %v3712_v20 = vsel %vm77_vm0, %v6325_v18, 0.0  ;;  %v5212_v27 = vld [vmem:[%s6434_s16 + $0x28] sm:$0xff]  }
0x17c2   :  { %3713 = vadd.xlane.f32.xlu1 %v3712_v20  ;;  %v3721_v5 = vsel %vm77_vm0, %v6328_v19, 0.0  ;;  %v5213_v20 = vld [vmem:[%s6434_s16 + $0x30] sm:$0xff]  }
0x17c3   :  { %v3715_v8 = vsel %vm77_vm0, %v6330_v35, 0.0 }
0x17c4   :  { %3716 = vadd.xlane.f32.xlu0 %v3715_v8  ;;  %v5214_v8 = vld [vmem:[%s6434_s16 + $0x38] sm:$0xff]  }
0x17c6   :  { %3722 = vadd.xlane.f32.xlu1 %v3721_v5  ;;  %v4294_v5 = vld [vmem:[%s6433_s15 + $0x1] ss:$0 sm:$0xff] }
0x17c8   :  { %3719 = vadd.xlane.f32.xlu0 %v3718_v61 }
0x184f   :  { %v3714_v6 = vpop.xlane.xlu1 %3713 }
0x1850   :  { %v3724_v1 = vmul.f32 0.03125, %v3714_v6 }
0x1851   :  { %v3717_v28 = vpop.xlane.xlu0 %3716 }
0x1852   :  { %v3728_v29 = vsub.f32 %v6325_v18, %v3724_v1  ;;  %v3725_v31 = vmul.f32 0.03125, %v3717_v28 }
0x1853   :  { %v3723_v33 = vpop.xlane.xlu1 %3722 }
0x1854   :  { %v3729_v38 = vsub.f32 %v6330_v35, %v3725_v31  ;;  %v3727_v40 = vmul.f32 0.03125, %v3723_v33  ;;  %v3732_v41 = vmul.f32 %v3728_v29, %v3728_v29 }
0x1855   :  { %v3720_v44 = vpop.xlane.xlu0 %3719 }
0x1856   :  { %v3731_v46 = vsub.f32 %v6328_v19, %v3727_v40  ;;  %v3726_v48 = vmul.f32 0.03125, %v3720_v44  ;;  %v3736_v49 = vsel %vm77_vm0, %v3732_v41, 0.0  ;;  %v3733_v50 = vmul.f32 %v3729_v38, %v3729_v38 }
0x1857   :  { %3737 = vadd.xlane.f32.xlu0 %v3736_v49 }
0x1858   :  { %v3730_v52 = vsub.f32 %v6334_v22, %v3726_v48  ;;  %v3739_v2 = vsel %vm77_vm0, %v3733_v50, 0.0  ;;  %v3735_v4 = vmul.f32 %v3731_v46, %v3731_v46 }
0x1859   :  { %3740 = vadd.xlane.f32.xlu1 %v3739_v2 }
0x185a   :  { %v3734_v42 = vmul.f32 %v3730_v52, %v3730_v52  ;;  %v3745_v53 = vsel %vm77_vm0, %v3735_v4, 0.0 }
0x185c   :  { %v3742_v54 = vsel %vm77_vm0, %v3734_v42, 0.0 }
0x185d   :  { %3746 = vadd.xlane.f32.xlu1 %v3745_v53  ;;  %3743 = vadd.xlane.f32.xlu0 %v3742_v54 }
0x18e4   :  { %v3738_v51 = vpop.xlane.xlu0 %3737 }
0x18e5   :  { %v3748_v24 = vmul.f32 0.03125, %v3738_v51 }
0x18e6   :  { %v3741_v58 = vpop.xlane.xlu1 %3740 }
0x18e7   :  { %v3752_v26 = vadd.f32 1e-06, %v3748_v24  ;;  %v3749_v59 = vmul.f32 0.03125, %v3741_v58 }
0x18e9   :  { %5375 = vrsqrt.f32 %v3752_v26  ;;  %v3753_v36 = vadd.f32 1e-06, %v3749_v59 }
0x18ea   :  { %v3747_v62 = vpop.xlane.xlu1 %3746  ;;  %v3744_v60 = vpop.xlane.xlu0 %3743 }
0x18eb   :  { %5377 = vrsqrt.f32 %v3753_v36  ;;  %v3751_v7 = vmul.f32 0.03125, %v3747_v62  ;;  %v3750_v34 = vmul.f32 0.03125, %v3744_v60 }
0x18ed   :  { %v3755_v32 = vadd.f32 1e-06, %v3751_v7  ;;  %v3754_v37 = vadd.f32 1e-06, %v3750_v34 }
0x18ef   :  { %5379 = vrsqrt.f32 %v3755_v32 }
0x18f0   :  { %5381 = vrsqrt.f32 %v3754_v37 }
0x18f3   :  { %v5376_v12 = vpop.eup %5375 }
0x18f4   :  { %v3760_v14 = vmul.f32 %v5376_v12, %v3728_v29 }
0x18f5   :  { %v5378_v9 = vpop.eup %5377 }
0x18f6   :  { %v3761_v10 = vmul.f32 %v5378_v9, %v3729_v38  ;;  %v3770_v11 = vmul.f32 %v4287_v13, %v3760_v14 }
0x18f8   :  { %v3771_v45 = vmul.f32 %v4287_v13, %v3761_v10  ;;  %v3780_v17 = vadd.f32 %v4288_v39, %v3770_v11 }
0x18f9   :  { %v5380_v3 = vpop.eup %5379 }
0x18fa   :  { %v5382_v15 = vpop.eup %5381  ;;  %v3763_v16 = vmul.f32 %v5380_v3, %v3731_v46  ;;  %v3781_v21 = vadd.f32 %v4288_v39, %v3771_v45 }
0x18fb   :  { %v3762_v30 = vmul.f32 %v5382_v15, %v3730_v52 }
0x18fc   :  { %v3773_v43 = vmul.f32 %v4287_v13, %v3763_v16  ;;  %v3784_v0 = vpack.c.bf16 %v3781_v21, %v3780_v17  ;;  %v4308_v17 = vld [vmem:[%s6435_s17 + $0x1] ss:$0 sm:$0xff] }
0x18fd   :  { %v3772_v47 = vmul.f32 %v4287_v13, %v3762_v30 }
0x18fe   :  { %v3783_v57 = vadd.f32 %v4288_v39, %v3773_v43  ;;  %4857 = vmatprep.mubr.msk.bf16.mxu0 %vm77_vm0, %v3784_v0 }
0x18ff   :  { %v3782_v63 = vadd.f32 %v4288_v39, %v3772_v47 }
0x1901   :  { %v3785_v23 = vpack.c.bf16 %v3783_v57, %v3782_v63 }
0x1903   :  { %4858 = vmatmul.mubr.msk.bf16.vlgmr.msra.gmra.mrb[48].mxu0 %vm77_vm0, %v3785_v23 }
0x1904   :  { %4862 = vmatpush3.bf16.msra.mxu0 %v5211_v25 }
0x1905   :  { %4863 = vmatprep.subr.bf16.mxu0 %v5212_v27 }
0x1908   :  { %4864 = vmatpush3.bf16.msra.mxu0 %v5212_v27 }
0x1909   :  { %4865 = vmatprep.subr.bf16.mxu0 %v5213_v20 }
0x190c   :  { %4866 = vmatpush3.bf16.msra.mxu0 %v5213_v20 }
0x190d   :  { %4867 = vmatprep.subr.bf16.mxu0 %v5214_v8 }
0x1910   :  { %4868 = vmatpush3.bf16.msra.mxu0 %v5214_v8 }
0x19d6   :  { %v4859_v61 = vpop.f32.mrb[48].mxu0 }
0x19d7   :  { %v3860_v6 = vadd.f32 %v4859_v61, %v4294_v5  ;;  %v3851_v1 = vpop.f32.mrb[49].mxu0 }
0x19d8   :  { %v3852_v28 = vadd.f32 %v4294_v5, %v3851_v1  ;;  %v4860_v29 = vpop.f32.mrb[50].mxu0 }
0x19d9   :  { %v3872_v31 = vmul.f32 %v3860_v6, %v3860_v6  ;;  %v3863_v33 = vadd.f32 %v4860_v29, %v4294_v5  ;;  %v3854_v38 = vpop.f32.mrb[51].mxu0  ;;  %v3868_v37 = vmul.f32 0.5, %v3860_v6 }
0x19da   :  { %v3870_v40 = vmul.f32 %v3852_v28, %v3852_v28  ;;  %v3855_v41 = vadd.f32 %v4294_v5, %v3854_v38  ;;  %v3866_v14 = vmul.f32 0.5, %v3852_v28 }
0x19db   :  { %v3876_v44 = vmul.f32 %v3872_v31, %v3860_v6  ;;  %v3873_v46 = vmul.f32 %v3863_v33, %v3863_v33  ;;  %v3869_v12 = vmul.f32 0.5, %v3863_v33 }
0x19dc   :  { %v3874_v48 = vmul.f32 %v3870_v40, %v3852_v28  ;;  %v3871_v49 = vmul.f32 %v3855_v41, %v3855_v41  ;;  %v3867_v9 = vmul.f32 0.5, %v3855_v41 }
0x19dd   :  { %v3880_v50 = vmul.f32 0.044715, %v3876_v44  ;;  %v3877_v52 = vmul.f32 %v3873_v46, %v3863_v33 }
0x19de   :  { %v3878_v2 = vmul.f32 0.044715, %v3874_v48  ;;  %v3875_v4 = vmul.f32 %v3871_v49, %v3855_v41 }
0x19df   :  { %v3884_v42 = vadd.f32 %v3880_v50, %v3860_v6  ;;  %v3881_v53 = vmul.f32 0.044715, %v3877_v52 }
0x19e0   :  { %v3882_v54 = vadd.f32 %v3878_v2, %v3852_v28  ;;  %v3879_v55 = vmul.f32 0.044715, %v3875_v4 }
0x19e1   :  { %v3888_v56 = vmul.f32 0.7978846, %v3884_v42  ;;  %v3885_v51 = vadd.f32 %v3881_v53, %v3863_v33 }
0x19e2   :  { %v3886_v24 = vmul.f32 0.7978846, %v3882_v54  ;;  %v3883_v58 = vadd.f32 %v3879_v55, %v3855_v41 }
0x19e3   :  { %5383 = vtanh.f32 %v3888_v56  ;;  %v3889_v26 = vmul.f32 0.7978846, %v3885_v51 }
0x19e4   :  { %5385 = vtanh.f32 %v3886_v24  ;;  %v3887_v59 = vmul.f32 0.7978846, %v3883_v58 }
0x19e5   :  { %5387 = vtanh.f32 %v3889_v26 }
0x19e6   :  { %5389 = vtanh.f32 %v3887_v59 }
0x19ed   :  { %v5384_v36 = vpop.eup %5383 }
0x19ee   :  { %v5386_v62 = vpop.eup %5385  ;;  %v3896_v60 = vadd.f32 1.0, %v5384_v36 }
0x19ef   :  { %v5388_v7 = vpop.eup %5387  ;;  %v3894_v34 = vadd.f32 1.0, %v5386_v62 }
0x19f0   :  { %v5390_v32 = vpop.eup %5389  ;;  %v3897_v13 = vadd.f32 1.0, %v5388_v7  ;;  %v3900_v11 = vmul.f32 %v3896_v60, %v3868_v37 }
0x19f1   :  { %v3895_v10 = vadd.f32 1.0, %v5390_v32  ;;  %v3898_v45 = vmul.f32 %v3894_v34, %v3866_v14  ;;  %v4315_v34 = vld [vmem:[%s6436_s18] ss:$0 sm:$0xff]  ;;  %s4087_s18 = sshll.u32 %s5434_s28, 4  ;;  %s4088_s18 = int_to_ptr.vmem [resolvable:$true] %s4087_s18 }
0x19f2   :  { %v3901_v39 = vmul.f32 %v3897_v13, %v3869_v12  ;;  %v4316_v12 = vld [vmem:[%s6437_s19] ss:$0 sm:$0xff]  ;;  %s5407_s19 = scalar_lea.vmem %s4088_s18, 512  ;;  %p5412_p1 = scmp.lt.s32.totalorder %s4088_s18, %s4088_s18 }
0x19f3   :  { %v3899_v3 = vmul.f32 %v3895_v10, %v3867_v9  ;;  %p5408_p0 = scmp.ne.s32.totalorder %s4088_s18, %s5407_s19  ;;  %p5413_p2 = scmp.lt.s32.totalorder %s5407_s19, %s5407_s19 }
0x19f4   :  { %v3903_v15 = vpack.c.bf16 %v3901_v39, %v3900_v11 }
0x19f5   :  { %v3902_v16 = vpack.c.bf16 %v3899_v3, %v3898_v45  ;;  %p5414_p3 = por %p5413_p2, %p5412_p1 }
0x19f7   :  { %4869 = vmatprep.mubr.msk.bf16.mxu0 %vm1974_vm4, %v3902_v16  ;;  %p5415_p4 = pnand %p5414_p3, %p5408_p0 }
0x19f8   :  { %4870 = vmatmul.mubr.msk.bf16.vlgmr.msra.gmra.mrb[52].mxu0 %vm1974_vm4, %v3903_v15 }
0x1acb   :  { %v4871_v21 = vpop.f32.mrb[52].mxu0 }
0x1acc   :  { %v3985_v30 = vpop.f32.mrb[53].mxu0  ;;  %v3994_v43 = vadd.f32 %v4871_v21, %v4308_v17 }
0x1acd   :  { %v3986_v0 = vadd.f32 %v4308_v17, %v3985_v30  ;;  %v4872_v47 = vpop.f32.mrb[54].mxu0 }
0x1ace   :  { %v3988_v57 = vpop.f32.mrb[55].mxu0  ;;  %v3997_v23 = vadd.f32 %v4872_v47, %v4308_v17  ;;  %v4002_v27 = vadd.f32 %v3994_v43, %v6334_v22 }
0x1acf   :  { %v4000_v63 = vadd.f32 %v3986_v0, %v6325_v18  ;;  %v3989_v25 = vadd.f32 %v4308_v17, %v3988_v57 }
0x1ad0   :  { %v4003_v5 = vadd.f32 %v3997_v23, %v6328_v19  ;;  %v4012_v6 = vsel %vm77_vm0, %v4002_v27, 0.0 }
0x1ad1   :  { %v4001_v20 = vadd.f32 %v3989_v25, %v6330_v35  ;;  %v4006_v8 = vsel %vm77_vm0, %v4000_v63, 0.0 }
0x1ad2   :  { %4007 = vadd.xlane.f32.xlu0 %v4006_v8  ;;  %v4015_v1 = vsel %vm77_vm0, %v4003_v5, 0.0 }
0x1ad3   :  { %v4009_v61 = vsel %vm77_vm0, %v4001_v20, 0.0 }
0x1ad4   :  { %4010 = vadd.xlane.f32.xlu1 %v4009_v61 }
0x1ad6   :  { %4013 = vadd.xlane.f32.xlu0 %v4012_v6 }
0x1ad8   :  { %4016 = vadd.xlane.f32.xlu1 %v4015_v1 }
0x1b5f   :  { %v4008_v18 = vpop.xlane.xlu0 %4007 }
0x1b60   :  { %v4018_v28 = vmul.f32 0.03125, %v4008_v18 }
0x1b61   :  { %v4011_v29 = vpop.xlane.xlu1 %4010 }
0x1b62   :  { %v4022_v22 = vsub.f32 %v4000_v63, %v4018_v28  ;;  %v4019_v31 = vmul.f32 0.03125, %v4011_v29 }
0x1b63   :  { %v4014_v35 = vpop.xlane.xlu0 %4013 }
0x1b64   :  { %v4023_v33 = vsub.f32 %v4001_v20, %v4019_v31  ;;  %v4020_v38 = vmul.f32 0.03125, %v4014_v35  ;;  %v4026_v40 = vmul.f32 %v4022_v22, %v4022_v22 }
0x1b65   :  { %v4017_v41 = vpop.xlane.xlu1 %4016 }
0x1b66   :  { %v4024_v19 = vsub.f32 %v4002_v27, %v4020_v38  ;;  %v4021_v44 = vmul.f32 0.03125, %v4017_v41  ;;  %v4030_v46 = vsel %vm77_vm0, %v4026_v40, 0.0  ;;  %v4027_v48 = vmul.f32 %v4023_v33, %v4023_v33 }
0x1b67   :  { %4031 = vadd.xlane.f32.xlu0 %v4030_v46 }
0x1b68   :  { %v4025_v49 = vsub.f32 %v4003_v5, %v4021_v44  ;;  %v4033_v50 = vsel %vm77_vm0, %v4027_v48, 0.0  ;;  %v4028_v52 = vmul.f32 %v4024_v19, %v4024_v19 }
0x1b69   :  { %4034 = vadd.xlane.f32.xlu1 %v4033_v50 }
0x1b6a   :  { %v4036_v2 = vsel %vm77_vm0, %v4028_v52, 0.0  ;;  %v4029_v4 = vmul.f32 %v4025_v49, %v4025_v49 }
0x1b6b   :  { %4037 = vadd.xlane.f32.xlu0 %v4036_v2 }
0x1b6c   :  { %v4039_v42 = vsel %vm77_vm0, %v4029_v4, 0.0 }
0x1b6d   :  { %4040 = vadd.xlane.f32.xlu1 %v4039_v42 }
0x1bf4   :  { %v4032_v53 = vpop.xlane.xlu0 %4031 }
0x1bf5   :  { %v4042_v54 = vmul.f32 0.03125, %v4032_v53 }
0x1bf6   :  { %v4035_v55 = vpop.xlane.xlu1 %4034 }
0x1bf7   :  { %v4046_v56 = vadd.f32 1e-06, %v4042_v54  ;;  %v4043_v51 = vmul.f32 0.03125, %v4035_v55 }
0x1bf8   :  { %v4038_v24 = vpop.xlane.xlu0 %4037 }
0x1bf9   :  { %5391 = vrsqrt.f32 %v4046_v56  ;;  %v4047_v58 = vadd.f32 1e-06, %v4043_v51  ;;  %v4044_v26 = vmul.f32 0.03125, %v4038_v24 }
0x1bfa   :  { %v4041_v59 = vpop.xlane.xlu1 %4040 }
0x1bfb   :  { %5393 = vrsqrt.f32 %v4047_v58  ;;  %v4048_v36 = vadd.f32 1e-06, %v4044_v26  ;;  %v4045_v62 = vmul.f32 0.03125, %v4041_v59 }
0x1bfd   :  { %5395 = vrsqrt.f32 %v4048_v36  ;;  %v4049_v60 = vadd.f32 1e-06, %v4045_v62 }
0x1bff   :  { %5397 = vrsqrt.f32 %v4049_v60 }
0x1c03   :  { %v5392_v7 = vpop.eup %5391 }
0x1c04   :  { %v4054_v32 = vmul.f32 %v5392_v7, %v4022_v22 }
0x1c05   :  { %v5394_v37 = vpop.eup %5393 }
0x1c06   :  { %v4064_v13 = vmul.f32 %v4315_v34, %v4054_v32  ;;  %v4055_v14 = vmul.f32 %v5394_v37, %v4023_v33 }
0x1c07   :  { %v5396_v9 = vpop.eup %5395 }
0x1c08   :  { %v4074_v10 = vadd.f32 %v4316_v12, %v4064_v13  ;;  %v4065_v11 = vmul.f32 %v4315_v34, %v4055_v14  ;;  %v4056_v39 = vmul.f32 %v5396_v9, %v4024_v19 }
0x1c09   :  { %v5398_v45 = vpop.eup %5397 }
0x1c0a   :  { %4078 = vst.msk [vmem:[#allocation2] sm:$0xff] %vm77_vm0, %v4074_v10  ;;  %v4075_v3 = vadd.f32 %v4316_v12, %v4065_v11  ;;  %v4066_v15 = vmul.f32 %v4315_v34, %v4056_v39  ;;  %v4057_v16 = vmul.f32 %v5398_v45, %v4025_v49 }
0x1c0c   :  { %4079 = vst.msk [vmem:[#allocation2 + $0x8] sm:$0xff] %vm77_vm0, %v4075_v3  ;;  %v4076_v17 = vadd.f32 %v4316_v12, %v4066_v15  ;;  %v4067_v21 = vmul.f32 %v4315_v34, %v4057_v16 }
0x1c0e   :  { %4080 = vst.msk [vmem:[#allocation2 + $0x10] sm:$0xff] %vm77_vm0, %v4076_v17  ;;  %v4077_v30 = vadd.f32 %v4316_v12, %v4067_v21 }
0x1c10   :  { %4081 = vst.msk [vmem:[#allocation2 + $0x18] sm:$0xff] %vm77_vm0, %v4077_v30 }
0x1c11   :  { %5418 = shalt.err (!%p5415_p4)
}
0x1c12   :  { %s5419_s5 = scalar_lea.hbm %s6438_s20, 512 }
0x1c13   :  { %p5420_p5 = scmp.ne.s32.totalorder %s6438_s20, %s5419_s5  ;;  %p5423_p6 = scmp.lt.u32.totalorder %s5419_s5, %s6438_s20 }
0x1c15   :  { %p5425_p7 = pnand %p5423_p6, %p5420_p5 }
0x1c17   :  { %5428 = shalt.err (!%p5425_p7)
}
0x1c18   :  { %s5435_s14 = smov 128   ;;  %s5436_s9 = smov 8  }
0x1c19   :  { %4093 = dma.vmem_to_hbm [thread:$0]  %s4088_s18, 512, %s6438_s20, [#allocation3], %s5435_s14, %s5435_s14, %s5436_s9  }
0x1c1a   :  { %5429 = dma.done.wait [#allocation3], 512  }
0x1c1b   :  { %5430 = vsyncadd [#allocation3], 4294966784 }
0x1c1c   :  { %4097 = vsyncpa [#allocation3], 1 }

</bundles_post_ra>
